<compile_context>
chip_gen: v6e
topology: v6e:2x2x1
jax: 0.10.0
libtpu: 0.0.40
codegen_flags: <defaults>
</compile_context>

<pallas_src>
import functools

import numpy as np
import jax
import jax.numpy as jnp
from jax.experimental import pallas as pl
from jax.experimental.pallas import tpu as pltpu

HIDDEN = 512


def _round_up(x, m):
    return ((x + m - 1) // m) * m


def _nbytes(a):
    return int(np.prod(a.shape)) * jnp.dtype(a.dtype).itemsize


# ----------------------------------------------------------------------------
# Fused kernel: one row-tile per grid step, full MLP stack in VMEM/vregs.
# ----------------------------------------------------------------------------
def _mapping_kernel(z_ref,                 # (TB, L)  f32
                    y_ref,                 # (TB, 1)  int32
                    swi_ref, sbi_ref,      # (L, 512) bf16, (1, 512) f32
                    swh_ref, sbh_ref,      # (3, 512, 512) bf16, (3, 1, 512) f32
                    uwh_ref, ubh_ref,      # (D, 3, 512, 512) bf16, (D, 3, 1, 512) f32
                    uwo_ref, ubo_ref,      # (D, 512, Sp) bf16, (D, 1, Sp) f32
                    o_ref):                # (TB, Sp) f32
    # shared stack: Linear(L,512)+ReLU, then 3x (Linear(512,512)+ReLU)
    h = jnp.dot(z_ref[...].astype(swi_ref.dtype), swi_ref[...],
                preferred_element_type=jnp.float32) + sbi_ref[...]
    h = jnp.maximum(h, 0.0)
    for l in range(swh_ref.shape[0]):
        h = jnp.dot(h.astype(swh_ref.dtype), swh_ref[l],
                    preferred_element_type=jnp.float32) + sbh_ref[l]
        h = jnp.maximum(h, 0.0)

    # unshared branches: compute every domain for the whole row tile and select
    # per row.  All branch weights are VMEM-resident (constant block index), so
    # there is no data-dependent DMA at all.
    y = y_ref[...]                                             # (TB, 1) int32
    num_domains = uwh_ref.shape[0]
    s = jnp.zeros((h.shape[0], o_ref.shape[-1]), jnp.float32)  # (TB, Sp)
    for d in range(num_domains):
        hd = h
        for l in range(uwh_ref.shape[1]):
            hd = jnp.dot(hd.astype(uwh_ref.dtype), uwh_ref[d, l],
                         preferred_element_type=jnp.float32) + ubh_ref[d, l]
            hd = jnp.maximum(hd, 0.0)
        hd = jnp.dot(hd.astype(uwo_ref.dtype), uwo_ref[d],
                     preferred_element_type=jnp.float32) + ubo_ref[d]
        s = jnp.where(y == d, hd, s)

    o_ref[...] = s.astype(o_ref.dtype)


# ----------------------------------------------------------------------------
# Wrapper
# ----------------------------------------------------------------------------
def mapping_network_forward(params, z, y, *, row_tile=256):
    B, L = z.shape
    D, n_hid, _, H = params["uw_hid"].shape
    S = params["uw_out"].shape[-1]

    # Row-tile sizing: up to `row_tile` rows per grid step, sublane aligned.
    tb = min(row_tile, _round_up(B, 8))
    Bp = _round_up(B, tb)
    if Bp != B:
        z = jnp.pad(z, ((0, Bp - B), (0, 0)))
        y = jnp.pad(y, (0, Bp - B))
    # Clamp y so a bad label can never select garbage (PyTorch would just error).
    y2 = jnp.clip(y.astype(jnp.int32), 0, D - 1).reshape(Bp, 1)

    # Pad the head to a lane-dense (multiple of 128) output width.
    Sp = _round_up(S, 128)
    uw_out = params["uw_out"]
    ub_out = params["ub_out"]
    if Sp != S:
        uw_out = jnp.pad(uw_out, ((0, 0), (0, 0), (0, Sp - S)))
        ub_out = jnp.pad(ub_out, ((0, 0), (0, 0), (0, Sp - S)))

    weights = (params["sw_in"], params["sb_in"], params["sw_hid"], params["sb_hid"],
               params["uw_hid"], params["ub_hid"], uw_out, ub_out)

    # VMEM budget from actual buffer sizes: weights are double-buffered by the
    # default pipeline, plus in/out row tiles, plus compiler scratch headroom.
    weight_bytes = sum(_nbytes(w) for w in weights)
    io_bytes = 2 * (tb * L * 4 + tb * 4 + tb * Sp * 4)
    vmem_limit = int(2 * weight_bytes + io_bytes + (8 << 20))

    grid = (Bp // tb,)
    out = pl.pallas_call(
        _mapping_kernel,
        out_shape=jax.ShapeDtypeStruct((Bp, Sp), jnp.float32),
        grid_spec=pltpu.PrefetchScalarGridSpec(
            num_scalar_prefetch=0,
            grid=grid,
            in_specs=[
                pl.BlockSpec((tb, L), lambda i: (i, 0)),
                pl.BlockSpec((tb, 1), lambda i: (i, 0)),
                # weights: constant block index -> fetched once, kept resident
                pl.BlockSpec((L, H), lambda i: (0, 0)),
                pl.BlockSpec((1, H), lambda i: (0, 0)),
                pl.BlockSpec((n_hid, H, H), lambda i: (0, 0, 0)),
                pl.BlockSpec((n_hid, 1, H), lambda i: (0, 0, 0)),
                pl.BlockSpec((D, n_hid, H, H), lambda i: (0, 0, 0, 0)),
                pl.BlockSpec((D, n_hid, 1, H), lambda i: (0, 0, 0, 0)),
                pl.BlockSpec((D, H, Sp), lambda i: (0, 0, 0)),
                pl.BlockSpec((D, 1, Sp), lambda i: (0, 0, 0)),
            ],
            out_specs=pl.BlockSpec((tb, Sp), lambda i: (i, 0)),
        ),
        compiler_params=pltpu.CompilerParams(
            dimension_semantics=("parallel",),
            vmem_limit_bytes=vmem_limit,
        ),
    )(z, y2, *weights)

    return out[:B, :S]


# ----------------------------------------------------------------------------
# Pure-JAX reference (mirrors the PyTorch forward incl. the out[idx, y] gather).
# Uses the same bf16-quantized weights upcast to f32.
# ----------------------------------------------------------------------------
def mapping_network_reference(params, z, y):
    f32 = lambda a: a.astype(jnp.float32)
    h = jnp.maximum(z @ f32(params["sw_in"]) + params["sb_in"][0], 0.0)
    for l in range(params["sw_hid"].shape[0]):
        h = jnp.maximum(h @ f32(params["sw_hid"][l]) + params["sb_hid"][l, 0], 0.0)
    branch_outs = []
    for d in range(params["uw_hid"].shape[0]):
        hd = h
        for l in range(params["uw_hid"].shape[1]):
            hd = jnp.maximum(hd @ f32(params["uw_hid"][d, l]) + params["ub_hid"][d, l, 0], 0.0)
        hd = hd @ f32(params["uw_out"][d]) + params["ub_out"][d, 0]
        branch_outs.append(hd)
    out = jnp.stack(branch_outs, axis=1)                 # (B, D, S)
    return out[jnp.arange(z.shape[0]), y]                # (B, S)


def init_params(key, *, latent_dim=16, style_dim=64, num_domains=2, hidden=HIDDEN,
                weight_dtype=jnp.bfloat16):
    ks = jax.random.split(key, 8)

    def w(k, shape):
        fan_in = shape[-2]
        m = jax.random.normal(k, shape, jnp.float32) / np.sqrt(float(fan_in))
        return m.astype(weight_dtype)          # weight stacks in bf16 (HBM bytes / 2)

    def b(k, shape):
        return 0.1 * jax.random.normal(k, shape, jnp.float32)   # biases stay f32

    return {
        # shared MLP
        "sw_in": w(ks[0], (latent_dim, hidden)),
        "sb_in": b(ks[1], (1, hidden)),
        "sw_hid": w(ks[2], (3, hidden, hidden)),
        "sb_hid": b(ks[3], (3, 1, hidden)),
        # unshared branches, stacked along the domain axis
        "uw_hid": w(ks[4], (num_domains, 3, hidden, hidden)),
        "ub_hid": b(ks[5], (num_domains, 3, 1, hidden)),
        "uw_out": w(ks[6], (num_domains, hidden, style_dim)),
        "ub_out": b(ks[7], (num_domains, 1, style_dim)),
    }


if __name__ == "__main__":
    key = jax.random.PRNGKey(0)
    kz, ky, kp = jax.random.split(key, 3)

    B, latent_dim, style_dim, num_domains = 2, 16, 64, 2
    z = jax.random.normal(kz, (B, latent_dim), jnp.float32)
    y = jax.random.randint(ky, (B,), 0, num_domains, dtype=jnp.int32)
    params = init_params(kp, latent_dim=latent_dim, style_dim=style_dim,
                         num_domains=num_domains)

    fwd = jax.jit(functools.partial(mapping_network_forward, params))
    s = fwd(z, y)
    jax.block_until_ready(s)

    assert s.shape == (B, style_dim), s.shape
    assert s.dtype == jnp.float32
    ref = mapping_network_reference(params, z, y)
    max_err = float(jnp.max(jnp.abs(s - ref)))
    # bf16 weights + bf16 matmul inputs (f32 accumulation) -> small drift vs f32 ref.
    assert jnp.allclose(s, ref, atol=3e-2, rtol=3e-2), max_err
    print("KERNEL_OK")
</pallas_src>

<mosaic_0001>
module attributes {stable_mosaic.version = 11 : i64} {
  func.func @_mapping_kernel(%arg0: i32, %arg1: memref<8x16xf32, #tpu.memory_space<vmem>>, %arg2: memref<8x1xi32, #tpu.memory_space<vmem>>, %arg3: memref<16x512xbf16, #tpu.memory_space<vmem>>, %arg4: memref<1x512xf32, #tpu.memory_space<vmem>>, %arg5: memref<3x512x512xbf16, #tpu.memory_space<vmem>>, %arg6: memref<3x1x512xf32, #tpu.memory_space<vmem>>, %arg7: memref<2x3x512x512xbf16, #tpu.memory_space<vmem>>, %arg8: memref<2x3x1x512xf32, #tpu.memory_space<vmem>>, %arg9: memref<2x512x128xbf16, #tpu.memory_space<vmem>>, %arg10: memref<2x1x128xf32, #tpu.memory_space<vmem>>, %arg11: memref<8x128xf32, #tpu.memory_space<vmem>>) attributes {dimension_semantics = [#tpu.dimension_semantics<parallel>], iteration_bounds = array<i64: 1>, scalar_prefetch = 0 : i64, scratch_operands = 0 : i64, tpu.core_type = #tpu.core_type<tc>, window_params = [{transform_indices = @transform_0, window_bounds = array<i64: 8, 16>}, {transform_indices = @transform_1, window_bounds = array<i64: 8, 1>}, {pipeline_mode = #tpu.pipeline_mode<synchronous>, transform_indices = @transform_2, window_bounds = array<i64: 16, 512>}, {pipeline_mode = #tpu.pipeline_mode<synchronous>, transform_indices = @transform_3, window_bounds = array<i64: 1, 512>}, {pipeline_mode = #tpu.pipeline_mode<synchronous>, transform_indices = @transform_4, window_bounds = array<i64: 3, 512, 512>}, {pipeline_mode = #tpu.pipeline_mode<synchronous>, transform_indices = @transform_5, window_bounds = array<i64: 3, 1, 512>}, {pipeline_mode = #tpu.pipeline_mode<synchronous>, transform_indices = @transform_6, window_bounds = array<i64: 2, 3, 512, 512>}, {pipeline_mode = #tpu.pipeline_mode<synchronous>, transform_indices = @transform_7, window_bounds = array<i64: 2, 3, 1, 512>}, {pipeline_mode = #tpu.pipeline_mode<synchronous>, transform_indices = @transform_8, window_bounds = array<i64: 2, 512, 128>}, {pipeline_mode = #tpu.pipeline_mode<synchronous>, transform_indices = @transform_9, window_bounds = array<i64: 2, 1, 128>}, {transform_indices = @transform_10, window_bounds = array<i64: 8, 128>}]} {
    %c0 = arith.constant 0 : index
    %c0_0 = arith.constant 0 : index
    %0 = vector.load %arg1[%c0, %c0_0] : memref<8x16xf32, #tpu.memory_space<vmem>>, vector<8x16xf32>
    %1 = arith.truncf %0 : vector<8x16xf32> to vector<8x16xbf16>
    %c0_1 = arith.constant 0 : index
    %c0_2 = arith.constant 0 : index
    %2 = vector.load %arg3[%c0_1, %c0_2] : memref<16x512xbf16, #tpu.memory_space<vmem>>, vector<16x512xbf16>
    %cst = arith.constant dense<0.000000e+00> : vector<8x512xf32>
    %3 = tpu.matmul %1, %2, %cst {dimension_numbers = #tpu.dot_dimension_numbers<[1], [0], [0], [1], [0, 0, 1, 1], [], []>} : vector<8x16xbf16>, vector<16x512xbf16>, vector<8x512xf32> -> vector<8x512xf32>
    %c0_3 = arith.constant 0 : index
    %c0_4 = arith.constant 0 : index
    %4 = vector.load %arg4[%c0_3, %c0_4] : memref<1x512xf32, #tpu.memory_space<vmem>>, vector<1x512xf32>
    %5 = vector.broadcast %4 : vector<1x512xf32> to vector<8x512xf32>
    %6 = arith.addf %3, %5 : vector<8x512xf32>
    %cst_5 = arith.constant 0.000000e+00 : f32
    %7 = vector.broadcast %cst_5 : f32 to vector<8x512xf32>
    %8 = arith.maximumf %6, %7 : vector<8x512xf32>
    %9 = arith.truncf %8 : vector<8x512xf32> to vector<8x512xbf16>
    %c0_6 = arith.constant 0 : index
    %c0_7 = arith.constant 0 : index
    %c0_8 = arith.constant 0 : index
    %10 = vector.load %arg5[%c0_6, %c0_7, %c0_8] : memref<3x512x512xbf16, #tpu.memory_space<vmem>>, vector<1x512x512xbf16>
    %11 = vector.shape_cast %10 : vector<1x512x512xbf16> to vector<512x512xbf16>
    %cst_9 = arith.constant dense<0.000000e+00> : vector<8x512xf32>
    %12 = tpu.matmul %9, %11, %cst_9 {dimension_numbers = #tpu.dot_dimension_numbers<[1], [0], [0], [1], [0, 0, 1, 1], [], []>} : vector<8x512xbf16>, vector<512x512xbf16>, vector<8x512xf32> -> vector<8x512xf32>
    %c0_10 = arith.constant 0 : index
    %c0_11 = arith.constant 0 : index
    %c0_12 = arith.constant 0 : index
    %13 = vector.load %arg6[%c0_10, %c0_11, %c0_12] : memref<3x1x512xf32, #tpu.memory_space<vmem>>, vector<1x1x512xf32>
    %14 = vector.shape_cast %13 : vector<1x1x512xf32> to vector<1x512xf32>
    %15 = vector.broadcast %14 : vector<1x512xf32> to vector<8x512xf32>
    %16 = arith.addf %12, %15 : vector<8x512xf32>
    %cst_13 = arith.constant 0.000000e+00 : f32
    %17 = vector.broadcast %cst_13 : f32 to vector<8x512xf32>
    %18 = arith.maximumf %16, %17 : vector<8x512xf32>
    %19 = arith.truncf %18 : vector<8x512xf32> to vector<8x512xbf16>
    %c1 = arith.constant 1 : index
    %c0_14 = arith.constant 0 : index
    %c0_15 = arith.constant 0 : index
    %20 = vector.load %arg5[%c1, %c0_14, %c0_15] : memref<3x512x512xbf16, #tpu.memory_space<vmem>>, vector<1x512x512xbf16>
    %21 = vector.shape_cast %20 : vector<1x512x512xbf16> to vector<512x512xbf16>
    %cst_16 = arith.constant dense<0.000000e+00> : vector<8x512xf32>
    %22 = tpu.matmul %19, %21, %cst_16 {dimension_numbers = #tpu.dot_dimension_numbers<[1], [0], [0], [1], [0, 0, 1, 1], [], []>} : vector<8x512xbf16>, vector<512x512xbf16>, vector<8x512xf32> -> vector<8x512xf32>
    %c1_17 = arith.constant 1 : index
    %c0_18 = arith.constant 0 : index
    %c0_19 = arith.constant 0 : index
    %23 = vector.load %arg6[%c1_17, %c0_18, %c0_19] : memref<3x1x512xf32, #tpu.memory_space<vmem>>, vector<1x1x512xf32>
    %24 = vector.shape_cast %23 : vector<1x1x512xf32> to vector<1x512xf32>
    %25 = vector.broadcast %24 : vector<1x512xf32> to vector<8x512xf32>
    %26 = arith.addf %22, %25 : vector<8x512xf32>
    %cst_20 = arith.constant 0.000000e+00 : f32
    %27 = vector.broadcast %cst_20 : f32 to vector<8x512xf32>
    %28 = arith.maximumf %26, %27 : vector<8x512xf32>
    %29 = arith.truncf %28 : vector<8x512xf32> to vector<8x512xbf16>
    %c2 = arith.constant 2 : index
    %c0_21 = arith.constant 0 : index
    %c0_22 = arith.constant 0 : index
    %30 = vector.load %arg5[%c2, %c0_21, %c0_22] : memref<3x512x512xbf16, #tpu.memory_space<vmem>>, vector<1x512x512xbf16>
    %31 = vector.shape_cast %30 : vector<1x512x512xbf16> to vector<512x512xbf16>
    %cst_23 = arith.constant dense<0.000000e+00> : vector<8x512xf32>
    %32 = tpu.matmul %29, %31, %cst_23 {dimension_numbers = #tpu.dot_dimension_numbers<[1], [0], [0], [1], [0, 0, 1, 1], [], []>} : vector<8x512xbf16>, vector<512x512xbf16>, vector<8x512xf32> -> vector<8x512xf32>
    %c2_24 = arith.constant 2 : index
    %c0_25 = arith.constant 0 : index
    %c0_26 = arith.constant 0 : index
    %33 = vector.load %arg6[%c2_24, %c0_25, %c0_26] : memref<3x1x512xf32, #tpu.memory_space<vmem>>, vector<1x1x512xf32>
    %34 = vector.shape_cast %33 : vector<1x1x512xf32> to vector<1x512xf32>
    %35 = vector.broadcast %34 : vector<1x512xf32> to vector<8x512xf32>
    %36 = arith.addf %32, %35 : vector<8x512xf32>
    %cst_27 = arith.constant 0.000000e+00 : f32
    %37 = vector.broadcast %cst_27 : f32 to vector<8x512xf32>
    %38 = arith.maximumf %36, %37 : vector<8x512xf32>
    %c0_28 = arith.constant 0 : index
    %c0_29 = arith.constant 0 : index
    %39 = vector.load %arg2[%c0_28, %c0_29] : memref<8x1xi32, #tpu.memory_space<vmem>>, vector<8x1xi32>
    %cst_30 = arith.constant 0.000000e+00 : f32
    %40 = vector.broadcast %cst_30 : f32 to vector<8x128xf32>
    %41 = arith.truncf %38 : vector<8x512xf32> to vector<8x512xbf16>
    %c0_31 = arith.constant 0 : index
    %c0_32 = arith.constant 0 : index
    %c0_33 = arith.constant 0 : index
    %c0_34 = arith.constant 0 : index
    %42 = vector.load %arg7[%c0_31, %c0_32, %c0_33, %c0_34] : memref<2x3x512x512xbf16, #tpu.memory_space<vmem>>, vector<1x1x512x512xbf16>
    %43 = vector.shape_cast %42 : vector<1x1x512x512xbf16> to vector<512x512xbf16>
    %cst_35 = arith.constant dense<0.000000e+00> : vector<8x512xf32>
    %44 = tpu.matmul %41, %43, %cst_35 {dimension_numbers = #tpu.dot_dimension_numbers<[1], [0], [0], [1], [0, 0, 1, 1], [], []>} : vector<8x512xbf16>, vector<512x512xbf16>, vector<8x512xf32> -> vector<8x512xf32>
    %c0_36 = arith.constant 0 : index
    %c0_37 = arith.constant 0 : index
    %c0_38 = arith.constant 0 : index
    %c0_39 = arith.constant 0 : index
    %45 = vector.load %arg8[%c0_36, %c0_37, %c0_38, %c0_39] : memref<2x3x1x512xf32, #tpu.memory_space<vmem>>, vector<1x1x1x512xf32>
    %46 = vector.shape_cast %45 : vector<1x1x1x512xf32> to vector<1x512xf32>
    %47 = vector.broadcast %46 : vector<1x512xf32> to vector<8x512xf32>
    %48 = arith.addf %44, %47 : vector<8x512xf32>
    %cst_40 = arith.constant 0.000000e+00 : f32
    %49 = vector.broadcast %cst_40 : f32 to vector<8x512xf32>
    %50 = arith.maximumf %48, %49 : vector<8x512xf32>
    %51 = arith.truncf %50 : vector<8x512xf32> to vector<8x512xbf16>
    %c0_41 = arith.constant 0 : index
    %c1_42 = arith.constant 1 : index
    %c0_43 = arith.constant 0 : index
    %c0_44 = arith.constant 0 : index
    %52 = vector.load %arg7[%c0_41, %c1_42, %c0_43, %c0_44] : memref<2x3x512x512xbf16, #tpu.memory_space<vmem>>, vector<1x1x512x512xbf16>
    %53 = vector.shape_cast %52 : vector<1x1x512x512xbf16> to vector<512x512xbf16>
    %cst_45 = arith.constant dense<0.000000e+00> : vector<8x512xf32>
    %54 = tpu.matmul %51, %53, %cst_45 {dimension_numbers = #tpu.dot_dimension_numbers<[1], [0], [0], [1], [0, 0, 1, 1], [], []>} : vector<8x512xbf16>, vector<512x512xbf16>, vector<8x512xf32> -> vector<8x512xf32>
    %c0_46 = arith.constant 0 : index
    %c1_47 = arith.constant 1 : index
    %c0_48 = arith.constant 0 : index
    %c0_49 = arith.constant 0 : index
    %55 = vector.load %arg8[%c0_46, %c1_47, %c0_48, %c0_49] : memref<2x3x1x512xf32, #tpu.memory_space<vmem>>, vector<1x1x1x512xf32>
    %56 = vector.shape_cast %55 : vector<1x1x1x512xf32> to vector<1x512xf32>
    %57 = vector.broadcast %56 : vector<1x512xf32> to vector<8x512xf32>
    %58 = arith.addf %54, %57 : vector<8x512xf32>
    %cst_50 = arith.constant 0.000000e+00 : f32
    %59 = vector.broadcast %cst_50 : f32 to vector<8x512xf32>
    %60 = arith.maximumf %58, %59 : vector<8x512xf32>
    %61 = arith.truncf %60 : vector<8x512xf32> to vector<8x512xbf16>
    %c0_51 = arith.constant 0 : index
    %c2_52 = arith.constant 2 : index
    %c0_53 = arith.constant 0 : index
    %c0_54 = arith.constant 0 : index
    %62 = vector.load %arg7[%c0_51, %c2_52, %c0_53, %c0_54] : memref<2x3x512x512xbf16, #tpu.memory_space<vmem>>, vector<1x1x512x512xbf16>
    %63 = vector.shape_cast %62 : vector<1x1x512x512xbf16> to vector<512x512xbf16>
    %cst_55 = arith.constant dense<0.000000e+00> : vector<8x512xf32>
    %64 = tpu.matmul %61, %63, %cst_55 {dimension_numbers = #tpu.dot_dimension_numbers<[1], [0], [0], [1], [0, 0, 1, 1], [], []>} : vector<8x512xbf16>, vector<512x512xbf16>, vector<8x512xf32> -> vector<8x512xf32>
    %c0_56 = arith.constant 0 : index
    %c2_57 = arith.constant 2 : index
    %c0_58 = arith.constant 0 : index
    %c0_59 = arith.constant 0 : index
    %65 = vector.load %arg8[%c0_56, %c2_57, %c0_58, %c0_59] : memref<2x3x1x512xf32, #tpu.memory_space<vmem>>, vector<1x1x1x512xf32>
    %66 = vector.shape_cast %65 : vector<1x1x1x512xf32> to vector<1x512xf32>
    %67 = vector.broadcast %66 : vector<1x512xf32> to vector<8x512xf32>
    %68 = arith.addf %64, %67 : vector<8x512xf32>
    %cst_60 = arith.constant 0.000000e+00 : f32
    %69 = vector.broadcast %cst_60 : f32 to vector<8x512xf32>
    %70 = arith.maximumf %68, %69 : vector<8x512xf32>
    %71 = arith.truncf %70 : vector<8x512xf32> to vector<8x512xbf16>
    %c0_61 = arith.constant 0 : index
    %c0_62 = arith.constant 0 : index
    %c0_63 = arith.constant 0 : index
    %72 = vector.load %arg9[%c0_61, %c0_62, %c0_63] : memref<2x512x128xbf16, #tpu.memory_space<vmem>>, vector<1x512x128xbf16>
    %73 = vector.shape_cast %72 : vector<1x512x128xbf16> to vector<512x128xbf16>
    %cst_64 = arith.constant dense<0.000000e+00> : vector<8x128xf32>
    %74 = tpu.matmul %71, %73, %cst_64 {dimension_numbers = #tpu.dot_dimension_numbers<[1], [0], [0], [1], [0, 0, 1, 1], [], []>} : vector<8x512xbf16>, vector<512x128xbf16>, vector<8x128xf32> -> vector<8x128xf32>
    %c0_65 = arith.constant 0 : index
    %c0_66 = arith.constant 0 : index
    %c0_67 = arith.constant 0 : index
    %75 = vector.load %arg10[%c0_65, %c0_66, %c0_67] : memref<2x1x128xf32, #tpu.memory_space<vmem>>, vector<1x1x128xf32>
    %76 = vector.shape_cast %75 : vector<1x1x128xf32> to vector<1x128xf32>
    %77 = vector.broadcast %76 : vector<1x128xf32> to vector<8x128xf32>
    %78 = arith.addf %74, %77 : vector<8x128xf32>
    %c0_i32 = arith.constant 0 : i32
    %79 = vector.broadcast %c0_i32 : i32 to vector<8x1xi32>
    %80 = arith.cmpi eq, %39, %79 : vector<8x1xi32>
    %81 = vector.shape_cast %80 : vector<8x1xi1> to vector<8x1xi1>
    %82 = vector.broadcast %81 : vector<8x1xi1> to vector<8x128xi1>
    %83 = arith.select %82, %78, %40 : vector<8x128xi1>, vector<8x128xf32>
    %84 = arith.truncf %38 : vector<8x512xf32> to vector<8x512xbf16>
    %c1_68 = arith.constant 1 : index
    %c0_69 = arith.constant 0 : index
    %c0_70 = arith.constant 0 : index
    %c0_71 = arith.constant 0 : index
    %85 = vector.load %arg7[%c1_68, %c0_69, %c0_70, %c0_71] : memref<2x3x512x512xbf16, #tpu.memory_space<vmem>>, vector<1x1x512x512xbf16>
    %86 = vector.shape_cast %85 : vector<1x1x512x512xbf16> to vector<512x512xbf16>
    %cst_72 = arith.constant dense<0.000000e+00> : vector<8x512xf32>
    %87 = tpu.matmul %84, %86, %cst_72 {dimension_numbers = #tpu.dot_dimension_numbers<[1], [0], [0], [1], [0, 0, 1, 1], [], []>} : vector<8x512xbf16>, vector<512x512xbf16>, vector<8x512xf32> -> vector<8x512xf32>
    %c1_73 = arith.constant 1 : index
    %c0_74 = arith.constant 0 : index
    %c0_75 = arith.constant 0 : index
    %c0_76 = arith.constant 0 : index
    %88 = vector.load %arg8[%c1_73, %c0_74, %c0_75, %c0_76] : memref<2x3x1x512xf32, #tpu.memory_space<vmem>>, vector<1x1x1x512xf32>
    %89 = vector.shape_cast %88 : vector<1x1x1x512xf32> to vector<1x512xf32>
    %90 = vector.broadcast %89 : vector<1x512xf32> to vector<8x512xf32>
    %91 = arith.addf %87, %90 : vector<8x512xf32>
    %cst_77 = arith.constant 0.000000e+00 : f32
    %92 = vector.broadcast %cst_77 : f32 to vector<8x512xf32>
    %93 = arith.maximumf %91, %92 : vector<8x512xf32>
    %94 = arith.truncf %93 : vector<8x512xf32> to vector<8x512xbf16>
    %c1_78 = arith.constant 1 : index
    %c1_79 = arith.constant 1 : index
    %c0_80 = arith.constant 0 : index
    %c0_81 = arith.constant 0 : index
    %95 = vector.load %arg7[%c1_78, %c1_79, %c0_80, %c0_81] : memref<2x3x512x512xbf16, #tpu.memory_space<vmem>>, vector<1x1x512x512xbf16>
    %96 = vector.shape_cast %95 : vector<1x1x512x512xbf16> to vector<512x512xbf16>
    %cst_82 = arith.constant dense<0.000000e+00> : vector<8x512xf32>
    %97 = tpu.matmul %94, %96, %cst_82 {dimension_numbers = #tpu.dot_dimension_numbers<[1], [0], [0], [1], [0, 0, 1, 1], [], []>} : vector<8x512xbf16>, vector<512x512xbf16>, vector<8x512xf32> -> vector<8x512xf32>
    %c1_83 = arith.constant 1 : index
    %c1_84 = arith.constant 1 : index
    %c0_85 = arith.constant 0 : index
    %c0_86 = arith.constant 0 : index
    %98 = vector.load %arg8[%c1_83, %c1_84, %c0_85, %c0_86] : memref<2x3x1x512xf32, #tpu.memory_space<vmem>>, vector<1x1x1x512xf32>
    %99 = vector.shape_cast %98 : vector<1x1x1x512xf32> to vector<1x512xf32>
    %100 = vector.broadcast %99 : vector<1x512xf32> to vector<8x512xf32>
    %101 = arith.addf %97, %100 : vector<8x512xf32>
    %cst_87 = arith.constant 0.000000e+00 : f32
    %102 = vector.broadcast %cst_87 : f32 to vector<8x512xf32>
    %103 = arith.maximumf %101, %102 : vector<8x512xf32>
    %104 = arith.truncf %103 : vector<8x512xf32> to vector<8x512xbf16>
    %c1_88 = arith.constant 1 : index
    %c2_89 = arith.constant 2 : index
    %c0_90 = arith.constant 0 : index
    %c0_91 = arith.constant 0 : index
    %105 = vector.load %arg7[%c1_88, %c2_89, %c0_90, %c0_91] : memref<2x3x512x512xbf16, #tpu.memory_space<vmem>>, vector<1x1x512x512xbf16>
    %106 = vector.shape_cast %105 : vector<1x1x512x512xbf16> to vector<512x512xbf16>
    %cst_92 = arith.constant dense<0.000000e+00> : vector<8x512xf32>
    %107 = tpu.matmul %104, %106, %cst_92 {dimension_numbers = #tpu.dot_dimension_numbers<[1], [0], [0], [1], [0, 0, 1, 1], [], []>} : vector<8x512xbf16>, vector<512x512xbf16>, vector<8x512xf32> -> vector<8x512xf32>
    %c1_93 = arith.constant 1 : index
    %c2_94 = arith.constant 2 : index
    %c0_95 = arith.constant 0 : index
    %c0_96 = arith.constant 0 : index
    %108 = vector.load %arg8[%c1_93, %c2_94, %c0_95, %c0_96] : memref<2x3x1x512xf32, #tpu.memory_space<vmem>>, vector<1x1x1x512xf32>
    %109 = vector.shape_cast %108 : vector<1x1x1x512xf32> to vector<1x512xf32>
    %110 = vector.broadcast %109 : vector<1x512xf32> to vector<8x512xf32>
    %111 = arith.addf %107, %110 : vector<8x512xf32>
    %cst_97 = arith.constant 0.000000e+00 : f32
    %112 = vector.broadcast %cst_97 : f32 to vector<8x512xf32>
    %113 = arith.maximumf %111, %112 : vector<8x512xf32>
    %114 = arith.truncf %113 : vector<8x512xf32> to vector<8x512xbf16>
    %c1_98 = arith.constant 1 : index
    %c0_99 = arith.constant 0 : index
    %c0_100 = arith.constant 0 : index
    %115 = vector.load %arg9[%c1_98, %c0_99, %c0_100] : memref<2x512x128xbf16, #tpu.memory_space<vmem>>, vector<1x512x128xbf16>
    %116 = vector.shape_cast %115 : vector<1x512x128xbf16> to vector<512x128xbf16>
    %cst_101 = arith.constant dense<0.000000e+00> : vector<8x128xf32>
    %117 = tpu.matmul %114, %116, %cst_101 {dimension_numbers = #tpu.dot_dimension_numbers<[1], [0], [0], [1], [0, 0, 1, 1], [], []>} : vector<8x512xbf16>, vector<512x128xbf16>, vector<8x128xf32> -> vector<8x128xf32>
    %c1_102 = arith.constant 1 : index
    %c0_103 = arith.constant 0 : index
    %c0_104 = arith.constant 0 : index
    %118 = vector.load %arg10[%c1_102, %c0_103, %c0_104] : memref<2x1x128xf32, #tpu.memory_space<vmem>>, vector<1x1x128xf32>
    %119 = vector.shape_cast %118 : vector<1x1x128xf32> to vector<1x128xf32>
    %120 = vector.broadcast %119 : vector<1x128xf32> to vector<8x128xf32>
    %121 = arith.addf %117, %120 : vector<8x128xf32>
    %c1_i32 = arith.constant 1 : i32
    %122 = vector.broadcast %c1_i32 : i32 to vector<8x1xi32>
    %123 = arith.cmpi eq, %39, %122 : vector<8x1xi32>
    %124 = vector.shape_cast %123 : vector<8x1xi1> to vector<8x1xi1>
    %125 = vector.broadcast %124 : vector<8x1xi1> to vector<8x128xi1>
    %126 = arith.select %125, %121, %83 : vector<8x128xi1>, vector<8x128xf32>
    %c0_105 = arith.constant 0 : index
    %c0_106 = arith.constant 0 : index
    %127 = vector.load %arg11[%c0_105, %c0_106] : memref<8x128xf32, #tpu.memory_space<vmem>>, vector<8x128xf32>
    tpu.vector_store %arg11[%c0_105, %c0_106], %126 {strides = array<i32>} : memref<8x128xf32, #tpu.memory_space<vmem>>, vector<8x128xf32>,
    return
  }
  func.func @transform_0(%arg0: i32) -> (i32, i32) {
    %c0_i32 = arith.constant 0 : i32
    %c0_i32_0 = arith.constant 0 : i32
    return %arg0, %c0_i32 : i32, i32
  }
  func.func @transform_1(%arg0: i32) -> (i32, i32) {
    %c0_i32 = arith.constant 0 : i32
    %c0_i32_0 = arith.constant 0 : i32
    return %arg0, %c0_i32 : i32, i32
  }
  func.func @transform_2(%arg0: i32) -> (i32, i32) {
    %c0_i32 = arith.constant 0 : i32
    %c0_i32_0 = arith.constant 0 : i32
    %c0_i32_1 = arith.constant 0 : i32
    return %c0_i32, %c0_i32_0 : i32, i32
  }
  func.func @transform_3(%arg0: i32) -> (i32, i32) {
    %c0_i32 = arith.constant 0 : i32
    %c0_i32_0 = arith.constant 0 : i32
    %c0_i32_1 = arith.constant 0 : i32
    return %c0_i32, %c0_i32_0 : i32, i32
  }
  func.func @transform_4(%arg0: i32) -> (i32, i32, i32) {
    %c0_i32 = arith.constant 0 : i32
    %c0_i32_0 = arith.constant 0 : i32
    %c0_i32_1 = arith.constant 0 : i32
    %c0_i32_2 = arith.constant 0 : i32
    return %c0_i32, %c0_i32_0, %c0_i32_1 : i32, i32, i32
  }
  func.func @transform_5(%arg0: i32) -> (i32, i32, i32) {
    %c0_i32 = arith.constant 0 : i32
    %c0_i32_0 = arith.constant 0 : i32
    %c0_i32_1 = arith.constant 0 : i32
    %c0_i32_2 = arith.constant 0 : i32
    return %c0_i32, %c0_i32_0, %c0_i32_1 : i32, i32, i32
  }
  func.func @transform_6(%arg0: i32) -> (i32, i32, i32, i32) {
    %c0_i32 = arith.constant 0 : i32
    %c0_i32_0 = arith.constant 0 : i32
    %c0_i32_1 = arith.constant 0 : i32
    %c0_i32_2 = arith.constant 0 : i32
    %c0_i32_3 = arith.constant 0 : i32
    return %c0_i32, %c0_i32_0, %c0_i32_1, %c0_i32_2 : i32, i32, i32, i32
  }
  func.func @transform_7(%arg0: i32) -> (i32, i32, i32, i32) {
    %c0_i32 = arith.constant 0 : i32
    %c0_i32_0 = arith.constant 0 : i32
    %c0_i32_1 = arith.constant 0 : i32
    %c0_i32_2 = arith.constant 0 : i32
    %c0_i32_3 = arith.constant 0 : i32
    return %c0_i32, %c0_i32_0, %c0_i32_1, %c0_i32_2 : i32, i32, i32, i32
  }
  func.func @transform_8(%arg0: i32) -> (i32, i32, i32) {
    %c0_i32 = arith.constant 0 : i32
    %c0_i32_0 = arith.constant 0 : i32
    %c0_i32_1 = arith.constant 0 : i32
    %c0_i32_2 = arith.constant 0 : i32
    return %c0_i32, %c0_i32_0, %c0_i32_1 : i32, i32, i32
  }
  func.func @transform_9(%arg0: i32) -> (i32, i32, i32) {
    %c0_i32 = arith.constant 0 : i32
    %c0_i32_0 = arith.constant 0 : i32
    %c0_i32_1 = arith.constant 0 : i32
    %c0_i32_2 = arith.constant 0 : i32
    return %c0_i32, %c0_i32_0, %c0_i32_1 : i32, i32, i32
  }
  func.func @transform_10(%arg0: i32) -> (i32, i32) {
    %c0_i32 = arith.constant 0 : i32
    %c0_i32_0 = arith.constant 0 : i32
    return %arg0, %c0_i32 : i32, i32
  }
}

</mosaic_0001>

<bundles_post_ra>
// kernel: mapping_network_forward.1
= control target key start
LH: loop header
LB: loop body
LE: loop exit
PB: predicated region body
PF: predicated region fallthrough
CT: control target
= control target key end

     0   :  { %15 = vsyncpa [#allocation3], 0  ;;  %s13314_s0 = inlined_call_operand.vmem [shape: f32[8,16], index: 0, kind: input, shape index: {}]   ;;  %s13315_s1 = inlined_call_operand.vmem [shape: s32[8,1], index: 1, kind: input, shape index: {}]   ;;  %s13316_s2 = inlined_call_operand.hbm [shape: bf16[16,512], index: 2, kind: input, shape index: {}]   ;;  %s13317_s3 = inlined_call_operand.hbm [shape: f32[1,512], index: 3, kind: input, shape index: {}]   ;;  %s13318_s4 = inlined_call_operand.hbm [shape: bf16[3,512,512], index: 4, kind: input, shape index: {}]   ;;  %s13319_s5 = inlined_call_operand.hbm [shape: f32[3,1,512], index: 5, kind: input, shape index: {}]   ;;  %s13320_s6 = inlined_call_operand.hbm [shape: bf16[2,3,512,512], index: 6, kind: input, shape index: {}]   ;;  %s13321_s7 = inlined_call_operand.hbm [shape: f32[2,3,1,512], index: 7, kind: input, shape index: {}]   ;;  %s13322_s8 = inlined_call_operand.hbm [shape: bf16[2,512,128], index: 8, kind: input, shape index: {}]   ;;  %s13323_s9 = inlined_call_operand.hbm [shape: f32[2,1,128], index: 9, kind: input, shape index: {}]   ;;  %s13324_s10 = inlined_call_operand.vmem [shape: f32[8,128], index: 10, kind: output, shape index: {}]  }
   0x1   :  { %16 = vsyncpa [#allocation5], 0 }
   0x2   :  { %17 = vsyncpa [#allocation8], 0 }
   0x3   :  { %18 = vsyncpa [#allocation11], 0 }
   0x4   :  { %19 = vsyncpa [#allocation14], 0  ;;  %s12966_s13 = smov [#allocation4]   ;;  %s12967_s15 = smov [#allocation7]  }
   0x5   :  { %s42_s14 = sshll.u32 %s12966_s13, 4  ;;  %s63_s16 = sshll.u32 %s12967_s15, 4  ;;  %s43_s14 = int_to_ptr.vmem [resolvable:$true] %s42_s14  ;;  %s64_s16 = int_to_ptr.vmem [resolvable:$true] %s63_s16 }
   0x6   :  { %s12804_s17 = scalar_lea.vmem %s43_s14, 64  ;;  %p12809_p1 = scmp.lt.s32.totalorder %s43_s14, %s43_s14 }
   0x7   :  { %p12805_p0 = scmp.ne.s32.totalorder %s43_s14, %s12804_s17  ;;  %p12810_p2 = scmp.lt.s32.totalorder %s12804_s17, %s12804_s17 }
   0x9   :  { %p12811_p3 = por %p12810_p2, %p12809_p1 }
   0xb   :  { %p12812_p4 = pnand %p12811_p3, %p12805_p0 }
   0xd   :  { %12815 = shalt.err (!%p12812_p4)
}
   0xe   :  { %45 = dma.hbm_to_vmem [thread:$0]  %s13317_s3, 64, %s43_s14, [#allocation5]  }
   0xf   :  { %s12824_s20 = scalar_lea.vmem %s64_s16, 192  ;;  %p12829_p6 = scmp.lt.s32.totalorder %s64_s16, %s64_s16 }
  0x10   :  { %p12825_p5 = scmp.ne.s32.totalorder %s64_s16, %s12824_s20  ;;  %p12830_p7 = scmp.lt.s32.totalorder %s12824_s20, %s12824_s20 }
  0x12   :  { %p12831_p8 = por %p12830_p7, %p12829_p6 }
  0x14   :  { %p12832_p9 = pnand %p12831_p8, %p12825_p5 }
  0x16   :  { %12835 = shalt.err (!%p12832_p9)
}
  0x17   :  { %s12968_s21 = smov 64   ;;  %s12969_s22 = smov 4  }
  0x18   :  { %69 = dma.hbm_to_vmem [thread:$0]  %s13319_s5, 192, %s64_s16, [#allocation8], %s12968_s21, %s12968_s21, %s12969_s22  }
  0x19   :  { %s12970_s25 = smov [#allocation10]   ;;  %s12971_s27 = smov [#allocation2]  }
  0x1a   :  { %s87_s26 = sshll.u32 %s12970_s25, 4  ;;  %s29_s3 = sshll.u32 %s12971_s27, 4  ;;  %s88_s26 = int_to_ptr.vmem [resolvable:$true] %s87_s26  ;;  %s30_s3 = int_to_ptr.vmem [resolvable:$true] %s29_s3 }
  0x1b   :  { %s12844_s28 = scalar_lea.vmem %s88_s26, 384  ;;  %p12849_p11 = scmp.lt.s32.totalorder %s88_s26, %s88_s26 }
  0x1c   :  { %p12845_p10 = scmp.ne.s32.totalorder %s88_s26, %s12844_s28  ;;  %p12850_p12 = scmp.lt.s32.totalorder %s12844_s28, %s12844_s28 }
  0x1e   :  { %p12851_p13 = por %p12850_p12, %p12849_p11 }
  0x20   :  { %p12852_p0 = pnand %p12851_p13, %p12845_p10 }
  0x22   :  { %12855 = shalt.err (!%p12852_p0)
}
  0x23   :  { %93 = dma.hbm_to_vmem [thread:$0]  %s13321_s7, 384, %s88_s26, [#allocation11], %s12968_s21, %s12968_s21, %s12969_s22  }
  0x24   :  { %s12864_s5 = scalar_lea.vmem %s30_s3, 512  ;;  %p12869_p2 = scmp.lt.s32.totalorder %s30_s3, %s30_s3 }
  0x25   :  { %p12865_p1 = scmp.ne.s32.totalorder %s30_s3, %s12864_s5  ;;  %p12870_p3 = scmp.lt.s32.totalorder %s12864_s5, %s12864_s5 }
  0x27   :  { %p12871_p4 = por %p12870_p3, %p12869_p2 }
  0x29   :  { %p12872_p5 = pnand %p12871_p4, %p12865_p1 }
  0x2b   :  { %12875 = shalt.err (!%p12872_p5)
}
  0x2c   :  { %s12972_s11 = smov 256   ;;  %s12973_s12 = smov 16  }
  0x2d   :  { %35 = dma.hbm_to_vmem [thread:$0]  %s13316_s2, 512, %s30_s3, [#allocation3], %s12972_s11, %s12972_s11, %s12973_s12  }
  0x2e   :  { %s12974_s15 = smov [#allocation6]   ;;  %s12975_s17 = smov [#allocation9]  }
  0x2f   :  { %s51_s16 = sshll.u32 %s12974_s15, 4  ;;  %s75_s18 = sshll.u32 %s12975_s17, 4  ;;  %s52_s16 = int_to_ptr.vmem [resolvable:$true] %s51_s16  ;;  %s76_s18 = int_to_ptr.vmem [resolvable:$true] %s75_s18 }
  0x30   :  { %s12884_s7 = scalar_lea.vmem %s52_s16, 49152  ;;  %p12889_p7 = scmp.lt.s32.totalorder %s52_s16, %s52_s16 }
  0x31   :  { %p12885_p6 = scmp.ne.s32.totalorder %s52_s16, %s12884_s7  ;;  %p12890_p8 = scmp.lt.s32.totalorder %s12884_s7, %s12884_s7 }
  0x33   :  { %p12891_p9 = por %p12890_p8, %p12889_p7 }
  0x35   :  { %p12892_p10 = pnand %p12891_p9, %p12885_p6 }
  0x37   :  { %12895 = shalt.err (!%p12892_p10)
}
  0x38   :  { %57 = dma.hbm_to_vmem [thread:$0]  %s13318_s4, 49152, %s52_s16, [#allocation5], %s12972_s11, %s12972_s11, %s12973_s12  }
  0x39   :  { %s12904_s23 = scalar_lea.vmem %s76_s18, 98304  ;;  %p12909_p12 = scmp.lt.s32.totalorder %s76_s18, %s76_s18 }
  0x3a   :  { %p12905_p11 = scmp.ne.s32.totalorder %s76_s18, %s12904_s23  ;;  %p12910_p13 = scmp.lt.s32.totalorder %s12904_s23, %s12904_s23 }
  0x3c   :  { %p12911_p0 = por %p12910_p13, %p12909_p12 }
  0x3e   :  { %p12912_p1 = pnand %p12911_p0, %p12905_p11 }
  0x40   :  { %12915 = shalt.err (!%p12912_p1)
}
  0x41   :  { %81 = dma.hbm_to_vmem [thread:$0]  %s13320_s6, 98304, %s76_s18, [#allocation8], %s12972_s11, %s12972_s11, %s12973_s12  }
  0x42   :  { %s12976_s25 = smov [#allocation12]   ;;  %s12977_s27 = smov [#allocation13]  }
  0x43   :  { %s99_s26 = sshll.u32 %s12976_s25, 4  ;;  %s111_s3 = sshll.u32 %s12977_s27, 4  ;;  %s100_s26 = int_to_ptr.vmem [resolvable:$true] %s99_s26  ;;  %s112_s3 = int_to_ptr.vmem [resolvable:$true] %s111_s3 }
  0x44   :  { %s12924_s28 = scalar_lea.vmem %s100_s26, 8192  ;;  %p12929_p3 = scmp.lt.s32.totalorder %s100_s26, %s100_s26 }
  0x45   :  { %p12925_p2 = scmp.ne.s32.totalorder %s100_s26, %s12924_s28  ;;  %p12930_p4 = scmp.lt.s32.totalorder %s12924_s28, %s12924_s28 }
  0x47   :  { %p12931_p5 = por %p12930_p4, %p12929_p3 }
  0x49   :  { %p12932_p6 = pnand %p12931_p5, %p12925_p2 }
  0x4b   :  { %12935 = shalt.err (!%p12932_p6)
}
  0x4c   :  { %105 = dma.hbm_to_vmem [thread:$0]  %s13322_s8, 8192, %s100_s26, [#allocation11], %s12968_s21, %s12968_s21, %s12969_s22  }
  0x4d   :  { %s12944_s6 = scalar_lea.vmem %s112_s3, 32  ;;  %p12949_p8 = scmp.lt.s32.totalorder %s112_s3, %s112_s3 }
  0x4e   :  { %p12945_p7 = scmp.ne.s32.totalorder %s112_s3, %s12944_s6  ;;  %p12950_p9 = scmp.lt.s32.totalorder %s12944_s6, %s12944_s6 }
  0x50   :  { %p12951_p10 = por %p12950_p9, %p12949_p8 }
  0x52   :  { %p12952_p11 = pnand %p12951_p10, %p12945_p7 }
  0x54   :  { %12955 = shalt.err (!%p12952_p11)
}
  0x55   :  { %s12978_s30 = smov 1  }
  0x56   :  { %117 = dma.hbm_to_vmem [thread:$0]  %s13323_s9, 32, %s112_s3, [#allocation14], %s12973_s12, %s12973_s12, %s12978_s30  }
  0x57   :  { %12956 = dma.done.wait [#allocation3], 512  }
  0x58   :  { %12957 = vsyncadd [#allocation3], 4294966784 }
  0x59   :  { %12958 = dma.done.wait [#allocation5], 49216  }
  0x5a   :  { %12959 = vsyncadd [#allocation5], 4294918080 }
  0x5b   :  { %12960 = dma.done.wait [#allocation8], 98496  }
  0x5c   :  { %12961 = vsyncadd [#allocation8], 4294868800 }
  0x5d   :  { %12962 = dma.done.wait [#allocation11], 8576  }
  0x5e   :  { %12963 = vsyncadd [#allocation11], 4294958720 }
  0x5f   :  { %12964 = dma.done.wait [#allocation14], 32  }
  0x60   :  { %12965 = vsyncadd [#allocation14], 4294967264  ;;  %v12979_v0 = vmov 0   ;;  %v10997_v1 = vld [vmem:[#allocation2 + $0x4] ss:$16 sps:$4 sm:$0xff]   ;;  %vm191_vm0 = vcmask 130048  }
  0x61   :  { %227 = vmatprep.mubr.bf16.mxu0 %v12979_v0  ;;  %268 = vmatprep.mubr.bf16.mxu1 %v12979_v0  ;;  %v10999_v2 = vld [vmem:[#allocation2 + $0xc] ss:$16 sps:$4 sm:$0xff]   ;;  %v11001_v3 = vld [vmem:[#allocation2] ss:$16 sps:$4 sm:$0xff]   ;;  %v11002_v4 = vld [vmem:[#allocation2 + $0x8] ss:$16 sps:$4 sm:$0xff]  }
  0x62   :  { %10996 = vset.pattern.permute.xlu0 %v12979_v0  ;;  %209 = vmatprep.subr.bf16.mxu0 %v10997_v1  ;;  %v143_v5 = vld [vmem:[%s13314_s0] sm:$0xff]  ;;  %v11005_v8 = vld [vmem:[#allocation6 + $0xe4] ss:$16 sps:$4 sm:$0xff]  }
  0x63   :  { %250 = vmatprep.subr.bf16.mxu1 %v10999_v2  ;;  %v144_v6 = vpack.c.bf16 %v143_v5, %v143_v5  ;;  %v11003_v7 = vld [vmem:[#allocation6 + $0xe0] ss:$16 sps:$4 sm:$0xff]   ;;  %210 = vmatpush1.bf16.msra.mxu0 %v11001_v3  ;;  %v11008_v10 = vld [vmem:[#allocation6 + $0x2e4] ss:$16 sps:$4 sm:$0xff]  }
  0x64   :  { %251 = vmatpush1.bf16.msra.mxu1 %v11002_v4  ;;  %v11006_v9 = vld [vmem:[#allocation6 + $0x2e0] ss:$16 sps:$4 sm:$0xff]   ;;  %1075 = vmatprep.subr.bf16.mxu0 %v11005_v8  ;;  %v11011_v11 = vld [vmem:[#allocation6 + $0xc4] ss:$16 sps:$4 sm:$0xff]   ;;  %v11101_v8 = vld [vmem:[#allocation6 + $0xec] ss:$16 sps:$4 sm:$0xff]  }
  0x65   :  { %v11009_v12 = vld [vmem:[#allocation6 + $0xc0] ss:$16 sps:$4 sm:$0xff]   ;;  %1116 = vmatprep.subr.bf16.mxu1 %v11008_v10  ;;  %v11014_v13 = vld [vmem:[#allocation6 + $0x2c4] ss:$16 sps:$4 sm:$0xff]   ;;  %v151_v10 = vlaneseq }
  0x66   :  { %9674 = vmatmul.mubr.msk.bf16.vlgmr.msra.gmra.mxu0 %vm191_vm0, %v144_v6  ;;  %v11012_v14 = vld [vmem:[#allocation6 + $0x2c0] ss:$16 sps:$4 sm:$0xff]   ;;  %v11017_v15 = vld [vmem:[#allocation6 + $0xa4] ss:$16 sps:$4 sm:$0xff]  }
  0x67   :  { %9675 = vmatmul.mubr.msk.bf16.vlgmr.msra.gmra.mxu1 %vm191_vm0, %v144_v6  ;;  %1076 = vmatpush1.bf16.msra.mxu0 %v11003_v7  ;;  %v11020_v16 = vld [vmem:[#allocation6 + $0x2a4] ss:$16 sps:$4 sm:$0xff]   ;;  %v11015_v17 = vld [vmem:[#allocation6 + $0xa0] ss:$16 sps:$4 sm:$0xff]  }
  0x68   :  { %1117 = vmatpush1.bf16.msra.mxu1 %v11006_v9  ;;  %1077 = vmatprep.subr.bf16.mxu0 %v11011_v11  ;;  %v11018_v18 = vld [vmem:[#allocation6 + $0x2a0] ss:$16 sps:$4 sm:$0xff]   ;;  %v11023_v19 = vld [vmem:[#allocation6 + $0x84] ss:$16 sps:$4 sm:$0xff]   ;;  %v11104_v9 = vld [vmem:[#allocation6 + $0x2ec] ss:$16 sps:$4 sm:$0xff]  }
  0x69   :  { %1118 = vmatprep.subr.bf16.mxu1 %v11014_v13  ;;  %v11026_v20 = vld [vmem:[#allocation6 + $0x284] ss:$16 sps:$4 sm:$0xff]   ;;  %v11021_v21 = vld [vmem:[#allocation6 + $0x80] ss:$16 sps:$4 sm:$0xff]   ;;  %v152_v11 = vshrl.u32 %v151_v10, 7 }
  0x6a   :  { %v11024_v22 = vld [vmem:[#allocation6 + $0x280] ss:$16 sps:$4 sm:$0xff]   ;;  %v11029_v23 = vld [vmem:[#allocation6 + $0x64] ss:$16 sps:$4 sm:$0xff]   ;;  %v11147_v10 = vld [vmem:[#allocation6 + $0x1e8] ss:$16 sps:$4 sm:$0xff]  }
  0x6b   :  { %1078 = vmatpush1.bf16.msra.mxu0 %v11009_v12  ;;  %v11032_v24 = vld [vmem:[#allocation6 + $0x264] ss:$16 sps:$4 sm:$0xff]   ;;  %v11027_v25 = vld [vmem:[#allocation6 + $0x60] ss:$16 sps:$4 sm:$0xff]   ;;  %v149_v12 = vld [vmem:[#allocation4] sm:$0xf] }
  0x6c   :  { %1119 = vmatpush1.bf16.msra.mxu1 %v11012_v14  ;;  %1079 = vmatprep.subr.bf16.mxu0 %v11017_v15  ;;  %v11030_v26 = vld [vmem:[#allocation6 + $0x260] ss:$16 sps:$4 sm:$0xff]   ;;  %v11035_v27 = vld [vmem:[#allocation6 + $0x44] ss:$16 sps:$4 sm:$0xff]   ;;  %v13079_v13 = vsub.s32 0, %v152_v11  ;;  %v13081_v14 = vsub.s32 2, %v152_v11 }
  0x6d   :  { %1120 = vmatprep.subr.bf16.mxu1 %v11020_v16  ;;  %v11038_v28 = vld [vmem:[#allocation6 + $0x244] ss:$16 sps:$4 sm:$0xff]   ;;  %v11033_v29 = vld [vmem:[#allocation6 + $0x40] ss:$16 sps:$4 sm:$0xff]   ;;  %v13083_v15 = vsub.s32 1, %v152_v11  ;;  %v13085_v16 = vsub.s32 3, %v152_v11 }
  0x6e   :  { %v11036_v30 = vld [vmem:[#allocation6 + $0x240] ss:$16 sps:$4 sm:$0xff]   ;;  %v11041_v31 = vld [vmem:[#allocation6 + $0x24] ss:$16 sps:$4 sm:$0xff]   ;;  %v11150_v11 = vld [vmem:[#allocation6 + $0x3e8] ss:$16 sps:$4 sm:$0xff]  }
  0x6f   :  { %1080 = vmatpush1.bf16.msra.mxu0 %v11015_v17  ;;  %v11044_v32 = vld [vmem:[#allocation6 + $0x224] ss:$16 sps:$4 sm:$0xff]   ;;  %v11039_v33 = vld [vmem:[#allocation6 + $0x20] ss:$16 sps:$4 sm:$0xff]   ;;  %v154_v17 = vrot.slane %v149_v12, %v13079_v13 }
  0x70   :  { %1121 = vmatpush1.bf16.msra.mxu1 %v11018_v18  ;;  %1081 = vmatprep.subr.bf16.mxu0 %v11023_v19  ;;  %v11042_v34 = vld [vmem:[#allocation6 + $0x220] ss:$16 sps:$4 sm:$0xff]   ;;  %v11047_v35 = vld [vmem:[#allocation6 + $0x4] ss:$16 sps:$4 sm:$0xff]   ;;  %v162_v18 = vrot.slane %v149_v12, %v13081_v14  ;;  %v158_v19 = vrot.slane %v149_v12, %v13083_v15 }
  0x71   :  { %1122 = vmatprep.subr.bf16.mxu1 %v11026_v20  ;;  %v11050_v36 = vld [vmem:[#allocation6 + $0x204] ss:$16 sps:$4 sm:$0xff]   ;;  %v11045_v37 = vld [vmem:[#allocation6] ss:$16 sps:$4 sm:$0xff]   ;;  %v166_v20 = vrot.slane %v149_v12, %v13085_v16  ;;  %v11155_v12 = vld [vmem:[#allocation6 + $0x1cc] ss:$16 sps:$4 sm:$0xff]  }
  0x72   :  { %v11048_v38 = vld [vmem:[#allocation6 + $0x200] ss:$16 sps:$4 sm:$0xff]   ;;  %v11053_v39 = vld [vmem:[#allocation6 + $0x1e4] ss:$16 sps:$4 sm:$0xff]  }
  0x73   :  { %1082 = vmatpush1.bf16.msra.mxu0 %v11021_v21  ;;  %v11056_v40 = vld [vmem:[#allocation6 + $0x3e4] ss:$16 sps:$4 sm:$0xff]   ;;  %v11051_v41 = vld [vmem:[#allocation6 + $0x1e0] ss:$16 sps:$4 sm:$0xff]  }
  0x74   :  { %1123 = vmatpush1.bf16.msra.mxu1 %v11024_v22  ;;  %1083 = vmatprep.subr.bf16.mxu0 %v11029_v23  ;;  %v11054_v42 = vld [vmem:[#allocation6 + $0x3e0] ss:$16 sps:$4 sm:$0xff]   ;;  %v11059_v43 = vld [vmem:[#allocation6 + $0x1c4] ss:$16 sps:$4 sm:$0xff]  }
  0x75   :  { %1124 = vmatprep.subr.bf16.mxu1 %v11032_v24  ;;  %v11057_v44 = vld [vmem:[#allocation6 + $0x1c0] ss:$16 sps:$4 sm:$0xff]   ;;  %v11062_v45 = vld [vmem:[#allocation6 + $0x3c4] ss:$16 sps:$4 sm:$0xff]  }
  0x76   :  { %v11060_v46 = vld [vmem:[#allocation6 + $0x3c0] ss:$16 sps:$4 sm:$0xff]   ;;  %v11065_v47 = vld [vmem:[#allocation6 + $0x1a4] ss:$16 sps:$4 sm:$0xff]  }
  0x77   :  { %1084 = vmatpush1.bf16.msra.mxu0 %v11027_v25  ;;  %v11068_v48 = vld [vmem:[#allocation6 + $0x3a4] ss:$16 sps:$4 sm:$0xff]   ;;  %v11063_v49 = vld [vmem:[#allocation6 + $0x1a0] ss:$16 sps:$4 sm:$0xff]  }
  0x78   :  { %1125 = vmatpush1.bf16.msra.mxu1 %v11030_v26  ;;  %1085 = vmatprep.subr.bf16.mxu0 %v11035_v27  ;;  %v11066_v50 = vld [vmem:[#allocation6 + $0x3a0] ss:$16 sps:$4 sm:$0xff]   ;;  %v11071_v51 = vld [vmem:[#allocation6 + $0x184] ss:$16 sps:$4 sm:$0xff]  }
  0x79   :  { %1126 = vmatprep.subr.bf16.mxu1 %v11038_v28  ;;  %v11074_v52 = vld [vmem:[#allocation6 + $0x384] ss:$16 sps:$4 sm:$0xff]   ;;  %v11069_v53 = vld [vmem:[#allocation6 + $0x180] ss:$16 sps:$4 sm:$0xff]  }
  0x7a   :  { %v11072_v54 = vld [vmem:[#allocation6 + $0x380] ss:$16 sps:$4 sm:$0xff]   ;;  %v11077_v55 = vld [vmem:[#allocation6 + $0x164] ss:$16 sps:$4 sm:$0xff]  }
  0x7b   :  { %1086 = vmatpush1.bf16.msra.mxu0 %v11033_v29  ;;  %v11080_v56 = vld [vmem:[#allocation6 + $0x364] ss:$16 sps:$4 sm:$0xff]   ;;  %v11075_v57 = vld [vmem:[#allocation6 + $0x160] ss:$16 sps:$4 sm:$0xff]  }
  0x7c   :  { %1127 = vmatpush1.bf16.msra.mxu1 %v11036_v30  ;;  %1087 = vmatprep.subr.bf16.mxu0 %v11041_v31  ;;  %v11078_v58 = vld [vmem:[#allocation6 + $0x360] ss:$16 sps:$4 sm:$0xff]   ;;  %v11083_v59 = vld [vmem:[#allocation6 + $0x144] ss:$16 sps:$4 sm:$0xff]  }
  0x7d   :  { %1128 = vmatprep.subr.bf16.mxu1 %v11044_v32  ;;  %v11086_v60 = vld [vmem:[#allocation6 + $0x344] ss:$16 sps:$4 sm:$0xff]   ;;  %v11081_v61 = vld [vmem:[#allocation6 + $0x140] ss:$16 sps:$4 sm:$0xff]  }
  0x7e   :  { %v11084_v62 = vld [vmem:[#allocation6 + $0x340] ss:$16 sps:$4 sm:$0xff]   ;;  %v11089_v63 = vld [vmem:[#allocation6 + $0x124] ss:$16 sps:$4 sm:$0xff]  }
  0x7f   :  { %1088 = vmatpush1.bf16.msra.mxu0 %v11039_v33  ;;  %v11092_v1 = vld [vmem:[#allocation6 + $0x324] ss:$16 sps:$4 sm:$0xff]   ;;  %v11087_v2 = vld [vmem:[#allocation6 + $0x120] ss:$16 sps:$4 sm:$0xff]  }
  0x80   :  { %1129 = vmatpush1.bf16.msra.mxu1 %v11042_v34  ;;  %1089 = vmatprep.subr.bf16.mxu0 %v11047_v35  ;;  %v11090_v3 = vld [vmem:[#allocation6 + $0x320] ss:$16 sps:$4 sm:$0xff]   ;;  %v11095_v4 = vld [vmem:[#allocation6 + $0x104] ss:$16 sps:$4 sm:$0xff]   ;;  %v11099_v35 = vld [vmem:[#allocation6 + $0xe8] ss:$16 sps:$4 sm:$0xff]  }
  0x81   :  { %1130 = vmatprep.subr.bf16.mxu1 %v11050_v36  ;;  %v11098_v5 = vld [vmem:[#allocation6 + $0x304] ss:$16 sps:$4 sm:$0xff]   ;;  %v11093_v6 = vld [vmem:[#allocation6 + $0x100] ss:$16 sps:$4 sm:$0xff]   ;;  %v11102_v36 = vld [vmem:[#allocation6 + $0x2e8] ss:$16 sps:$4 sm:$0xff]  }
  0x82   :  { %v11096_v7 = vld [vmem:[#allocation6 + $0x300] ss:$16 sps:$4 sm:$0xff]  }
  0x83   :  { %1090 = vmatpush1.bf16.msra.mxu0 %v11045_v37 }
  0x84   :  { %1131 = vmatpush1.bf16.msra.mxu1 %v11048_v38  ;;  %1091 = vmatprep.subr.bf16.mxu0 %v11053_v39 }
  0x85   :  { %1132 = vmatprep.subr.bf16.mxu1 %v11056_v40 }
  0x87   :  { %1092 = vmatpush2.bf16.msra.mxu0 %v11051_v41 }
  0x88   :  { %1133 = vmatpush2.bf16.msra.mxu1 %v11054_v42  ;;  %1093 = vmatprep.subr.bf16.mxu0 %v11059_v43  ;;  %v11107_v42 = vld [vmem:[#allocation6 + $0xcc] ss:$16 sps:$4 sm:$0xff]  }
  0x89   :  { %1134 = vmatprep.subr.bf16.mxu1 %v11062_v45  ;;  %v11110_v43 = vld [vmem:[#allocation6 + $0x2cc] ss:$16 sps:$4 sm:$0xff]   ;;  %v11105_v45 = vld [vmem:[#allocation6 + $0xc8] ss:$16 sps:$4 sm:$0xff]  }
  0x8b   :  { %1094 = vmatpush2.bf16.msra.mxu0 %v11057_v44 }
  0x8c   :  { %1135 = vmatpush2.bf16.msra.mxu1 %v11060_v46  ;;  %1095 = vmatprep.subr.bf16.mxu0 %v11065_v47  ;;  %v11108_v46 = vld [vmem:[#allocation6 + $0x2c8] ss:$16 sps:$4 sm:$0xff]   ;;  %v11113_v47 = vld [vmem:[#allocation6 + $0xac] ss:$16 sps:$4 sm:$0xff]  }
  0x8d   :  { %1136 = vmatprep.subr.bf16.mxu1 %v11068_v48  ;;  %v11116_v48 = vld [vmem:[#allocation6 + $0x2ac] ss:$16 sps:$4 sm:$0xff]  }
  0x8f   :  { %1096 = vmatpush2.bf16.msra.mxu0 %v11063_v49  ;;  %v11111_v49 = vld [vmem:[#allocation6 + $0xa8] ss:$16 sps:$4 sm:$0xff]  }
  0x90   :  { %1137 = vmatpush2.bf16.msra.mxu1 %v11066_v50  ;;  %1097 = vmatprep.subr.bf16.mxu0 %v11071_v51  ;;  %v11114_v50 = vld [vmem:[#allocation6 + $0x2a8] ss:$16 sps:$4 sm:$0xff]   ;;  %v11119_v51 = vld [vmem:[#allocation6 + $0x8c] ss:$16 sps:$4 sm:$0xff]  }
  0x91   :  { %1138 = vmatprep.subr.bf16.mxu1 %v11074_v52  ;;  %v11122_v52 = vld [vmem:[#allocation6 + $0x28c] ss:$16 sps:$4 sm:$0xff]  }
  0x93   :  { %1098 = vmatpush2.bf16.msra.mxu0 %v11069_v53  ;;  %v11117_v53 = vld [vmem:[#allocation6 + $0x88] ss:$16 sps:$4 sm:$0xff]  }
  0x94   :  { %1139 = vmatpush2.bf16.msra.mxu1 %v11072_v54  ;;  %1099 = vmatprep.subr.bf16.mxu0 %v11077_v55  ;;  %v11120_v54 = vld [vmem:[#allocation6 + $0x288] ss:$16 sps:$4 sm:$0xff]   ;;  %v11125_v55 = vld [vmem:[#allocation6 + $0x6c] ss:$16 sps:$4 sm:$0xff]  }
  0x95   :  { %1140 = vmatprep.subr.bf16.mxu1 %v11080_v56  ;;  %v11128_v56 = vld [vmem:[#allocation6 + $0x26c] ss:$16 sps:$4 sm:$0xff]  }
  0x97   :  { %1100 = vmatpush2.bf16.msra.mxu0 %v11075_v57  ;;  %v11123_v57 = vld [vmem:[#allocation6 + $0x68] ss:$16 sps:$4 sm:$0xff]  }
  0x98   :  { %1141 = vmatpush2.bf16.msra.mxu1 %v11078_v58  ;;  %1101 = vmatprep.subr.bf16.mxu0 %v11083_v59  ;;  %v11126_v58 = vld [vmem:[#allocation6 + $0x268] ss:$16 sps:$4 sm:$0xff]   ;;  %v11131_v59 = vld [vmem:[#allocation6 + $0x4c] ss:$16 sps:$4 sm:$0xff]  }
  0x99   :  { %1142 = vmatprep.subr.bf16.mxu1 %v11086_v60  ;;  %v11134_v60 = vld [vmem:[#allocation6 + $0x24c] ss:$16 sps:$4 sm:$0xff]  }
  0x9b   :  { %1102 = vmatpush2.bf16.msra.mxu0 %v11081_v61  ;;  %v11129_v61 = vld [vmem:[#allocation6 + $0x48] ss:$16 sps:$4 sm:$0xff]  }
  0x9c   :  { %1143 = vmatpush2.bf16.msra.mxu1 %v11084_v62  ;;  %1103 = vmatprep.subr.bf16.mxu0 %v11089_v63  ;;  %v11132_v62 = vld [vmem:[#allocation6 + $0x248] ss:$16 sps:$4 sm:$0xff]   ;;  %v11137_v63 = vld [vmem:[#allocation6 + $0x2c] ss:$16 sps:$4 sm:$0xff]  }
  0x9d   :  { %1144 = vmatprep.subr.bf16.mxu1 %v11092_v1  ;;  %v11140_v1 = vld [vmem:[#allocation6 + $0x22c] ss:$16 sps:$4 sm:$0xff]  }
  0x9f   :  { %1104 = vmatpush2.bf16.msra.mxu0 %v11087_v2  ;;  %v11135_v2 = vld [vmem:[#allocation6 + $0x28] ss:$16 sps:$4 sm:$0xff]  }
  0xa0   :  { %1145 = vmatpush2.bf16.msra.mxu1 %v11090_v3  ;;  %1105 = vmatprep.subr.bf16.mxu0 %v11095_v4  ;;  %v11138_v3 = vld [vmem:[#allocation6 + $0x228] ss:$16 sps:$4 sm:$0xff]   ;;  %v11143_v4 = vld [vmem:[#allocation6 + $0xc] ss:$16 sps:$4 sm:$0xff]  }
  0xa1   :  { %1146 = vmatprep.subr.bf16.mxu1 %v11098_v5  ;;  %v11146_v5 = vld [vmem:[#allocation6 + $0x20c] ss:$16 sps:$4 sm:$0xff]  }
  0xa3   :  { %1106 = vmatpush2.bf16.msra.mxu0 %v11093_v6  ;;  %v11141_v6 = vld [vmem:[#allocation6 + $0x8] ss:$16 sps:$4 sm:$0xff]  }
  0xa4   :  { %1147 = vmatpush2.bf16.msra.mxu1 %v11096_v7  ;;  %1157 = vmatprep.subr.bf16.mxu0 %v11101_v8  ;;  %v11144_v7 = vld [vmem:[#allocation6 + $0x208] ss:$16 sps:$4 sm:$0xff]   ;;  %v11149_v8 = vld [vmem:[#allocation6 + $0x1ec] ss:$16 sps:$4 sm:$0xff]  }
  0xa5   :  { %1198 = vmatprep.subr.bf16.mxu1 %v11104_v9  ;;  %v11152_v9 = vld [vmem:[#allocation6 + $0x3ec] ss:$16 sps:$4 sm:$0xff]  }
 0x126   :  { %v229_v21 = vpop.f32.mrf.mxu0 }
 0x127   :  { %v270_v22 = vpop.f32.mrf.mxu1  ;;  %v230_v23 = vadd.f32 %v229_v21, %v154_v17  ;;  %v11158_v17 = vld [vmem:[#allocation6 + $0x3cc] ss:$16 sps:$4 sm:$0xff]  }
 0x128   :  { %v271_v24 = vadd.f32 %v270_v22, %v162_v18  ;;  %v231_v25 = vpop.f32.mrf.mxu0  ;;  %v11153_v18 = vld [vmem:[#allocation6 + $0x1c8] ss:$16 sps:$4 sm:$0xff]   ;;  %v11164_v21 = vld [vmem:[#allocation6 + $0x3ac] ss:$16 sps:$4 sm:$0xff]  }
 0x129   :  { %v272_v26 = vpop.f32.mrf.mxu1  ;;  %v232_v28 = vadd.f32 %v231_v25, %v158_v19  ;;  %v277_v30 = vmax.f32 %v230_v23, 0.0  ;;  %v11156_v19 = vld [vmem:[#allocation6 + $0x3c8] ss:$16 sps:$4 sm:$0xff]   ;;  %v11170_v25 = vld [vmem:[#allocation6 + $0x38c] ss:$16 sps:$4 sm:$0xff]  }
 0x12a   :  { %v279_v27 = vmax.f32 %v271_v24, 0.0  ;;  %v273_v29 = vadd.f32 %v272_v26, %v166_v20  ;;  %v233_v31 = vpop.f32.mrf.mxu0  ;;  %v11161_v20 = vld [vmem:[#allocation6 + $0x1ac] ss:$16 sps:$4 sm:$0xff]   ;;  %v11159_v22 = vld [vmem:[#allocation6 + $0x1a8] ss:$16 sps:$4 sm:$0xff]  }
 0x12b   :  { %v274_v32 = vpop.f32.mrf.mxu1  ;;  %v278_v33 = vmax.f32 %v232_v28, 0.0  ;;  %v13093_v44 = vpack.c.bf16 %v277_v30, %v277_v30  ;;  %v11162_v23 = vld [vmem:[#allocation6 + $0x3a8] ss:$16 sps:$4 sm:$0xff]   ;;  %v11167_v24 = vld [vmem:[#allocation6 + $0x18c] ss:$16 sps:$4 sm:$0xff]  }
 0x12c   :  { %v280_v34 = vmax.f32 %v273_v29, 0.0  ;;  %v13091_v37 = vpack.c.bf16 %v279_v27, %v279_v27  ;;  %v234_v38 = vpop.f32.mrf.mxu0  ;;  %v11165_v26 = vld [vmem:[#allocation6 + $0x188] ss:$16 sps:$4 sm:$0xff]   ;;  %v11173_v28 = vld [vmem:[#allocation6 + $0x16c] ss:$16 sps:$4 sm:$0xff]  }
 0x12d   :  { %v275_v39 = vpop.f32.mrf.mxu1  ;;  %v282_v40 = vpack.c.bf16 %v278_v33, %v278_v33  ;;  %v11168_v27 = vld [vmem:[#allocation6 + $0x388] ss:$16 sps:$4 sm:$0xff]   ;;  %v11176_v29 = vld [vmem:[#allocation6 + $0x36c] ss:$16 sps:$4 sm:$0xff]  }
 0x12e   :  { %v284_v41 = vpack.c.bf16 %v280_v34, %v280_v34  ;;  %v11171_v30 = vld [vmem:[#allocation6 + $0x168] ss:$16 sps:$4 sm:$0xff]   ;;  %v11179_v32 = vld [vmem:[#allocation6 + $0x14c] ss:$16 sps:$4 sm:$0xff]  }
 0x12f   :  { %1107 = vmatprep.mubr.bf16.mxu0 %v282_v40  ;;  %v11174_v31 = vld [vmem:[#allocation6 + $0x368] ss:$16 sps:$4 sm:$0xff]   ;;  %v11182_v33 = vld [vmem:[#allocation6 + $0x34c] ss:$16 sps:$4 sm:$0xff]  }
 0x130   :  { %1148 = vmatprep.mubr.bf16.mxu1 %v284_v41  ;;  %1108 = vmatmul.mubr.bf16.vlgmr.msra.gmra.mxu0 %v13093_v44  ;;  %v11177_v34 = vld [vmem:[#allocation6 + $0x148] ss:$16 sps:$4 sm:$0xff]   ;;  %v11188_v38 = vld [vmem:[#allocation6 + $0x32c] ss:$16 sps:$4 sm:$0xff]  }
 0x131   :  { %1149 = vmatmul.mubr.bf16.vlgmr.msra.gmra.mxu1 %v13091_v37  ;;  %1158 = vmatpush1.bf16.msra.mxu0 %v11099_v35  ;;  %v11180_v35 = vld [vmem:[#allocation6 + $0x348] ss:$16 sps:$4 sm:$0xff]  }
 0x132   :  { %1199 = vmatpush1.bf16.msra.mxu1 %v11102_v36  ;;  %1189 = vmatprep.mubr.bf16.mxu0 %v282_v40  ;;  %v11185_v36 = vld [vmem:[#allocation6 + $0x12c] ss:$16 sps:$4 sm:$0xff]   ;;  %v11183_v39 = vld [vmem:[#allocation6 + $0x128] ss:$16 sps:$4 sm:$0xff]  }
 0x133   :  { %1230 = vmatprep.mubr.bf16.mxu1 %v284_v41  ;;  %1159 = vmatprep.subr.bf16.mxu0 %v11107_v42  ;;  %v11186_v40 = vld [vmem:[#allocation6 + $0x328] ss:$16 sps:$4 sm:$0xff]   ;;  %v11191_v41 = vld [vmem:[#allocation6 + $0x10c] ss:$16 sps:$4 sm:$0xff]  }
 0x134   :  { %1200 = vmatprep.subr.bf16.mxu1 %v11110_v43  ;;  %v11194_v42 = vld [vmem:[#allocation6 + $0x30c] ss:$16 sps:$4 sm:$0xff]   ;;  %v11189_v43 = vld [vmem:[#allocation6 + $0x108] ss:$16 sps:$4 sm:$0xff]  }
 0x135   :  { %1160 = vmatpush1.bf16.msra.mxu0 %v11105_v45  ;;  %v11192_v45 = vld [vmem:[#allocation6 + $0x308] ss:$16 sps:$4 sm:$0xff]  }
 0x136   :  { %1201 = vmatpush1.bf16.msra.mxu1 %v11108_v46  ;;  %1161 = vmatprep.subr.bf16.mxu0 %v11113_v47  ;;  %v11197_v46 = vld [vmem:[#allocation6 + $0x4e4] ss:$16 sps:$4 sm:$0xff]   ;;  %v11195_v47 = vld [vmem:[#allocation6 + $0x4e0] ss:$16 sps:$4 sm:$0xff]  }
 0x137   :  { %1202 = vmatprep.subr.bf16.mxu1 %v11116_v48  ;;  %v11200_v48 = vld [vmem:[#allocation6 + $0x4c4] ss:$16 sps:$4 sm:$0xff]  }
 0x139   :  { %1162 = vmatpush1.bf16.msra.mxu0 %v11111_v49  ;;  %v11198_v49 = vld [vmem:[#allocation6 + $0x4c0] ss:$16 sps:$4 sm:$0xff]  }
 0x13a   :  { %1203 = vmatpush1.bf16.msra.mxu1 %v11114_v50  ;;  %1163 = vmatprep.subr.bf16.mxu0 %v11119_v51  ;;  %v11203_v50 = vld [vmem:[#allocation6 + $0x4a4] ss:$16 sps:$4 sm:$0xff]   ;;  %v11201_v51 = vld [vmem:[#allocation6 + $0x4a0] ss:$16 sps:$4 sm:$0xff]  }
 0x13b   :  { %1204 = vmatprep.subr.bf16.mxu1 %v11122_v52  ;;  %v11206_v52 = vld [vmem:[#allocation6 + $0x484] ss:$16 sps:$4 sm:$0xff]  }
 0x13d   :  { %1164 = vmatpush1.bf16.msra.mxu0 %v11117_v53  ;;  %v11204_v53 = vld [vmem:[#allocation6 + $0x480] ss:$16 sps:$4 sm:$0xff]  }
 0x13e   :  { %1205 = vmatpush1.bf16.msra.mxu1 %v11120_v54  ;;  %1165 = vmatprep.subr.bf16.mxu0 %v11125_v55  ;;  %v11243_v54 = vld [vmem:[#allocation6 + $0x6e0] ss:$16 sps:$4 sm:$0xff]   ;;  %v11245_v55 = vld [vmem:[#allocation6 + $0x6e4] ss:$16 sps:$4 sm:$0xff]  }
 0x13f   :  { %1206 = vmatprep.subr.bf16.mxu1 %v11128_v56  ;;  %v11209_v56 = vld [vmem:[#allocation6 + $0x464] ss:$16 sps:$4 sm:$0xff]  }
 0x141   :  { %1166 = vmatpush1.bf16.msra.mxu0 %v11123_v57  ;;  %v11207_v57 = vld [vmem:[#allocation6 + $0x460] ss:$16 sps:$4 sm:$0xff]  }
 0x142   :  { %1207 = vmatpush1.bf16.msra.mxu1 %v11126_v58  ;;  %1167 = vmatprep.subr.bf16.mxu0 %v11131_v59  ;;  %v11251_v58 = vld [vmem:[#allocation6 + $0x6c4] ss:$16 sps:$4 sm:$0xff]   ;;  %v11210_v59 = vld [vmem:[#allocation6 + $0x440] ss:$16 sps:$4 sm:$0xff]  }
 0x143   :  { %1208 = vmatprep.subr.bf16.mxu1 %v11134_v60  ;;  %v11255_v60 = vld [vmem:[#allocation6 + $0x6a0] ss:$16 sps:$4 sm:$0xff]  }
 0x145   :  { %1168 = vmatpush1.bf16.msra.mxu0 %v11129_v61  ;;  %v11257_v61 = vld [vmem:[#allocation6 + $0x6a4] ss:$16 sps:$4 sm:$0xff]  }
 0x146   :  { %1209 = vmatpush1.bf16.msra.mxu1 %v11132_v62  ;;  %1169 = vmatprep.subr.bf16.mxu0 %v11137_v63  ;;  %v11215_v62 = vld [vmem:[#allocation6 + $0x424] ss:$16 sps:$4 sm:$0xff]   ;;  %v11213_v63 = vld [vmem:[#allocation6 + $0x420] ss:$16 sps:$4 sm:$0xff]  }
 0x147   :  { %1210 = vmatprep.subr.bf16.mxu1 %v11140_v1  ;;  %v11261_v1 = vld [vmem:[#allocation6 + $0x680] ss:$16 sps:$4 sm:$0xff]  }
 0x149   :  { %1170 = vmatpush1.bf16.msra.mxu0 %v11135_v2  ;;  %v11263_v2 = vld [vmem:[#allocation6 + $0x684] ss:$16 sps:$4 sm:$0xff]  }
 0x14a   :  { %1211 = vmatpush1.bf16.msra.mxu1 %v11138_v3  ;;  %1171 = vmatprep.subr.bf16.mxu0 %v11143_v4  ;;  %v11218_v3 = vld [vmem:[#allocation6 + $0x404] ss:$16 sps:$4 sm:$0xff]   ;;  %v11216_v4 = vld [vmem:[#allocation6 + $0x400] ss:$16 sps:$4 sm:$0xff]  }
 0x14b   :  { %1212 = vmatprep.subr.bf16.mxu1 %v11146_v5  ;;  %v11267_v5 = vld [vmem:[#allocation6 + $0x660] ss:$16 sps:$4 sm:$0xff]  }
 0x14d   :  { %1172 = vmatpush1.bf16.msra.mxu0 %v11141_v6  ;;  %v11269_v6 = vld [vmem:[#allocation6 + $0x664] ss:$16 sps:$4 sm:$0xff]  }
 0x14e   :  { %1213 = vmatpush1.bf16.msra.mxu1 %v11144_v7  ;;  %1173 = vmatprep.subr.bf16.mxu0 %v11149_v8  ;;  %v11221_v7 = vld [vmem:[#allocation6 + $0x5e4] ss:$16 sps:$4 sm:$0xff]   ;;  %v11219_v8 = vld [vmem:[#allocation6 + $0x5e0] ss:$16 sps:$4 sm:$0xff]  }
 0x14f   :  { %1214 = vmatprep.subr.bf16.mxu1 %v11152_v9  ;;  %v11273_v9 = vld [vmem:[#allocation6 + $0x640] ss:$16 sps:$4 sm:$0xff]  }
 0x151   :  { %1174 = vmatpush2.bf16.msra.mxu0 %v11147_v10  ;;  %v11275_v10 = vld [vmem:[#allocation6 + $0x644] ss:$16 sps:$4 sm:$0xff]  }
 0x152   :  { %1215 = vmatpush2.bf16.msra.mxu1 %v11150_v11  ;;  %1175 = vmatprep.subr.bf16.mxu0 %v11155_v12  ;;  %v11224_v11 = vld [vmem:[#allocation6 + $0x5c4] ss:$16 sps:$4 sm:$0xff]   ;;  %v11222_v12 = vld [vmem:[#allocation6 + $0x5c0] ss:$16 sps:$4 sm:$0xff]  }
 0x153   :  { %1216 = vmatprep.subr.bf16.mxu1 %v11158_v17  ;;  %v11279_v17 = vld [vmem:[#allocation6 + $0x620] ss:$16 sps:$4 sm:$0xff]  }
 0x155   :  { %1176 = vmatpush2.bf16.msra.mxu0 %v11153_v18  ;;  %v11281_v18 = vld [vmem:[#allocation6 + $0x624] ss:$16 sps:$4 sm:$0xff]  }
 0x156   :  { %1217 = vmatpush2.bf16.msra.mxu1 %v11156_v19  ;;  %1177 = vmatprep.subr.bf16.mxu0 %v11161_v20  ;;  %v11227_v19 = vld [vmem:[#allocation6 + $0x5a4] ss:$16 sps:$4 sm:$0xff]   ;;  %v11225_v20 = vld [vmem:[#allocation6 + $0x5a0] ss:$16 sps:$4 sm:$0xff]  }
 0x157   :  { %1218 = vmatprep.subr.bf16.mxu1 %v11164_v21  ;;  %v11285_v21 = vld [vmem:[#allocation6 + $0x600] ss:$16 sps:$4 sm:$0xff]  }
 0x159   :  { %1178 = vmatpush2.bf16.msra.mxu0 %v11159_v22  ;;  %v11287_v22 = vld [vmem:[#allocation6 + $0x604] ss:$16 sps:$4 sm:$0xff]  }
 0x15a   :  { %1219 = vmatpush2.bf16.msra.mxu1 %v11162_v23  ;;  %1179 = vmatprep.subr.bf16.mxu0 %v11167_v24  ;;  %v11230_v23 = vld [vmem:[#allocation6 + $0x584] ss:$16 sps:$4 sm:$0xff]   ;;  %v11228_v24 = vld [vmem:[#allocation6 + $0x580] ss:$16 sps:$4 sm:$0xff]  }
 0x15b   :  { %1220 = vmatprep.subr.bf16.mxu1 %v11170_v25  ;;  %v11291_v25 = vld [vmem:[#allocation6 + $0x7e0] ss:$16 sps:$4 sm:$0xff]  }
 0x15d   :  { %1180 = vmatpush2.bf16.msra.mxu0 %v11165_v26  ;;  %v11293_v26 = vld [vmem:[#allocation6 + $0x7e4] ss:$16 sps:$4 sm:$0xff]  }
 0x15e   :  { %1221 = vmatpush2.bf16.msra.mxu1 %v11168_v27  ;;  %1181 = vmatprep.subr.bf16.mxu0 %v11173_v28  ;;  %v11233_v27 = vld [vmem:[#allocation6 + $0x564] ss:$16 sps:$4 sm:$0xff]   ;;  %v11231_v28 = vld [vmem:[#allocation6 + $0x560] ss:$16 sps:$4 sm:$0xff]  }
 0x15f   :  { %1222 = vmatprep.subr.bf16.mxu1 %v11176_v29  ;;  %v11297_v29 = vld [vmem:[#allocation6 + $0x7c0] ss:$16 sps:$4 sm:$0xff]  }
 0x161   :  { %1182 = vmatpush2.bf16.msra.mxu0 %v11171_v30  ;;  %v11299_v30 = vld [vmem:[#allocation6 + $0x7c4] ss:$16 sps:$4 sm:$0xff]  }
 0x162   :  { %1223 = vmatpush2.bf16.msra.mxu1 %v11174_v31  ;;  %1183 = vmatprep.subr.bf16.mxu0 %v11179_v32  ;;  %v11236_v31 = vld [vmem:[#allocation6 + $0x544] ss:$16 sps:$4 sm:$0xff]   ;;  %v11234_v32 = vld [vmem:[#allocation6 + $0x540] ss:$16 sps:$4 sm:$0xff]  }
 0x163   :  { %1224 = vmatprep.subr.bf16.mxu1 %v11182_v33  ;;  %v11303_v33 = vld [vmem:[#allocation6 + $0x7a0] ss:$16 sps:$4 sm:$0xff]  }
 0x165   :  { %1184 = vmatpush2.bf16.msra.mxu0 %v11177_v34  ;;  %v11305_v34 = vld [vmem:[#allocation6 + $0x7a4] ss:$16 sps:$4 sm:$0xff]  }
 0x166   :  { %1225 = vmatpush2.bf16.msra.mxu1 %v11180_v35  ;;  %1185 = vmatprep.subr.bf16.mxu0 %v11185_v36  ;;  %v11239_v35 = vld [vmem:[#allocation6 + $0x524] ss:$16 sps:$4 sm:$0xff]   ;;  %v11237_v36 = vld [vmem:[#allocation6 + $0x520] ss:$16 sps:$4 sm:$0xff]  }
 0x167   :  { %1226 = vmatprep.subr.bf16.mxu1 %v11188_v38  ;;  %v11309_v38 = vld [vmem:[#allocation6 + $0x780] ss:$16 sps:$4 sm:$0xff]  }
 0x169   :  { %1186 = vmatpush2.bf16.msra.mxu0 %v11183_v39  ;;  %v11311_v39 = vld [vmem:[#allocation6 + $0x784] ss:$16 sps:$4 sm:$0xff]  }
 0x16a   :  { %1227 = vmatpush2.bf16.msra.mxu1 %v11186_v40  ;;  %1187 = vmatprep.subr.bf16.mxu0 %v11191_v41  ;;  %v11242_v40 = vld [vmem:[#allocation6 + $0x504] ss:$16 sps:$4 sm:$0xff]   ;;  %v11240_v41 = vld [vmem:[#allocation6 + $0x500] ss:$16 sps:$4 sm:$0xff]  }
 0x16b   :  { %1228 = vmatprep.subr.bf16.mxu1 %v11194_v42  ;;  %v11315_v42 = vld [vmem:[#allocation6 + $0x760] ss:$16 sps:$4 sm:$0xff]  }
 0x16d   :  { %1188 = vmatpush2.bf16.msra.mxu0 %v11189_v43  ;;  %v11317_v43 = vld [vmem:[#allocation6 + $0x764] ss:$16 sps:$4 sm:$0xff]  }
 0x16e   :  { %1229 = vmatpush2.bf16.msra.mxu1 %v11192_v45  ;;  %2039 = vmatprep.subr.bf16.mxu0 %v11197_v46  ;;  %v11248_v45 = vld [vmem:[#allocation6 + $0x4ec] ss:$16 sps:$4 sm:$0xff]   ;;  %v11321_v46 = vld [vmem:[#allocation6 + $0x740] ss:$16 sps:$4 sm:$0xff]  }
 0x16f   :  { %2080 = vmatprep.subr.bf16.mxu1 %v11245_v55 }
 0x170   :  { %1190 = vmatmul.mubr.bf16.vlgmr.msra.gmra.mxu0 %v13093_v44  ;;  %v11249_v44 = vld [vmem:[#allocation6 + $0x6c0] ss:$16 sps:$4 sm:$0xff]  }
 0x171   :  { %1231 = vmatmul.mubr.bf16.vlgmr.msra.gmra.mxu1 %v13091_v37  ;;  %2040 = vmatpush1.bf16.msra.mxu0 %v11195_v47  ;;  %v11212_v37 = vld [vmem:[#allocation6 + $0x444] ss:$16 sps:$4 sm:$0xff]  }
 0x172   :  { %2041 = vmatprep.subr.bf16.mxu0 %v11200_v48  ;;  %2081 = vmatpush1.bf16.msra.mxu1 %v11243_v54  ;;  %v11323_v47 = vld [vmem:[#allocation6 + $0x744] ss:$16 sps:$4 sm:$0xff]  }
 0x173   :  { %2082 = vmatprep.subr.bf16.mxu1 %v11251_v58  ;;  %v11329_v48 = vld [vmem:[#allocation6 + $0x724] ss:$16 sps:$4 sm:$0xff]  }
 0x175   :  { %2042 = vmatpush1.bf16.msra.mxu0 %v11198_v49  ;;  %v11327_v49 = vld [vmem:[#allocation6 + $0x720] ss:$16 sps:$4 sm:$0xff]  }
 0x176   :  { %2043 = vmatprep.subr.bf16.mxu0 %v11203_v50  ;;  %2083 = vmatpush1.bf16.msra.mxu1 %v11249_v44  ;;  %v11335_v50 = vld [vmem:[#allocation6 + $0x704] ss:$16 sps:$4 sm:$0xff]  }
 0x177   :  { %2084 = vmatprep.subr.bf16.mxu1 %v11257_v61 }
 0x179   :  { %2044 = vmatpush1.bf16.msra.mxu0 %v11201_v51  ;;  %v11333_v51 = vld [vmem:[#allocation6 + $0x700] ss:$16 sps:$4 sm:$0xff]  }
 0x17a   :  { %2045 = vmatprep.subr.bf16.mxu0 %v11206_v52  ;;  %2085 = vmatpush1.bf16.msra.mxu1 %v11255_v60  ;;  %v11341_v52 = vld [vmem:[#allocation6 + $0x6ec] ss:$16 sps:$4 sm:$0xff]  }
 0x17b   :  { %2086 = vmatprep.subr.bf16.mxu1 %v11263_v2 }
 0x17d   :  { %2046 = vmatpush1.bf16.msra.mxu0 %v11204_v53  ;;  %v13099_v53 = vld [vmem:[#allocation7] sm:$0xf] }
 0x17e   :  { %2047 = vmatprep.subr.bf16.mxu0 %v11209_v56  ;;  %2087 = vmatpush1.bf16.msra.mxu1 %v11261_v1  ;;  %v418_v54 = vrot.slane %v13099_v53, %v13079_v13  ;;  %v422_v55 = vrot.slane %v13099_v53, %v13083_v15 }
 0x17f   :  { %2088 = vmatprep.subr.bf16.mxu1 %v11269_v6  ;;  %v11254_v6 = vld [vmem:[#allocation6 + $0x4cc] ss:$16 sps:$4 sm:$0xff]  }
 0x181   :  { %2048 = vmatpush1.bf16.msra.mxu0 %v11207_v57 }
 0x182   :  { %2049 = vmatprep.subr.bf16.mxu0 %v11212_v37  ;;  %2089 = vmatpush1.bf16.msra.mxu1 %v11267_v5  ;;  %v11246_v5 = vld [vmem:[#allocation6 + $0x4e8] ss:$16 sps:$4 sm:$0xff]  }
 0x183   :  { %2090 = vmatprep.subr.bf16.mxu1 %v11275_v10  ;;  %v11260_v10 = vld [vmem:[#allocation6 + $0x4ac] ss:$16 sps:$4 sm:$0xff]  }
 0x185   :  { %2050 = vmatpush1.bf16.msra.mxu0 %v11210_v59 }
 0x186   :  { %2051 = vmatprep.subr.bf16.mxu0 %v11215_v62  ;;  %2091 = vmatpush1.bf16.msra.mxu1 %v11273_v9  ;;  %v11252_v9 = vld [vmem:[#allocation6 + $0x4c8] ss:$16 sps:$4 sm:$0xff]  }
 0x187   :  { %2092 = vmatprep.subr.bf16.mxu1 %v11281_v18  ;;  %v11272_v18 = vld [vmem:[#allocation6 + $0x46c] ss:$16 sps:$4 sm:$0xff]  }
 0x189   :  { %2052 = vmatpush1.bf16.msra.mxu0 %v11213_v63 }
 0x18a   :  { %2053 = vmatprep.subr.bf16.mxu0 %v11218_v3  ;;  %2093 = vmatpush1.bf16.msra.mxu1 %v11279_v17  ;;  %v11264_v17 = vld [vmem:[#allocation6 + $0x488] ss:$16 sps:$4 sm:$0xff]  }
 0x18b   :  { %2094 = vmatprep.subr.bf16.mxu1 %v11287_v22  ;;  %v11284_v22 = vld [vmem:[#allocation6 + $0x42c] ss:$16 sps:$4 sm:$0xff]  }
 0x18d   :  { %2054 = vmatpush1.bf16.msra.mxu0 %v11216_v4 }
 0x18e   :  { %2055 = vmatprep.subr.bf16.mxu0 %v11221_v7  ;;  %2095 = vmatpush1.bf16.msra.mxu1 %v11285_v21  ;;  %v11276_v21 = vld [vmem:[#allocation6 + $0x448] ss:$16 sps:$4 sm:$0xff]  }
 0x18f   :  { %2096 = vmatprep.subr.bf16.mxu1 %v11293_v26  ;;  %v11296_v26 = vld [vmem:[#allocation6 + $0x5ec] ss:$16 sps:$4 sm:$0xff]  }
 0x191   :  { %2056 = vmatpush2.bf16.msra.mxu0 %v11219_v8 }
 0x192   :  { %2057 = vmatprep.subr.bf16.mxu0 %v11224_v11  ;;  %2097 = vmatpush2.bf16.msra.mxu1 %v11291_v25  ;;  %v11258_v11 = vld [vmem:[#allocation6 + $0x4a8] ss:$16 sps:$4 sm:$0xff]  }
 0x193   :  { %2098 = vmatprep.subr.bf16.mxu1 %v11299_v30  ;;  %v11288_v25 = vld [vmem:[#allocation6 + $0x408] ss:$16 sps:$4 sm:$0xff]   ;;  %v11308_v30 = vld [vmem:[#allocation6 + $0x5ac] ss:$16 sps:$4 sm:$0xff]  }
 0x195   :  { %2058 = vmatpush2.bf16.msra.mxu0 %v11222_v12  ;;  %v11266_v12 = vld [vmem:[#allocation6 + $0x48c] ss:$16 sps:$4 sm:$0xff]  }
 0x196   :  { %2059 = vmatprep.subr.bf16.mxu0 %v11227_v19  ;;  %2099 = vmatpush2.bf16.msra.mxu1 %v11297_v29  ;;  %v11270_v19 = vld [vmem:[#allocation6 + $0x468] ss:$16 sps:$4 sm:$0xff]  }
 0x197   :  { %2100 = vmatprep.subr.bf16.mxu1 %v11305_v34  ;;  %v11300_v29 = vld [vmem:[#allocation6 + $0x5c8] ss:$16 sps:$4 sm:$0xff]   ;;  %v11320_v34 = vld [vmem:[#allocation6 + $0x56c] ss:$16 sps:$4 sm:$0xff]  }
 0x199   :  { %2060 = vmatpush2.bf16.msra.mxu0 %v11225_v20  ;;  %v11278_v20 = vld [vmem:[#allocation6 + $0x44c] ss:$16 sps:$4 sm:$0xff]  }
 0x19a   :  { %2061 = vmatprep.subr.bf16.mxu0 %v11230_v23  ;;  %2101 = vmatpush2.bf16.msra.mxu1 %v11303_v33  ;;  %v11282_v23 = vld [vmem:[#allocation6 + $0x428] ss:$16 sps:$4 sm:$0xff]  }
 0x19b   :  { %2102 = vmatprep.subr.bf16.mxu1 %v11311_v39  ;;  %v11312_v33 = vld [vmem:[#allocation6 + $0x588] ss:$16 sps:$4 sm:$0xff]   ;;  %v11332_v39 = vld [vmem:[#allocation6 + $0x52c] ss:$16 sps:$4 sm:$0xff]  }
 0x19d   :  { %2062 = vmatpush2.bf16.msra.mxu0 %v11228_v24  ;;  %v11290_v24 = vld [vmem:[#allocation6 + $0x40c] ss:$16 sps:$4 sm:$0xff]  }
 0x19e   :  { %2063 = vmatprep.subr.bf16.mxu0 %v11233_v27  ;;  %2103 = vmatpush2.bf16.msra.mxu1 %v11309_v38  ;;  %v11294_v27 = vld [vmem:[#allocation6 + $0x5e8] ss:$16 sps:$4 sm:$0xff]  }
 0x19f   :  { %2104 = vmatprep.subr.bf16.mxu1 %v11317_v43  ;;  %v11324_v38 = vld [vmem:[#allocation6 + $0x548] ss:$16 sps:$4 sm:$0xff]  }
 0x1a1   :  { %2064 = vmatpush2.bf16.msra.mxu0 %v11231_v28  ;;  %v11302_v28 = vld [vmem:[#allocation6 + $0x5cc] ss:$16 sps:$4 sm:$0xff]  }
 0x1a2   :  { %2065 = vmatprep.subr.bf16.mxu0 %v11236_v31  ;;  %2105 = vmatpush2.bf16.msra.mxu1 %v11315_v42  ;;  %v11306_v31 = vld [vmem:[#allocation6 + $0x5a8] ss:$16 sps:$4 sm:$0xff]  }
 0x1a3   :  { %2106 = vmatprep.subr.bf16.mxu1 %v11323_v47  ;;  %v11330_v42 = vld [vmem:[#allocation6 + $0x528] ss:$16 sps:$4 sm:$0xff]  }
 0x1a5   :  { %2066 = vmatpush2.bf16.msra.mxu0 %v11234_v32  ;;  %v11314_v32 = vld [vmem:[#allocation6 + $0x58c] ss:$16 sps:$4 sm:$0xff]  }
 0x1a6   :  { %2067 = vmatprep.subr.bf16.mxu0 %v11239_v35  ;;  %2107 = vmatpush2.bf16.msra.mxu1 %v11321_v46  ;;  %v11318_v35 = vld [vmem:[#allocation6 + $0x568] ss:$16 sps:$4 sm:$0xff]   ;;  %v11338_v46 = vld [vmem:[#allocation6 + $0x50c] ss:$16 sps:$4 sm:$0xff]  }
 0x1a7   :  { %2108 = vmatprep.subr.bf16.mxu1 %v11329_v48 }
 0x1a9   :  { %2068 = vmatpush2.bf16.msra.mxu0 %v11237_v36  ;;  %v11326_v36 = vld [vmem:[#allocation6 + $0x54c] ss:$16 sps:$4 sm:$0xff]  }
 0x1aa   :  { %2069 = vmatprep.subr.bf16.mxu0 %v11242_v40  ;;  %2109 = vmatpush2.bf16.msra.mxu1 %v11327_v49  ;;  %v426_v40 = vrot.slane %v13099_v53, %v13081_v14 }
 0x1ab   :  { %2110 = vmatprep.subr.bf16.mxu1 %v11335_v50 }
 0x1ad   :  { %2070 = vmatpush2.bf16.msra.mxu0 %v11240_v41  ;;  %v430_v41 = vrot.slane %v13099_v53, %v13085_v16 }
 0x1ae   :  { %2121 = vmatprep.subr.bf16.mxu0 %v11248_v45  ;;  %2111 = vmatpush2.bf16.msra.mxu1 %v11333_v51 }
 0x1af   :  { %2162 = vmatprep.subr.bf16.mxu1 %v11341_v52  ;;  %v11336_v52 = vld [vmem:[#allocation6 + $0x508] ss:$16 sps:$4 sm:$0xff]  }
 0x1f0   :  { %v1109_v56 = vpop.f32.mrf.mxu0 }
 0x1f1   :  { %v1150_v57 = vpop.f32.mrf.mxu1  ;;  %v1110_v44 = vadd.f32 %v1109_v56, %v418_v54 }
 0x1f2   :  { %v1111_v58 = vpop.f32.mrf.mxu0 }
 0x1f3   :  { %v1152_v37 = vpop.f32.mrf.mxu1  ;;  %v1151_v59 = vadd.f32 %v1150_v57, %v1110_v44  ;;  %v1112_v60 = vadd.f32 %v1111_v58, %v422_v55 }
 0x1f4   :  { %v1113_v61 = vpop.f32.mrf.mxu0 }
 0x1f5   :  { %v1154_v62 = vpop.f32.mrf.mxu1  ;;  %v1153_v63 = vadd.f32 %v1152_v37, %v1112_v60  ;;  %v1239_v1 = vmax.f32 %v1151_v59, 0.0  ;;  %v11339_v37 = vld [vmem:[#allocation6 + $0x6e8] ss:$16 sps:$4 sm:$0xff]   ;;  %v11344_v59 = vld [vmem:[#allocation6 + $0x6cc] ss:$16 sps:$4 sm:$0xff]  }
 0x1f6   :  { %v1114_v2 = vpop.f32.mrf.mxu0  ;;  %v11342_v62 = vld [vmem:[#allocation6 + $0x6c8] ss:$16 sps:$4 sm:$0xff]  }
 0x1f7   :  { %v1155_v3 = vpop.f32.mrf.mxu1  ;;  %v1240_v4 = vmax.f32 %v1153_v63, 0.0  ;;  %v13105_v8 = vpack.c.bf16 %v1239_v1, %v1239_v1  ;;  %v11347_v63 = vld [vmem:[#allocation6 + $0x6ac] ss:$16 sps:$4 sm:$0xff]   ;;  %v11345_v1 = vld [vmem:[#allocation6 + $0x6a8] ss:$16 sps:$4 sm:$0xff]  }
 0x1f8   :  { %v11350_v2 = vld [vmem:[#allocation6 + $0x68c] ss:$16 sps:$4 sm:$0xff]   ;;  %v11387_v3 = vld [vmem:[#allocation6 + $0x8e0] ss:$16 sps:$4 sm:$0xff]  }
 0x1f9   :  { %v1244_v7 = vpack.c.bf16 %v1240_v4, %v1240_v4  ;;  %v11389_v4 = vld [vmem:[#allocation6 + $0x8e4] ss:$16 sps:$4 sm:$0xff]  }
 0x1fb   :  { %2071 = vmatprep.mubr.bf16.mxu0 %v1244_v7 }
 0x1fc   :  { %2072 = vmatmul.mubr.bf16.vlgmr.msra.gmra.mxu0 %v13105_v8 }
 0x1fd   :  { %2122 = vmatpush1.bf16.msra.mxu0 %v11246_v5  ;;  %2153 = vmatprep.mubr.bf16.mxu0 %v1244_v7  ;;  %v11392_v5 = vld [vmem:[#allocation6 + $0x8c4] ss:$16 sps:$4 sm:$0xff]   ;;  %v11390_v7 = vld [vmem:[#allocation6 + $0x8c0] ss:$16 sps:$4 sm:$0xff]  }
 0x1fe   :  { %2123 = vmatprep.subr.bf16.mxu0 %v11254_v6  ;;  %v11348_v6 = vld [vmem:[#allocation6 + $0x688] ss:$16 sps:$4 sm:$0xff]  }
 0x201   :  { %2124 = vmatpush1.bf16.msra.mxu0 %v11252_v9  ;;  %v11353_v9 = vld [vmem:[#allocation6 + $0x66c] ss:$16 sps:$4 sm:$0xff]  }
 0x202   :  { %2125 = vmatprep.subr.bf16.mxu0 %v11260_v10  ;;  %v11351_v10 = vld [vmem:[#allocation6 + $0x668] ss:$16 sps:$4 sm:$0xff]  }
 0x205   :  { %2126 = vmatpush1.bf16.msra.mxu0 %v11258_v11  ;;  %v11393_v11 = vld [vmem:[#allocation6 + $0x8a0] ss:$16 sps:$4 sm:$0xff]  }
 0x206   :  { %2127 = vmatprep.subr.bf16.mxu0 %v11266_v12  ;;  %v11356_v12 = vld [vmem:[#allocation6 + $0x64c] ss:$16 sps:$4 sm:$0xff]  }
 0x209   :  { %2128 = vmatpush1.bf16.msra.mxu0 %v11264_v17  ;;  %v11398_v17 = vld [vmem:[#allocation6 + $0x884] ss:$16 sps:$4 sm:$0xff]  }
 0x20a   :  { %2129 = vmatprep.subr.bf16.mxu0 %v11272_v18  ;;  %v11354_v18 = vld [vmem:[#allocation6 + $0x648] ss:$16 sps:$4 sm:$0xff]  }
 0x20d   :  { %2130 = vmatpush1.bf16.msra.mxu0 %v11270_v19  ;;  %v11396_v19 = vld [vmem:[#allocation6 + $0x880] ss:$16 sps:$4 sm:$0xff]  }
 0x20e   :  { %2131 = vmatprep.subr.bf16.mxu0 %v11278_v20  ;;  %v11359_v20 = vld [vmem:[#allocation6 + $0x62c] ss:$16 sps:$4 sm:$0xff]  }
 0x211   :  { %2132 = vmatpush1.bf16.msra.mxu0 %v11276_v21  ;;  %v11401_v21 = vld [vmem:[#allocation6 + $0x864] ss:$16 sps:$4 sm:$0xff]  }
 0x212   :  { %2133 = vmatprep.subr.bf16.mxu0 %v11284_v22  ;;  %v11357_v22 = vld [vmem:[#allocation6 + $0x628] ss:$16 sps:$4 sm:$0xff]  }
 0x215   :  { %2134 = vmatpush1.bf16.msra.mxu0 %v11282_v23  ;;  %v11399_v23 = vld [vmem:[#allocation6 + $0x860] ss:$16 sps:$4 sm:$0xff]  }
 0x216   :  { %2135 = vmatprep.subr.bf16.mxu0 %v11290_v24  ;;  %v11362_v24 = vld [vmem:[#allocation6 + $0x60c] ss:$16 sps:$4 sm:$0xff]  }
 0x219   :  { %2136 = vmatpush1.bf16.msra.mxu0 %v11288_v25  ;;  %v11404_v25 = vld [vmem:[#allocation6 + $0x844] ss:$16 sps:$4 sm:$0xff]  }
 0x21a   :  { %2137 = vmatprep.subr.bf16.mxu0 %v11296_v26  ;;  %v11360_v26 = vld [vmem:[#allocation6 + $0x608] ss:$16 sps:$4 sm:$0xff]  }
 0x21d   :  { %2138 = vmatpush2.bf16.msra.mxu0 %v11294_v27  ;;  %v11402_v27 = vld [vmem:[#allocation6 + $0x840] ss:$16 sps:$4 sm:$0xff]  }
 0x21e   :  { %2139 = vmatprep.subr.bf16.mxu0 %v11302_v28  ;;  %v11365_v28 = vld [vmem:[#allocation6 + $0x7ec] ss:$16 sps:$4 sm:$0xff]  }
 0x221   :  { %2140 = vmatpush2.bf16.msra.mxu0 %v11300_v29  ;;  %v11407_v29 = vld [vmem:[#allocation6 + $0x824] ss:$16 sps:$4 sm:$0xff]  }
 0x222   :  { %2141 = vmatprep.subr.bf16.mxu0 %v11308_v30  ;;  %v11363_v30 = vld [vmem:[#allocation6 + $0x7e8] ss:$16 sps:$4 sm:$0xff]  }
 0x225   :  { %2142 = vmatpush2.bf16.msra.mxu0 %v11306_v31  ;;  %v11405_v31 = vld [vmem:[#allocation6 + $0x820] ss:$16 sps:$4 sm:$0xff]  }
 0x226   :  { %2143 = vmatprep.subr.bf16.mxu0 %v11314_v32  ;;  %v11368_v32 = vld [vmem:[#allocation6 + $0x7cc] ss:$16 sps:$4 sm:$0xff]  }
 0x229   :  { %2144 = vmatpush2.bf16.msra.mxu0 %v11312_v33  ;;  %v11410_v33 = vld [vmem:[#allocation6 + $0x804] ss:$16 sps:$4 sm:$0xff]  }
 0x22a   :  { %2145 = vmatprep.subr.bf16.mxu0 %v11320_v34  ;;  %v11366_v34 = vld [vmem:[#allocation6 + $0x7c8] ss:$16 sps:$4 sm:$0xff]  }
 0x22d   :  { %2146 = vmatpush2.bf16.msra.mxu0 %v11318_v35  ;;  %v11408_v35 = vld [vmem:[#allocation6 + $0x800] ss:$16 sps:$4 sm:$0xff]  }
 0x22e   :  { %2147 = vmatprep.subr.bf16.mxu0 %v11326_v36  ;;  %v11371_v36 = vld [vmem:[#allocation6 + $0x7ac] ss:$16 sps:$4 sm:$0xff]  }
 0x230   :  { %v1191_v43 = vpop.f32.mrf.mxu0 }
 0x231   :  { %v1232_v45 = vpop.f32.mrf.mxu1  ;;  %v1192_v47 = vadd.f32 %v1191_v43, %v426_v40  ;;  %2148 = vmatpush2.bf16.msra.mxu0 %v11324_v38  ;;  %v11413_v38 = vld [vmem:[#allocation6 + $0x9e4] ss:$16 sps:$4 sm:$0xff]   ;;  %v11411_v40 = vld [vmem:[#allocation6 + $0x9e0] ss:$16 sps:$4 sm:$0xff]   ;;  %v11372_v43 = vld [vmem:[#allocation6 + $0x788] ss:$16 sps:$4 sm:$0xff]  }
 0x232   :  { %v1193_v48 = vpop.f32.mrf.mxu0  ;;  %2149 = vmatprep.subr.bf16.mxu0 %v11332_v39  ;;  %v11369_v39 = vld [vmem:[#allocation6 + $0x7a8] ss:$16 sps:$4 sm:$0xff]  }
 0x233   :  { %v1234_v49 = vpop.f32.mrf.mxu1  ;;  %v1233_v50 = vadd.f32 %v1232_v45, %v1192_v47  ;;  %v1194_v51 = vadd.f32 %v1193_v48, %v430_v41  ;;  %v11374_v41 = vld [vmem:[#allocation6 + $0x78c] ss:$16 sps:$4 sm:$0xff]   ;;  %v11414_v45 = vld [vmem:[#allocation6 + $0x9c0] ss:$16 sps:$4 sm:$0xff]   ;;  %v11419_v47 = vld [vmem:[#allocation6 + $0x9a4] ss:$16 sps:$4 sm:$0xff]  }
 0x234   :  { %v1195_v54 = vpop.f32.mrf.mxu0  ;;  %v11375_v48 = vld [vmem:[#allocation6 + $0x768] ss:$16 sps:$4 sm:$0xff]  }
 0x235   :  { %v1236_v55 = vpop.f32.mrf.mxu1  ;;  %v1235_v56 = vadd.f32 %v1234_v49, %v1194_v51  ;;  %2150 = vmatpush2.bf16.msra.mxu0 %v11330_v42  ;;  %v1241_v57 = vmax.f32 %v1233_v50, 0.0  ;;  %v11416_v42 = vld [vmem:[#allocation6 + $0x9c4] ss:$16 sps:$4 sm:$0xff]   ;;  %v11417_v49 = vld [vmem:[#allocation6 + $0x9a0] ss:$16 sps:$4 sm:$0xff]  }
 0x236   :  { %v1196_v44 = vpop.f32.mrf.mxu0  ;;  %2151 = vmatprep.subr.bf16.mxu0 %v11338_v46  ;;  %v11377_v46 = vld [vmem:[#allocation6 + $0x76c] ss:$16 sps:$4 sm:$0xff]   ;;  %v11422_v51 = vld [vmem:[#allocation6 + $0x984] ss:$16 sps:$4 sm:$0xff]   ;;  %v11420_v54 = vld [vmem:[#allocation6 + $0x980] ss:$16 sps:$4 sm:$0xff]  }
 0x237   :  { %v1237_v58 = vpop.f32.mrf.mxu1  ;;  %v1242_v53 = vmax.f32 %v1235_v56, 0.0  ;;  %v13112_v61 = vpack.c.bf16 %v1241_v57, %v1241_v57  ;;  %v11380_v50 = vld [vmem:[#allocation6 + $0x74c] ss:$16 sps:$4 sm:$0xff]   ;;  %v11425_v56 = vld [vmem:[#allocation6 + $0x964] ss:$16 sps:$4 sm:$0xff]  }
 0x238   :  { %v11383_v55 = vld [vmem:[#allocation6 + $0x72c] ss:$16 sps:$4 sm:$0xff]   ;;  %v11381_v57 = vld [vmem:[#allocation6 + $0x728] ss:$16 sps:$4 sm:$0xff]   ;;  %v11423_v44 = vld [vmem:[#allocation6 + $0x960] ss:$16 sps:$4 sm:$0xff]  }
 0x239   :  { %v1246_v60 = vpack.c.bf16 %v1242_v53, %v1242_v53  ;;  %2152 = vmatpush2.bf16.msra.mxu0 %v11336_v52  ;;  %v11378_v52 = vld [vmem:[#allocation6 + $0x748] ss:$16 sps:$4 sm:$0xff]   ;;  %v11386_v58 = vld [vmem:[#allocation6 + $0x70c] ss:$16 sps:$4 sm:$0xff]   ;;  %v11428_v53 = vld [vmem:[#allocation6 + $0x944] ss:$16 sps:$4 sm:$0xff]  }
 0x23a   :  { %3003 = vmatprep.subr.bf16.mxu0 %v11389_v4  ;;  %v11440_v4 = vld [vmem:[#allocation6 + $0x8ec] ss:$16 sps:$4 sm:$0xff]  }
 0x23b   :  { %2112 = vmatprep.mubr.bf16.mxu1 %v1246_v60 }
 0x23c   :  { %2113 = vmatmul.mubr.bf16.vlgmr.msra.gmra.mxu1 %v13112_v61  ;;  %2154 = vmatmul.mubr.bf16.vlgmr.msra.gmra.mxu0 %v13105_v8  ;;  %v11395_v8 = vld [vmem:[#allocation6 + $0x8a4] ss:$16 sps:$4 sm:$0xff]  }
 0x23d   :  { %2163 = vmatpush1.bf16.msra.mxu1 %v11339_v37  ;;  %2194 = vmatprep.mubr.bf16.mxu1 %v1246_v60  ;;  %v11384_v37 = vld [vmem:[#allocation6 + $0x708] ss:$16 sps:$4 sm:$0xff]   ;;  %v11431_v60 = vld [vmem:[#allocation6 + $0x924] ss:$16 sps:$4 sm:$0xff]  }
 0x23e   :  { %2164 = vmatprep.subr.bf16.mxu1 %v11344_v59  ;;  %3004 = vmatpush1.bf16.msra.mxu0 %v11387_v3  ;;  %v11426_v59 = vld [vmem:[#allocation6 + $0x940] ss:$16 sps:$4 sm:$0xff]   ;;  %v11437_v3 = vld [vmem:[#allocation6 + $0xae4] ss:$16 sps:$4 sm:$0xff]  }
 0x23f   :  { %3005 = vmatprep.subr.bf16.mxu0 %v11392_v5  ;;  %v11441_v5 = vld [vmem:[#allocation6 + $0xac0] ss:$16 sps:$4 sm:$0xff]  }
 0x241   :  { %2165 = vmatpush1.bf16.msra.mxu1 %v11342_v62  ;;  %v11429_v62 = vld [vmem:[#allocation6 + $0x920] ss:$16 sps:$4 sm:$0xff]  }
 0x242   :  { %2166 = vmatprep.subr.bf16.mxu1 %v11347_v63  ;;  %3006 = vmatpush1.bf16.msra.mxu0 %v11390_v7  ;;  %v11434_v63 = vld [vmem:[#allocation6 + $0x904] ss:$16 sps:$4 sm:$0xff]   ;;  %v11447_v7 = vld [vmem:[#allocation6 + $0xaa0] ss:$16 sps:$4 sm:$0xff]  }
 0x243   :  { %3007 = vmatprep.subr.bf16.mxu0 %v11395_v8  ;;  %v11455_v8 = vld [vmem:[#allocation6 + $0xa84] ss:$16 sps:$4 sm:$0xff]  }
 0x245   :  { %2167 = vmatpush1.bf16.msra.mxu1 %v11345_v1  ;;  %v11432_v1 = vld [vmem:[#allocation6 + $0x900] ss:$16 sps:$4 sm:$0xff]  }
 0x246   :  { %2168 = vmatprep.subr.bf16.mxu1 %v11350_v2  ;;  %3008 = vmatpush1.bf16.msra.mxu0 %v11393_v11  ;;  %v11435_v2 = vld [vmem:[#allocation6 + $0xae0] ss:$16 sps:$4 sm:$0xff]   ;;  %v11461_v11 = vld [vmem:[#allocation6 + $0xa64] ss:$16 sps:$4 sm:$0xff]  }
 0x247   :  { %3009 = vmatprep.subr.bf16.mxu0 %v11398_v17  ;;  %v11467_v17 = vld [vmem:[#allocation6 + $0xa44] ss:$16 sps:$4 sm:$0xff]  }
 0x249   :  { %2169 = vmatpush1.bf16.msra.mxu1 %v11348_v6  ;;  %v11443_v6 = vld [vmem:[#allocation6 + $0xac4] ss:$16 sps:$4 sm:$0xff]  }
 0x24a   :  { %2170 = vmatprep.subr.bf16.mxu1 %v11353_v9  ;;  %3010 = vmatpush1.bf16.msra.mxu0 %v11396_v19  ;;  %v11453_v9 = vld [vmem:[#allocation6 + $0xa80] ss:$16 sps:$4 sm:$0xff]   ;;  %v11473_v19 = vld [vmem:[#allocation6 + $0xa24] ss:$16 sps:$4 sm:$0xff]  }
 0x24b   :  { %3011 = vmatprep.subr.bf16.mxu0 %v11401_v21  ;;  %v11479_v21 = vld [vmem:[#allocation6 + $0xa04] ss:$16 sps:$4 sm:$0xff]  }
 0x24d   :  { %2171 = vmatpush1.bf16.msra.mxu1 %v11351_v10  ;;  %v11459_v10 = vld [vmem:[#allocation6 + $0xa60] ss:$16 sps:$4 sm:$0xff]  }
 0x24e   :  { %2172 = vmatprep.subr.bf16.mxu1 %v11356_v12  ;;  %3012 = vmatpush1.bf16.msra.mxu0 %v11399_v23  ;;  %v11465_v12 = vld [vmem:[#allocation6 + $0xa40] ss:$16 sps:$4 sm:$0xff]   ;;  %v11485_v23 = vld [vmem:[#allocation6 + $0xbe4] ss:$16 sps:$4 sm:$0xff]  }
 0x24f   :  { %3013 = vmatprep.subr.bf16.mxu0 %v11404_v25  ;;  %v11491_v25 = vld [vmem:[#allocation6 + $0xbc4] ss:$16 sps:$4 sm:$0xff]  }
 0x251   :  { %2173 = vmatpush1.bf16.msra.mxu1 %v11354_v18  ;;  %v11471_v18 = vld [vmem:[#allocation6 + $0xa20] ss:$16 sps:$4 sm:$0xff]  }
 0x252   :  { %2174 = vmatprep.subr.bf16.mxu1 %v11359_v20  ;;  %3014 = vmatpush1.bf16.msra.mxu0 %v11402_v27  ;;  %v11477_v20 = vld [vmem:[#allocation6 + $0xa00] ss:$16 sps:$4 sm:$0xff]   ;;  %v11497_v27 = vld [vmem:[#allocation6 + $0xba4] ss:$16 sps:$4 sm:$0xff]  }
 0x253   :  { %3015 = vmatprep.subr.bf16.mxu0 %v11407_v29  ;;  %v11503_v29 = vld [vmem:[#allocation6 + $0xb84] ss:$16 sps:$4 sm:$0xff]  }
 0x255   :  { %2175 = vmatpush1.bf16.msra.mxu1 %v11357_v22  ;;  %v11483_v22 = vld [vmem:[#allocation6 + $0xbe0] ss:$16 sps:$4 sm:$0xff]  }
 0x256   :  { %2176 = vmatprep.subr.bf16.mxu1 %v11362_v24  ;;  %3016 = vmatpush1.bf16.msra.mxu0 %v11405_v31  ;;  %v11489_v24 = vld [vmem:[#allocation6 + $0xbc0] ss:$16 sps:$4 sm:$0xff]   ;;  %v11509_v31 = vld [vmem:[#allocation6 + $0xb64] ss:$16 sps:$4 sm:$0xff]  }
 0x257   :  { %3017 = vmatprep.subr.bf16.mxu0 %v11410_v33  ;;  %v11515_v33 = vld [vmem:[#allocation6 + $0xb44] ss:$16 sps:$4 sm:$0xff]  }
 0x259   :  { %2177 = vmatpush1.bf16.msra.mxu1 %v11360_v26  ;;  %v11495_v26 = vld [vmem:[#allocation6 + $0xba0] ss:$16 sps:$4 sm:$0xff]  }
 0x25a   :  { %2178 = vmatprep.subr.bf16.mxu1 %v11365_v28  ;;  %3018 = vmatpush1.bf16.msra.mxu0 %v11408_v35  ;;  %v11501_v28 = vld [vmem:[#allocation6 + $0xb80] ss:$16 sps:$4 sm:$0xff]  }
 0x25b   :  { %3019 = vmatprep.subr.bf16.mxu0 %v11413_v38 }
 0x25d   :  { %2179 = vmatpush2.bf16.msra.mxu1 %v11363_v30  ;;  %v11507_v30 = vld [vmem:[#allocation6 + $0xb60] ss:$16 sps:$4 sm:$0xff]  }
 0x25e   :  { %2180 = vmatprep.subr.bf16.mxu1 %v11368_v32  ;;  %3020 = vmatpush2.bf16.msra.mxu0 %v11411_v40  ;;  %v11513_v32 = vld [vmem:[#allocation6 + $0xb40] ss:$16 sps:$4 sm:$0xff]  }
 0x25f   :  { %3021 = vmatprep.subr.bf16.mxu0 %v11416_v42 }
 0x261   :  { %2181 = vmatpush2.bf16.msra.mxu1 %v11366_v34  ;;  %v11521_v34 = vld [vmem:[#allocation6 + $0xb24] ss:$16 sps:$4 sm:$0xff]  }
 0x262   :  { %2182 = vmatprep.subr.bf16.mxu1 %v11371_v36  ;;  %3022 = vmatpush2.bf16.msra.mxu0 %v11414_v45  ;;  %v11519_v36 = vld [vmem:[#allocation6 + $0xb20] ss:$16 sps:$4 sm:$0xff]   ;;  %v13117_v45 = vld [vmem:[#allocation7 + $0x4] sm:$0xf] }
 0x263   :  { %3023 = vmatprep.subr.bf16.mxu0 %v11419_v47  ;;  %v1386_v47 = vrot.slane %v13117_v45, %v13083_v15 }
 0x265   :  { %2183 = vmatpush2.bf16.msra.mxu1 %v11369_v39  ;;  %v11527_v39 = vld [vmem:[#allocation6 + $0xb04] ss:$16 sps:$4 sm:$0xff]  }
 0x266   :  { %2184 = vmatprep.subr.bf16.mxu1 %v11374_v41  ;;  %3024 = vmatpush2.bf16.msra.mxu0 %v11417_v49  ;;  %v11525_v41 = vld [vmem:[#allocation6 + $0xb00] ss:$16 sps:$4 sm:$0xff]  }
 0x267   :  { %3025 = vmatprep.subr.bf16.mxu0 %v11422_v51 }
 0x269   :  { %2185 = vmatpush2.bf16.msra.mxu1 %v11372_v43  ;;  %v11533_v43 = vld [vmem:[#allocation6 + $0xaec] ss:$16 sps:$4 sm:$0xff]  }
 0x26a   :  { %2186 = vmatprep.subr.bf16.mxu1 %v11377_v46  ;;  %3026 = vmatpush2.bf16.msra.mxu0 %v11420_v54  ;;  %v1382_v46 = vrot.slane %v13117_v45, %v13079_v13 }
 0x26b   :  { %3027 = vmatprep.subr.bf16.mxu0 %v11425_v56 }
 0x26d   :  { %2187 = vmatpush2.bf16.msra.mxu1 %v11375_v48 }
 0x26e   :  { %2188 = vmatprep.subr.bf16.mxu1 %v11380_v50  ;;  %3028 = vmatpush2.bf16.msra.mxu0 %v11423_v44 }
 0x26f   :  { %3029 = vmatprep.subr.bf16.mxu0 %v11428_v53 }
 0x271   :  { %2189 = vmatpush2.bf16.msra.mxu1 %v11378_v52 }
 0x272   :  { %2190 = vmatprep.subr.bf16.mxu1 %v11383_v55  ;;  %3030 = vmatpush2.bf16.msra.mxu0 %v11426_v59 }
 0x273   :  { %3031 = vmatprep.subr.bf16.mxu0 %v11431_v60 }
 0x275   :  { %2191 = vmatpush2.bf16.msra.mxu1 %v11381_v57 }
 0x276   :  { %2192 = vmatprep.subr.bf16.mxu1 %v11386_v58  ;;  %3032 = vmatpush2.bf16.msra.mxu0 %v11429_v62  ;;  %v11438_v62 = vld [vmem:[#allocation6 + $0x8e8] ss:$16 sps:$4 sm:$0xff]  }
 0x277   :  { %3033 = vmatprep.subr.bf16.mxu0 %v11434_v63 }
 0x279   :  { %2193 = vmatpush2.bf16.msra.mxu1 %v11384_v37 }
 0x27a   :  { %3034 = vmatpush2.bf16.msra.mxu0 %v11432_v1  ;;  %3044 = vmatprep.subr.bf16.mxu1 %v11437_v3  ;;  %v11446_v1 = vld [vmem:[#allocation6 + $0x8cc] ss:$16 sps:$4 sm:$0xff]  }
 0x27b   :  { %3085 = vmatprep.subr.bf16.mxu0 %v11440_v4  ;;  %v11452_v3 = vld [vmem:[#allocation6 + $0x8ac] ss:$16 sps:$4 sm:$0xff]   ;;  %v11450_v4 = vld [vmem:[#allocation6 + $0x8a8] ss:$16 sps:$4 sm:$0xff]  }
 0x27c   :  { %2195 = vmatmul.mubr.bf16.vlgmr.msra.gmra.mxu1 %v13112_v61  ;;  %v11449_v61 = vld [vmem:[#allocation6 + $0xaa4] ss:$16 sps:$4 sm:$0xff]  }
 0x27d   :  { %3045 = vmatpush1.bf16.msra.mxu1 %v11435_v2  ;;  %v11444_v2 = vld [vmem:[#allocation6 + $0x8c8] ss:$16 sps:$4 sm:$0xff]  }
 0x27e   :  { %3046 = vmatprep.subr.bf16.mxu1 %v11443_v6  ;;  %v11456_v6 = vld [vmem:[#allocation6 + $0x888] ss:$16 sps:$4 sm:$0xff]  }
 0x281   :  { %3047 = vmatpush1.bf16.msra.mxu1 %v11441_v5  ;;  %v11458_v5 = vld [vmem:[#allocation6 + $0x88c] ss:$16 sps:$4 sm:$0xff]  }
 0x282   :  { %3048 = vmatprep.subr.bf16.mxu1 %v11449_v61  ;;  %v11462_v61 = vld [vmem:[#allocation6 + $0x868] ss:$16 sps:$4 sm:$0xff]  }
 0x285   :  { %3049 = vmatpush1.bf16.msra.mxu1 %v11447_v7  ;;  %v11464_v7 = vld [vmem:[#allocation6 + $0x86c] ss:$16 sps:$4 sm:$0xff]  }
 0x286   :  { %3050 = vmatprep.subr.bf16.mxu1 %v11455_v8  ;;  %v11468_v8 = vld [vmem:[#allocation6 + $0x848] ss:$16 sps:$4 sm:$0xff]  }
 0x289   :  { %3051 = vmatpush1.bf16.msra.mxu1 %v11453_v9  ;;  %v11470_v9 = vld [vmem:[#allocation6 + $0x84c] ss:$16 sps:$4 sm:$0xff]  }
 0x28a   :  { %3052 = vmatprep.subr.bf16.mxu1 %v11461_v11  ;;  %v11474_v11 = vld [vmem:[#allocation6 + $0x828] ss:$16 sps:$4 sm:$0xff]  }
 0x28d   :  { %3053 = vmatpush1.bf16.msra.mxu1 %v11459_v10  ;;  %v11476_v10 = vld [vmem:[#allocation6 + $0x82c] ss:$16 sps:$4 sm:$0xff]  }
 0x28e   :  { %3054 = vmatprep.subr.bf16.mxu1 %v11467_v17  ;;  %v11480_v17 = vld [vmem:[#allocation6 + $0x808] ss:$16 sps:$4 sm:$0xff]  }
 0x291   :  { %3055 = vmatpush1.bf16.msra.mxu1 %v11465_v12  ;;  %v11482_v12 = vld [vmem:[#allocation6 + $0x80c] ss:$16 sps:$4 sm:$0xff]  }
 0x292   :  { %3056 = vmatprep.subr.bf16.mxu1 %v11473_v19  ;;  %v11486_v19 = vld [vmem:[#allocation6 + $0x9e8] ss:$16 sps:$4 sm:$0xff]  }
 0x295   :  { %3057 = vmatpush1.bf16.msra.mxu1 %v11471_v18  ;;  %v11488_v18 = vld [vmem:[#allocation6 + $0x9ec] ss:$16 sps:$4 sm:$0xff]  }
 0x296   :  { %3058 = vmatprep.subr.bf16.mxu1 %v11479_v21  ;;  %v11492_v21 = vld [vmem:[#allocation6 + $0x9c8] ss:$16 sps:$4 sm:$0xff]  }
 0x299   :  { %3059 = vmatpush1.bf16.msra.mxu1 %v11477_v20  ;;  %v11494_v20 = vld [vmem:[#allocation6 + $0x9cc] ss:$16 sps:$4 sm:$0xff]  }
 0x29a   :  { %3060 = vmatprep.subr.bf16.mxu1 %v11485_v23  ;;  %v11498_v23 = vld [vmem:[#allocation6 + $0x9a8] ss:$16 sps:$4 sm:$0xff]  }
 0x29d   :  { %3061 = vmatpush2.bf16.msra.mxu1 %v11483_v22  ;;  %v11500_v22 = vld [vmem:[#allocation6 + $0x9ac] ss:$16 sps:$4 sm:$0xff]  }
 0x29e   :  { %3062 = vmatprep.subr.bf16.mxu1 %v11491_v25  ;;  %v11504_v25 = vld [vmem:[#allocation6 + $0x988] ss:$16 sps:$4 sm:$0xff]  }
 0x2a1   :  { %3063 = vmatpush2.bf16.msra.mxu1 %v11489_v24  ;;  %v11506_v24 = vld [vmem:[#allocation6 + $0x98c] ss:$16 sps:$4 sm:$0xff]  }
 0x2a2   :  { %3064 = vmatprep.subr.bf16.mxu1 %v11497_v27  ;;  %v11510_v27 = vld [vmem:[#allocation6 + $0x968] ss:$16 sps:$4 sm:$0xff]  }
 0x2a5   :  { %3065 = vmatpush2.bf16.msra.mxu1 %v11495_v26  ;;  %v11512_v26 = vld [vmem:[#allocation6 + $0x96c] ss:$16 sps:$4 sm:$0xff]  }
 0x2a6   :  { %3066 = vmatprep.subr.bf16.mxu1 %v11503_v29  ;;  %v1390_v29 = vrot.slane %v13117_v45, %v13081_v14 }
 0x2a9   :  { %3067 = vmatpush2.bf16.msra.mxu1 %v11501_v28  ;;  %v11518_v28 = vld [vmem:[#allocation6 + $0x94c] ss:$16 sps:$4 sm:$0xff]  }
 0x2aa   :  { %3068 = vmatprep.subr.bf16.mxu1 %v11509_v31  ;;  %v11524_v31 = vld [vmem:[#allocation6 + $0x92c] ss:$16 sps:$4 sm:$0xff]  }
 0x2ad   :  { %3069 = vmatpush2.bf16.msra.mxu1 %v11507_v30  ;;  %v11516_v30 = vld [vmem:[#allocation6 + $0x948] ss:$16 sps:$4 sm:$0xff]  }
 0x2ae   :  { %3070 = vmatprep.subr.bf16.mxu1 %v11515_v33 }
 0x2b1   :  { %3071 = vmatpush2.bf16.msra.mxu1 %v11513_v32  ;;  %v1394_v32 = vrot.slane %v13117_v45, %v13085_v16 }
 0x2b2   :  { %3072 = vmatprep.subr.bf16.mxu1 %v11521_v34  ;;  %v11522_v34 = vld [vmem:[#allocation6 + $0x928] ss:$16 sps:$4 sm:$0xff]  }
 0x2b5   :  { %3073 = vmatpush2.bf16.msra.mxu1 %v11519_v36  ;;  %v11530_v36 = vld [vmem:[#allocation6 + $0x90c] ss:$16 sps:$4 sm:$0xff]  }
 0x2b6   :  { %3074 = vmatprep.subr.bf16.mxu1 %v11527_v39 }
 0x2b9   :  { %3075 = vmatpush2.bf16.msra.mxu1 %v11525_v41 }
 0x2ba   :  { %3126 = vmatprep.subr.bf16.mxu1 %v11533_v43 }
 0x2bc   :  { %v2073_v35 = vpop.f32.mrf.mxu0 }
 0x2bd   :  { %v2074_v48 = vadd.f32 %v2073_v35, %v1382_v46 }
 0x2be   :  { %v2075_v38 = vpop.f32.mrf.mxu0 }
 0x2bf   :  { %v2076_v51 = vadd.f32 %v2075_v38, %v1386_v47 }
 0x2c0   :  { %v2077_v40 = vpop.f32.mrf.mxu0 }
 0x2c2   :  { %v2078_v42 = vpop.f32.mrf.mxu0 }
 0x2c3   :  { %v11528_v42 = vld [vmem:[#allocation6 + $0x908] ss:$16 sps:$4 sm:$0xff]  }
 0x2fc   :  { %v2114_v49 = vpop.f32.mrf.mxu1  ;;  %v13123_v50 = vpop.f32.mrf.mxu0 }
 0x2fd   :  { %v2115_v52 = vadd.f32 %v2114_v49, %v2074_v48  ;;  %v2156_v33 = vadd.f32 %v13123_v50, %v1390_v29  ;;  %v11531_v49 = vld [vmem:[#allocation6 + $0xae8] ss:$16 sps:$4 sm:$0xff]   ;;  %v11608_v29 = vld [vmem:[#allocation9 + $0x1c4] ss:$16 sps:$4 sm:$0xff]  }
 0x2fe   :  { %v2116_v54 = vpop.f32.mrf.mxu1  ;;  %v13125_v55 = vpop.f32.mrf.mxu0 }
 0x2ff   :  { %v2117_v56 = vadd.f32 %v2116_v54, %v2076_v51  ;;  %v2203_v57 = vmax.f32 %v2115_v52, 0.0  ;;  %v2158_v38 = vadd.f32 %v13125_v55, %v1394_v32  ;;  %v11536_v51 = vld [vmem:[#allocation6 + $0xacc] ss:$16 sps:$4 sm:$0xff]   ;;  %v11534_v52 = vld [vmem:[#allocation6 + $0xac8] ss:$16 sps:$4 sm:$0xff]  }
 0x300   :  { %v2118_v44 = vpop.f32.mrf.mxu1  ;;  %v2159_v58 = vpop.f32.mrf.mxu0  ;;  %v11539_v54 = vld [vmem:[#allocation6 + $0xaac] ss:$16 sps:$4 sm:$0xff]   ;;  %v11537_v55 = vld [vmem:[#allocation6 + $0xaa8] ss:$16 sps:$4 sm:$0xff]  }
 0x301   :  { %v2204_v53 = vmax.f32 %v2117_v56, 0.0  ;;  %v13127_v63 = vpack.c.bf16 %v2203_v57, %v2203_v57  ;;  %v11542_v56 = vld [vmem:[#allocation6 + $0xa8c] ss:$16 sps:$4 sm:$0xff]   ;;  %v11581_v44 = vld [vmem:[#allocation9 + $0xe4] ss:$16 sps:$4 sm:$0xff]  }
 0x302   :  { %v2119_v37 = vpop.f32.mrf.mxu1  ;;  %v2160_v59 = vpop.f32.mrf.mxu0  ;;  %v11579_v57 = vld [vmem:[#allocation9 + $0xe0] ss:$16 sps:$4 sm:$0xff]   ;;  %v11584_v58 = vld [vmem:[#allocation9 + $0xc4] ss:$16 sps:$4 sm:$0xff]  }
 0x303   :  { %v2208_v60 = vpack.c.bf16 %v2204_v53, %v2204_v53  ;;  %v11540_v53 = vld [vmem:[#allocation6 + $0xa88] ss:$16 sps:$4 sm:$0xff]   ;;  %v11582_v37 = vld [vmem:[#allocation9 + $0xc0] ss:$16 sps:$4 sm:$0xff]  }
 0x304   :  { %v11545_v59 = vld [vmem:[#allocation6 + $0xa6c] ss:$16 sps:$4 sm:$0xff]  }
 0x305   :  { %3035 = vmatprep.mubr.bf16.mxu0 %v2208_v60  ;;  %v11569_v32 = vld [vmem:[#allocation6 + $0xb6c] ss:$16 sps:$4 sm:$0xff]  }
 0x306   :  { %3036 = vmatmul.mubr.bf16.vlgmr.msra.gmra.mxu0 %v13127_v63 }
 0x307   :  { %3086 = vmatpush1.bf16.msra.mxu0 %v11438_v62  ;;  %3117 = vmatprep.mubr.bf16.mxu0 %v2208_v60  ;;  %v11587_v60 = vld [vmem:[#allocation9 + $0xa4] ss:$16 sps:$4 sm:$0xff]   ;;  %v11543_v62 = vld [vmem:[#allocation6 + $0xa68] ss:$16 sps:$4 sm:$0xff]  }
 0x308   :  { %3087 = vmatprep.subr.bf16.mxu0 %v11446_v1  ;;  %v11548_v1 = vld [vmem:[#allocation6 + $0xa4c] ss:$16 sps:$4 sm:$0xff]  }
 0x30b   :  { %3088 = vmatpush1.bf16.msra.mxu0 %v11444_v2  ;;  %v11590_v2 = vld [vmem:[#allocation9 + $0x84] ss:$16 sps:$4 sm:$0xff]  }
 0x30c   :  { %3089 = vmatprep.subr.bf16.mxu0 %v11452_v3  ;;  %v11546_v3 = vld [vmem:[#allocation6 + $0xa48] ss:$16 sps:$4 sm:$0xff]  }
 0x30f   :  { %3090 = vmatpush1.bf16.msra.mxu0 %v11450_v4  ;;  %v11588_v4 = vld [vmem:[#allocation9 + $0x80] ss:$16 sps:$4 sm:$0xff]  }
 0x310   :  { %3091 = vmatprep.subr.bf16.mxu0 %v11458_v5  ;;  %v11551_v5 = vld [vmem:[#allocation6 + $0xa2c] ss:$16 sps:$4 sm:$0xff]  }
 0x313   :  { %3092 = vmatpush1.bf16.msra.mxu0 %v11456_v6  ;;  %v11593_v6 = vld [vmem:[#allocation9 + $0x64] ss:$16 sps:$4 sm:$0xff]  }
 0x314   :  { %3093 = vmatprep.subr.bf16.mxu0 %v11464_v7  ;;  %v11549_v7 = vld [vmem:[#allocation6 + $0xa28] ss:$16 sps:$4 sm:$0xff]  }
 0x317   :  { %3094 = vmatpush1.bf16.msra.mxu0 %v11462_v61  ;;  %v11591_v61 = vld [vmem:[#allocation9 + $0x60] ss:$16 sps:$4 sm:$0xff]  }
 0x318   :  { %3095 = vmatprep.subr.bf16.mxu0 %v11470_v9  ;;  %v11554_v9 = vld [vmem:[#allocation6 + $0xa0c] ss:$16 sps:$4 sm:$0xff]  }
 0x31b   :  { %3096 = vmatpush1.bf16.msra.mxu0 %v11468_v8  ;;  %v11596_v8 = vld [vmem:[#allocation9 + $0x44] ss:$16 sps:$4 sm:$0xff]  }
 0x31c   :  { %3097 = vmatprep.subr.bf16.mxu0 %v11476_v10  ;;  %v11552_v10 = vld [vmem:[#allocation6 + $0xa08] ss:$16 sps:$4 sm:$0xff]  }
 0x31f   :  { %3098 = vmatpush1.bf16.msra.mxu0 %v11474_v11  ;;  %v11594_v11 = vld [vmem:[#allocation9 + $0x40] ss:$16 sps:$4 sm:$0xff]  }
 0x320   :  { %3099 = vmatprep.subr.bf16.mxu0 %v11482_v12  ;;  %v11557_v12 = vld [vmem:[#allocation6 + $0xbec] ss:$16 sps:$4 sm:$0xff]  }
 0x323   :  { %3100 = vmatpush1.bf16.msra.mxu0 %v11480_v17  ;;  %v11599_v17 = vld [vmem:[#allocation9 + $0x24] ss:$16 sps:$4 sm:$0xff]  }
 0x324   :  { %3101 = vmatprep.subr.bf16.mxu0 %v11488_v18  ;;  %v11555_v18 = vld [vmem:[#allocation6 + $0xbe8] ss:$16 sps:$4 sm:$0xff]  }
 0x327   :  { %3102 = vmatpush2.bf16.msra.mxu0 %v11486_v19  ;;  %v11597_v19 = vld [vmem:[#allocation9 + $0x20] ss:$16 sps:$4 sm:$0xff]  }
 0x328   :  { %3103 = vmatprep.subr.bf16.mxu0 %v11494_v20  ;;  %v11560_v20 = vld [vmem:[#allocation6 + $0xbcc] ss:$16 sps:$4 sm:$0xff]  }
 0x32b   :  { %3104 = vmatpush2.bf16.msra.mxu0 %v11492_v21  ;;  %v11602_v21 = vld [vmem:[#allocation9 + $0x4] ss:$16 sps:$4 sm:$0xff]  }
 0x32c   :  { %3105 = vmatprep.subr.bf16.mxu0 %v11500_v22  ;;  %v11558_v22 = vld [vmem:[#allocation6 + $0xbc8] ss:$16 sps:$4 sm:$0xff]  }
 0x32f   :  { %3106 = vmatpush2.bf16.msra.mxu0 %v11498_v23  ;;  %v11600_v23 = vld [vmem:[#allocation9] ss:$16 sps:$4 sm:$0xff]  }
 0x330   :  { %3107 = vmatprep.subr.bf16.mxu0 %v11506_v24  ;;  %v11563_v24 = vld [vmem:[#allocation6 + $0xbac] ss:$16 sps:$4 sm:$0xff]  }
 0x333   :  { %3108 = vmatpush2.bf16.msra.mxu0 %v11504_v25  ;;  %v11605_v25 = vld [vmem:[#allocation9 + $0x1e4] ss:$16 sps:$4 sm:$0xff]  }
 0x334   :  { %3109 = vmatprep.subr.bf16.mxu0 %v11512_v26  ;;  %v11561_v26 = vld [vmem:[#allocation6 + $0xba8] ss:$16 sps:$4 sm:$0xff]  }
 0x337   :  { %3110 = vmatpush2.bf16.msra.mxu0 %v11510_v27  ;;  %v11603_v27 = vld [vmem:[#allocation9 + $0x1e0] ss:$16 sps:$4 sm:$0xff]  }
 0x338   :  { %3111 = vmatprep.subr.bf16.mxu0 %v11518_v28  ;;  %v11566_v28 = vld [vmem:[#allocation6 + $0xb8c] ss:$16 sps:$4 sm:$0xff]  }
 0x33b   :  { %3112 = vmatpush2.bf16.msra.mxu0 %v11516_v30  ;;  %v11564_v30 = vld [vmem:[#allocation6 + $0xb88] ss:$16 sps:$4 sm:$0xff]  }
 0x33c   :  { %v2196_v35 = vpop.f32.mrf.mxu1  ;;  %3113 = vmatprep.subr.bf16.mxu0 %v11524_v31  ;;  %v11606_v31 = vld [vmem:[#allocation9 + $0x1c0] ss:$16 sps:$4 sm:$0xff]  }
 0x33d   :  { %v2197_v39 = vadd.f32 %v2196_v35, %v2156_v33  ;;  %v11611_v33 = vld [vmem:[#allocation9 + $0x1a4] ss:$16 sps:$4 sm:$0xff]   ;;  %v11609_v35 = vld [vmem:[#allocation9 + $0x1a0] ss:$16 sps:$4 sm:$0xff]  }
 0x33e   :  { %v2198_v40 = vpop.f32.mrf.mxu1 }
 0x33f   :  { %v2199_v41 = vadd.f32 %v2198_v40, %v2158_v38  ;;  %3114 = vmatpush2.bf16.msra.mxu0 %v11522_v34  ;;  %v2205_v43 = vmax.f32 %v2197_v39, 0.0  ;;  %v11567_v34 = vld [vmem:[#allocation6 + $0xb68] ss:$16 sps:$4 sm:$0xff]   ;;  %v11614_v38 = vld [vmem:[#allocation9 + $0x184] ss:$16 sps:$4 sm:$0xff]  }
 0x340   :  { %v2200_v46 = vpop.f32.mrf.mxu1  ;;  %3115 = vmatprep.subr.bf16.mxu0 %v11530_v36  ;;  %v11572_v36 = vld [vmem:[#allocation6 + $0xb4c] ss:$16 sps:$4 sm:$0xff]   ;;  %v11570_v39 = vld [vmem:[#allocation6 + $0xb48] ss:$16 sps:$4 sm:$0xff]  }
 0x341   :  { %v2206_v47 = vmax.f32 %v2199_v41, 0.0  ;;  %v13136_v50 = vpack.c.bf16 %v2205_v43, %v2205_v43  ;;  %v11612_v40 = vld [vmem:[#allocation9 + $0x180] ss:$16 sps:$4 sm:$0xff]   ;;  %v11573_v43 = vld [vmem:[#allocation6 + $0xb28] ss:$16 sps:$4 sm:$0xff]  }
 0x342   :  { %v2201_v48 = vpop.f32.mrf.mxu1  ;;  %v11575_v41 = vld [vmem:[#allocation6 + $0xb2c] ss:$16 sps:$4 sm:$0xff]  }
 0x343   :  { %v2210_v45 = vpack.c.bf16 %v2206_v47, %v2206_v47  ;;  %3116 = vmatpush2.bf16.msra.mxu0 %v11528_v42  ;;  %v11617_v42 = vld [vmem:[#allocation9 + $0x164] ss:$16 sps:$4 sm:$0xff]   ;;  %v11615_v46 = vld [vmem:[#allocation9 + $0x160] ss:$16 sps:$4 sm:$0xff]  }
 0x344   :  { %3966 = vmatprep.subr.bf16.mxu0 %v11581_v44  ;;  %v11578_v47 = vld [vmem:[#allocation6 + $0xb0c] ss:$16 sps:$4 sm:$0xff]   ;;  %v11620_v48 = vld [vmem:[#allocation9 + $0x144] ss:$16 sps:$4 sm:$0xff]   ;;  %v11632_v44 = vld [vmem:[#allocation9 + $0xec] ss:$16 sps:$4 sm:$0xff]  }
 0x345   :  { %3076 = vmatprep.mubr.bf16.mxu1 %v2210_v45 }
 0x346   :  { %3077 = vmatmul.mubr.bf16.vlgmr.msra.gmra.mxu1 %v13136_v50  ;;  %3118 = vmatmul.mubr.bf16.vlgmr.msra.gmra.mxu0 %v13127_v63  ;;  %v11585_v63 = vld [vmem:[#allocation9 + $0xa0] ss:$16 sps:$4 sm:$0xff]  }
 0x347   :  { %3127 = vmatpush1.bf16.msra.mxu1 %v11531_v49  ;;  %3158 = vmatprep.mubr.bf16.mxu1 %v2210_v45  ;;  %v11576_v45 = vld [vmem:[#allocation6 + $0xb08] ss:$16 sps:$4 sm:$0xff]   ;;  %v11618_v49 = vld [vmem:[#allocation9 + $0x140] ss:$16 sps:$4 sm:$0xff]  }
 0x348   :  { %3128 = vmatprep.subr.bf16.mxu1 %v11536_v51  ;;  %3967 = vmatpush1.bf16.msra.mxu0 %v11579_v57  ;;  %v11623_v51 = vld [vmem:[#allocation9 + $0x124] ss:$16 sps:$4 sm:$0xff]  }
 0x349   :  { %3968 = vmatprep.subr.bf16.mxu0 %v11584_v58  ;;  %v11629_v57 = vld [vmem:[#allocation9 + $0x2e4] ss:$16 sps:$4 sm:$0xff]   ;;  %v11633_v58 = vld [vmem:[#allocation9 + $0x2c0] ss:$16 sps:$4 sm:$0xff]  }
 0x34b   :  { %3129 = vmatpush1.bf16.msra.mxu1 %v11534_v52  ;;  %v11621_v52 = vld [vmem:[#allocation9 + $0x120] ss:$16 sps:$4 sm:$0xff]  }
 0x34c   :  { %3130 = vmatprep.subr.bf16.mxu1 %v11539_v54  ;;  %3969 = vmatpush1.bf16.msra.mxu0 %v11582_v37  ;;  %v11626_v54 = vld [vmem:[#allocation9 + $0x104] ss:$16 sps:$4 sm:$0xff]   ;;  %v11639_v37 = vld [vmem:[#allocation9 + $0x2a0] ss:$16 sps:$4 sm:$0xff]  }
 0x34d   :  { %3970 = vmatprep.subr.bf16.mxu0 %v11587_v60  ;;  %v11647_v60 = vld [vmem:[#allocation9 + $0x284] ss:$16 sps:$4 sm:$0xff]  }
 0x34f   :  { %3131 = vmatpush1.bf16.msra.mxu1 %v11537_v55  ;;  %v11624_v55 = vld [vmem:[#allocation9 + $0x100] ss:$16 sps:$4 sm:$0xff]  }
 0x350   :  { %3132 = vmatprep.subr.bf16.mxu1 %v11542_v56  ;;  %3971 = vmatpush1.bf16.msra.mxu0 %v11585_v63  ;;  %v11627_v56 = vld [vmem:[#allocation9 + $0x2e0] ss:$16 sps:$4 sm:$0xff]   ;;  %v11653_v63 = vld [vmem:[#allocation9 + $0x264] ss:$16 sps:$4 sm:$0xff]  }
 0x351   :  { %3972 = vmatprep.subr.bf16.mxu0 %v11590_v2  ;;  %v11659_v2 = vld [vmem:[#allocation9 + $0x244] ss:$16 sps:$4 sm:$0xff]  }
 0x353   :  { %3133 = vmatpush1.bf16.msra.mxu1 %v11540_v53  ;;  %v11635_v53 = vld [vmem:[#allocation9 + $0x2c4] ss:$16 sps:$4 sm:$0xff]  }
 0x354   :  { %3134 = vmatprep.subr.bf16.mxu1 %v11545_v59  ;;  %3973 = vmatpush1.bf16.msra.mxu0 %v11588_v4  ;;  %v11645_v59 = vld [vmem:[#allocation9 + $0x280] ss:$16 sps:$4 sm:$0xff]   ;;  %v11665_v4 = vld [vmem:[#allocation9 + $0x224] ss:$16 sps:$4 sm:$0xff]  }
 0x355   :  { %3974 = vmatprep.subr.bf16.mxu0 %v11593_v6  ;;  %v11671_v6 = vld [vmem:[#allocation9 + $0x204] ss:$16 sps:$4 sm:$0xff]  }
 0x357   :  { %3135 = vmatpush1.bf16.msra.mxu1 %v11543_v62  ;;  %v11651_v62 = vld [vmem:[#allocation9 + $0x260] ss:$16 sps:$4 sm:$0xff]  }
 0x358   :  { %3136 = vmatprep.subr.bf16.mxu1 %v11548_v1  ;;  %3975 = vmatpush1.bf16.msra.mxu0 %v11591_v61  ;;  %v11657_v1 = vld [vmem:[#allocation9 + $0x240] ss:$16 sps:$4 sm:$0xff]   ;;  %v11677_v61 = vld [vmem:[#allocation9 + $0x3e4] ss:$16 sps:$4 sm:$0xff]  }
 0x359   :  { %3976 = vmatprep.subr.bf16.mxu0 %v11596_v8  ;;  %v11683_v8 = vld [vmem:[#allocation9 + $0x3c4] ss:$16 sps:$4 sm:$0xff]  }
 0x35b   :  { %3137 = vmatpush1.bf16.msra.mxu1 %v11546_v3  ;;  %v11663_v3 = vld [vmem:[#allocation9 + $0x220] ss:$16 sps:$4 sm:$0xff]  }
 0x35c   :  { %3138 = vmatprep.subr.bf16.mxu1 %v11551_v5  ;;  %3977 = vmatpush1.bf16.msra.mxu0 %v11594_v11  ;;  %v11669_v5 = vld [vmem:[#allocation9 + $0x200] ss:$16 sps:$4 sm:$0xff]   ;;  %v11689_v11 = vld [vmem:[#allocation9 + $0x3a4] ss:$16 sps:$4 sm:$0xff]  }
 0x35d   :  { %3978 = vmatprep.subr.bf16.mxu0 %v11599_v17  ;;  %v11695_v17 = vld [vmem:[#allocation9 + $0x384] ss:$16 sps:$4 sm:$0xff]  }
 0x35f   :  { %3139 = vmatpush1.bf16.msra.mxu1 %v11549_v7  ;;  %v11675_v7 = vld [vmem:[#allocation9 + $0x3e0] ss:$16 sps:$4 sm:$0xff]  }
 0x360   :  { %3140 = vmatprep.subr.bf16.mxu1 %v11554_v9  ;;  %3979 = vmatpush1.bf16.msra.mxu0 %v11597_v19  ;;  %v11681_v9 = vld [vmem:[#allocation9 + $0x3c0] ss:$16 sps:$4 sm:$0xff]   ;;  %v11701_v19 = vld [vmem:[#allocation9 + $0x364] ss:$16 sps:$4 sm:$0xff]  }
 0x361   :  { %3980 = vmatprep.subr.bf16.mxu0 %v11602_v21  ;;  %v11707_v21 = vld [vmem:[#allocation9 + $0x344] ss:$16 sps:$4 sm:$0xff]  }
 0x363   :  { %3141 = vmatpush1.bf16.msra.mxu1 %v11552_v10  ;;  %v11687_v10 = vld [vmem:[#allocation9 + $0x3a0] ss:$16 sps:$4 sm:$0xff]  }
 0x364   :  { %3142 = vmatprep.subr.bf16.mxu1 %v11557_v12  ;;  %3981 = vmatpush1.bf16.msra.mxu0 %v11600_v23  ;;  %v11693_v12 = vld [vmem:[#allocation9 + $0x380] ss:$16 sps:$4 sm:$0xff]  }
 0x365   :  { %3982 = vmatprep.subr.bf16.mxu0 %v11605_v25 }
 0x367   :  { %3143 = vmatpush2.bf16.msra.mxu1 %v11555_v18  ;;  %v11699_v18 = vld [vmem:[#allocation9 + $0x360] ss:$16 sps:$4 sm:$0xff]  }
 0x368   :  { %3144 = vmatprep.subr.bf16.mxu1 %v11560_v20  ;;  %3983 = vmatpush2.bf16.msra.mxu0 %v11603_v27  ;;  %v11705_v20 = vld [vmem:[#allocation9 + $0x340] ss:$16 sps:$4 sm:$0xff]  }
 0x369   :  { %3984 = vmatprep.subr.bf16.mxu0 %v11608_v29 }
 0x36b   :  { %3145 = vmatpush2.bf16.msra.mxu1 %v11558_v22  ;;  %v11713_v22 = vld [vmem:[#allocation9 + $0x324] ss:$16 sps:$4 sm:$0xff]  }
 0x36c   :  { %3146 = vmatprep.subr.bf16.mxu1 %v11563_v24  ;;  %3985 = vmatpush2.bf16.msra.mxu0 %v11606_v31  ;;  %v11711_v24 = vld [vmem:[#allocation9 + $0x320] ss:$16 sps:$4 sm:$0xff]   ;;  %v13141_v31 = vld [vmem:[#allocation7 + $0x8] sm:$0xf] }
 0x36d   :  { %3986 = vmatprep.subr.bf16.mxu0 %v11611_v33  ;;  %v2350_v33 = vrot.slane %v13141_v31, %v13083_v15 }
 0x36f   :  { %3147 = vmatpush2.bf16.msra.mxu1 %v11561_v26  ;;  %v11719_v26 = vld [vmem:[#allocation9 + $0x304] ss:$16 sps:$4 sm:$0xff]  }
 0x370   :  { %3148 = vmatprep.subr.bf16.mxu1 %v11566_v28  ;;  %3987 = vmatpush2.bf16.msra.mxu0 %v11609_v35  ;;  %v11717_v28 = vld [vmem:[#allocation9 + $0x300] ss:$16 sps:$4 sm:$0xff]  }
 0x371   :  { %3988 = vmatprep.subr.bf16.mxu0 %v11614_v38 }
 0x373   :  { %3149 = vmatpush2.bf16.msra.mxu1 %v11564_v30  ;;  %v11725_v30 = vld [vmem:[#allocation9 + $0x2ec] ss:$16 sps:$4 sm:$0xff]  }
 0x374   :  { %3150 = vmatprep.subr.bf16.mxu1 %v11569_v32  ;;  %3989 = vmatpush2.bf16.msra.mxu0 %v11612_v40  ;;  %v2346_v32 = vrot.slane %v13141_v31, %v13079_v13 }
 0x375   :  { %3990 = vmatprep.subr.bf16.mxu0 %v11617_v42 }
 0x377   :  { %3151 = vmatpush2.bf16.msra.mxu1 %v11567_v34 }
 0x378   :  { %3152 = vmatprep.subr.bf16.mxu1 %v11572_v36  ;;  %3991 = vmatpush2.bf16.msra.mxu0 %v11615_v46 }
 0x379   :  { %3992 = vmatprep.subr.bf16.mxu0 %v11620_v48 }
 0x37b   :  { %3153 = vmatpush2.bf16.msra.mxu1 %v11570_v39 }
 0x37c   :  { %3154 = vmatprep.subr.bf16.mxu1 %v11575_v41  ;;  %3993 = vmatpush2.bf16.msra.mxu0 %v11618_v49 }
 0x37d   :  { %3994 = vmatprep.subr.bf16.mxu0 %v11623_v51 }
 0x37f   :  { %3155 = vmatpush2.bf16.msra.mxu1 %v11573_v43 }
 0x380   :  { %3156 = vmatprep.subr.bf16.mxu1 %v11578_v47  ;;  %3995 = vmatpush2.bf16.msra.mxu0 %v11621_v52  ;;  %v11630_v52 = vld [vmem:[#allocation9 + $0xe8] ss:$16 sps:$4 sm:$0xff]  }
 0x381   :  { %3996 = vmatprep.subr.bf16.mxu0 %v11626_v54 }
 0x383   :  { %3157 = vmatpush2.bf16.msra.mxu1 %v11576_v45 }
 0x384   :  { %3997 = vmatpush2.bf16.msra.mxu0 %v11624_v55  ;;  %4007 = vmatprep.subr.bf16.mxu1 %v11629_v57  ;;  %v11638_v55 = vld [vmem:[#allocation9 + $0xcc] ss:$16 sps:$4 sm:$0xff]  }
 0x385   :  { %4048 = vmatprep.subr.bf16.mxu0 %v11632_v44  ;;  %v11644_v57 = vld [vmem:[#allocation9 + $0xac] ss:$16 sps:$4 sm:$0xff]   ;;  %v11642_v44 = vld [vmem:[#allocation9 + $0xa8] ss:$16 sps:$4 sm:$0xff]  }
 0x386   :  { %3159 = vmatmul.mubr.bf16.vlgmr.msra.gmra.mxu1 %v13136_v50  ;;  %v11641_v50 = vld [vmem:[#allocation9 + $0x2a4] ss:$16 sps:$4 sm:$0xff]  }
 0x387   :  { %4008 = vmatpush1.bf16.msra.mxu1 %v11627_v56  ;;  %v11636_v56 = vld [vmem:[#allocation9 + $0xc8] ss:$16 sps:$4 sm:$0xff]  }
 0x388   :  { %4009 = vmatprep.subr.bf16.mxu1 %v11635_v53  ;;  %v11648_v53 = vld [vmem:[#allocation9 + $0x88] ss:$16 sps:$4 sm:$0xff]  }
 0x38b   :  { %4010 = vmatpush1.bf16.msra.mxu1 %v11633_v58  ;;  %v11650_v58 = vld [vmem:[#allocation9 + $0x8c] ss:$16 sps:$4 sm:$0xff]  }
 0x38c   :  { %4011 = vmatprep.subr.bf16.mxu1 %v11641_v50  ;;  %v11654_v50 = vld [vmem:[#allocation9 + $0x68] ss:$16 sps:$4 sm:$0xff]  }
 0x38f   :  { %4012 = vmatpush1.bf16.msra.mxu1 %v11639_v37  ;;  %v11656_v37 = vld [vmem:[#allocation9 + $0x6c] ss:$16 sps:$4 sm:$0xff]  }
 0x390   :  { %4013 = vmatprep.subr.bf16.mxu1 %v11647_v60  ;;  %v11660_v60 = vld [vmem:[#allocation9 + $0x48] ss:$16 sps:$4 sm:$0xff]  }
 0x393   :  { %4014 = vmatpush1.bf16.msra.mxu1 %v11645_v59  ;;  %v11662_v59 = vld [vmem:[#allocation9 + $0x4c] ss:$16 sps:$4 sm:$0xff]  }
 0x394   :  { %4015 = vmatprep.subr.bf16.mxu1 %v11653_v63  ;;  %v11666_v63 = vld [vmem:[#allocation9 + $0x28] ss:$16 sps:$4 sm:$0xff]  }
 0x397   :  { %4016 = vmatpush1.bf16.msra.mxu1 %v11651_v62  ;;  %v11668_v62 = vld [vmem:[#allocation9 + $0x2c] ss:$16 sps:$4 sm:$0xff]  }
 0x398   :  { %4017 = vmatprep.subr.bf16.mxu1 %v11659_v2  ;;  %v11672_v2 = vld [vmem:[#allocation9 + $0x8] ss:$16 sps:$4 sm:$0xff]  }
 0x39b   :  { %4018 = vmatpush1.bf16.msra.mxu1 %v11657_v1  ;;  %v11674_v1 = vld [vmem:[#allocation9 + $0xc] ss:$16 sps:$4 sm:$0xff]  }
 0x39c   :  { %4019 = vmatprep.subr.bf16.mxu1 %v11665_v4  ;;  %v11678_v4 = vld [vmem:[#allocation9 + $0x1e8] ss:$16 sps:$4 sm:$0xff]  }
 0x39f   :  { %4020 = vmatpush1.bf16.msra.mxu1 %v11663_v3  ;;  %v11680_v3 = vld [vmem:[#allocation9 + $0x1ec] ss:$16 sps:$4 sm:$0xff]  }
 0x3a0   :  { %4021 = vmatprep.subr.bf16.mxu1 %v11671_v6  ;;  %v11684_v6 = vld [vmem:[#allocation9 + $0x1c8] ss:$16 sps:$4 sm:$0xff]  }
 0x3a3   :  { %4022 = vmatpush1.bf16.msra.mxu1 %v11669_v5  ;;  %v11686_v5 = vld [vmem:[#allocation9 + $0x1cc] ss:$16 sps:$4 sm:$0xff]  }
 0x3a4   :  { %4023 = vmatprep.subr.bf16.mxu1 %v11677_v61  ;;  %v11690_v61 = vld [vmem:[#allocation9 + $0x1a8] ss:$16 sps:$4 sm:$0xff]  }
 0x3a7   :  { %4024 = vmatpush2.bf16.msra.mxu1 %v11675_v7  ;;  %v11692_v7 = vld [vmem:[#allocation9 + $0x1ac] ss:$16 sps:$4 sm:$0xff]  }
 0x3a8   :  { %4025 = vmatprep.subr.bf16.mxu1 %v11683_v8  ;;  %v11696_v8 = vld [vmem:[#allocation9 + $0x188] ss:$16 sps:$4 sm:$0xff]  }
 0x3ab   :  { %4026 = vmatpush2.bf16.msra.mxu1 %v11681_v9  ;;  %v11698_v9 = vld [vmem:[#allocation9 + $0x18c] ss:$16 sps:$4 sm:$0xff]  }
 0x3ac   :  { %4027 = vmatprep.subr.bf16.mxu1 %v11689_v11  ;;  %v11702_v11 = vld [vmem:[#allocation9 + $0x168] ss:$16 sps:$4 sm:$0xff]  }
 0x3af   :  { %4028 = vmatpush2.bf16.msra.mxu1 %v11687_v10  ;;  %v11704_v10 = vld [vmem:[#allocation9 + $0x16c] ss:$16 sps:$4 sm:$0xff]  }
 0x3b0   :  { %4029 = vmatprep.subr.bf16.mxu1 %v11695_v17  ;;  %v2354_v17 = vrot.slane %v13141_v31, %v13081_v14 }
 0x3b3   :  { %4030 = vmatpush2.bf16.msra.mxu1 %v11693_v12  ;;  %v11710_v12 = vld [vmem:[#allocation9 + $0x14c] ss:$16 sps:$4 sm:$0xff]  }
 0x3b4   :  { %4031 = vmatprep.subr.bf16.mxu1 %v11701_v19  ;;  %v11716_v19 = vld [vmem:[#allocation9 + $0x12c] ss:$16 sps:$4 sm:$0xff]  }
 0x3b7   :  { %4032 = vmatpush2.bf16.msra.mxu1 %v11699_v18  ;;  %v11708_v18 = vld [vmem:[#allocation9 + $0x148] ss:$16 sps:$4 sm:$0xff]  }
 0x3b8   :  { %4033 = vmatprep.subr.bf16.mxu1 %v11707_v21 }
 0x3bb   :  { %4034 = vmatpush2.bf16.msra.mxu1 %v11705_v20  ;;  %v2358_v20 = vrot.slane %v13141_v31, %v13085_v16 }
 0x3bc   :  { %4035 = vmatprep.subr.bf16.mxu1 %v11713_v22  ;;  %v11714_v22 = vld [vmem:[#allocation9 + $0x128] ss:$16 sps:$4 sm:$0xff]  }
 0x3bf   :  { %4036 = vmatpush2.bf16.msra.mxu1 %v11711_v24  ;;  %v11722_v24 = vld [vmem:[#allocation9 + $0x10c] ss:$16 sps:$4 sm:$0xff]  }
 0x3c0   :  { %4037 = vmatprep.subr.bf16.mxu1 %v11719_v26 }
 0x3c3   :  { %4038 = vmatpush2.bf16.msra.mxu1 %v11717_v28 }
 0x3c4   :  { %4089 = vmatprep.subr.bf16.mxu1 %v11725_v30 }
 0x3c6   :  { %v3037_v23 = vpop.f32.mrf.mxu0 }
 0x3c7   :  { %v3038_v34 = vadd.f32 %v3037_v23, %v2346_v32 }
 0x3c8   :  { %v3039_v25 = vpop.f32.mrf.mxu0 }
 0x3c9   :  { %v3040_v38 = vadd.f32 %v3039_v25, %v2350_v33 }
 0x3ca   :  { %v3041_v27 = vpop.f32.mrf.mxu0 }
 0x3cc   :  { %v3042_v29 = vpop.f32.mrf.mxu0 }
 0x3cd   :  { %v11720_v29 = vld [vmem:[#allocation9 + $0x108] ss:$16 sps:$4 sm:$0xff]  }
 0x406   :  { %v3078_v35 = vpop.f32.mrf.mxu1  ;;  %v13147_v36 = vpop.f32.mrf.mxu0 }
 0x407   :  { %v3079_v39 = vadd.f32 %v3078_v35, %v3038_v34  ;;  %v3120_v21 = vadd.f32 %v13147_v36, %v2354_v17  ;;  %v11723_v35 = vld [vmem:[#allocation9 + $0x2e8] ss:$16 sps:$4 sm:$0xff]   ;;  %v11795_v17 = vld [vmem:[#allocation9 + $0x5e0] ss:$16 sps:$4 sm:$0xff]  }
 0x408   :  { %v3080_v40 = vpop.f32.mrf.mxu1  ;;  %v13149_v41 = vpop.f32.mrf.mxu0 }
 0x409   :  { %v3081_v42 = vadd.f32 %v3080_v40, %v3040_v38  ;;  %v3167_v43 = vmax.f32 %v3079_v39, 0.0  ;;  %v3122_v25 = vadd.f32 %v13149_v41, %v2358_v20  ;;  %v11728_v38 = vld [vmem:[#allocation9 + $0x2cc] ss:$16 sps:$4 sm:$0xff]   ;;  %v11726_v39 = vld [vmem:[#allocation9 + $0x2c8] ss:$16 sps:$4 sm:$0xff]  }
 0x40a   :  { %v3082_v46 = vpop.f32.mrf.mxu1  ;;  %v3123_v47 = vpop.f32.mrf.mxu0  ;;  %v11731_v40 = vld [vmem:[#allocation9 + $0x2ac] ss:$16 sps:$4 sm:$0xff]   ;;  %v11729_v41 = vld [vmem:[#allocation9 + $0x2a8] ss:$16 sps:$4 sm:$0xff]  }
 0x40b   :  { %v3168_v48 = vmax.f32 %v3081_v42, 0.0  ;;  %v13153_v54 = vpack.c.bf16 %v3167_v43, %v3167_v43  ;;  %v11734_v42 = vld [vmem:[#allocation9 + $0x28c] ss:$16 sps:$4 sm:$0xff]   ;;  %v11771_v43 = vld [vmem:[#allocation9 + $0x4e0] ss:$16 sps:$4 sm:$0xff]  }
 0x40c   :  { %v3083_v45 = vpop.f32.mrf.mxu1  ;;  %v3124_v49 = vpop.f32.mrf.mxu0  ;;  %v11773_v46 = vld [vmem:[#allocation9 + $0x4e4] ss:$16 sps:$4 sm:$0xff]   ;;  %v11756_v20 = vld [vmem:[#allocation9 + $0x388] ss:$16 sps:$4 sm:$0xff]  }
 0x40d   :  { %v13151_v51 = vpack.c.bf16 %v3168_v48, %v3168_v48  ;;  %v11776_v47 = vld [vmem:[#allocation9 + $0x4c4] ss:$16 sps:$4 sm:$0xff]   ;;  %v11732_v48 = vld [vmem:[#allocation9 + $0x288] ss:$16 sps:$4 sm:$0xff]   ;;  %v11774_v45 = vld [vmem:[#allocation9 + $0x4c0] ss:$16 sps:$4 sm:$0xff]  }
 0x40e   :  { %v11737_v49 = vld [vmem:[#allocation9 + $0x26c] ss:$16 sps:$4 sm:$0xff]  }
 0x40f   :  { %3998 = vmatprep.mubr.bf16.mxu0 %v13151_v51 }
 0x410   :  { %3999 = vmatmul.mubr.bf16.vlgmr.msra.gmra.mxu0 %v13153_v54 }
 0x411   :  { %4049 = vmatpush1.bf16.msra.mxu0 %v11630_v52  ;;  %4080 = vmatprep.mubr.bf16.mxu0 %v13151_v51  ;;  %v11779_v52 = vld [vmem:[#allocation9 + $0x4a4] ss:$16 sps:$4 sm:$0xff]  }
 0x412   :  { %4050 = vmatprep.subr.bf16.mxu0 %v11638_v55  ;;  %v11735_v55 = vld [vmem:[#allocation9 + $0x268] ss:$16 sps:$4 sm:$0xff]  }
 0x415   :  { %4051 = vmatpush1.bf16.msra.mxu0 %v11636_v56  ;;  %v11777_v56 = vld [vmem:[#allocation9 + $0x4a0] ss:$16 sps:$4 sm:$0xff]  }
 0x416   :  { %4052 = vmatprep.subr.bf16.mxu0 %v11644_v57  ;;  %v11740_v57 = vld [vmem:[#allocation9 + $0x24c] ss:$16 sps:$4 sm:$0xff]  }
 0x419   :  { %4053 = vmatpush1.bf16.msra.mxu0 %v11642_v44  ;;  %v11782_v44 = vld [vmem:[#allocation9 + $0x484] ss:$16 sps:$4 sm:$0xff]  }
 0x41a   :  { %4054 = vmatprep.subr.bf16.mxu0 %v11650_v58  ;;  %v11738_v58 = vld [vmem:[#allocation9 + $0x248] ss:$16 sps:$4 sm:$0xff]  }
 0x41d   :  { %4055 = vmatpush1.bf16.msra.mxu0 %v11648_v53  ;;  %v11780_v53 = vld [vmem:[#allocation9 + $0x480] ss:$16 sps:$4 sm:$0xff]  }
 0x41e   :  { %4056 = vmatprep.subr.bf16.mxu0 %v11656_v37  ;;  %v11743_v37 = vld [vmem:[#allocation9 + $0x22c] ss:$16 sps:$4 sm:$0xff]  }
 0x421   :  { %4057 = vmatpush1.bf16.msra.mxu0 %v11654_v50  ;;  %v11785_v50 = vld [vmem:[#allocation9 + $0x464] ss:$16 sps:$4 sm:$0xff]  }
 0x422   :  { %4058 = vmatprep.subr.bf16.mxu0 %v11662_v59  ;;  %v11741_v59 = vld [vmem:[#allocation9 + $0x228] ss:$16 sps:$4 sm:$0xff]  }
 0x425   :  { %4059 = vmatpush1.bf16.msra.mxu0 %v11660_v60  ;;  %v11783_v60 = vld [vmem:[#allocation9 + $0x460] ss:$16 sps:$4 sm:$0xff]  }
 0x426   :  { %4060 = vmatprep.subr.bf16.mxu0 %v11668_v62  ;;  %v11746_v62 = vld [vmem:[#allocation9 + $0x20c] ss:$16 sps:$4 sm:$0xff]  }
 0x429   :  { %4061 = vmatpush1.bf16.msra.mxu0 %v11666_v63  ;;  %v11788_v63 = vld [vmem:[#allocation9 + $0x444] ss:$16 sps:$4 sm:$0xff]  }
 0x42a   :  { %4062 = vmatprep.subr.bf16.mxu0 %v11674_v1  ;;  %v11744_v1 = vld [vmem:[#allocation9 + $0x208] ss:$16 sps:$4 sm:$0xff]  }
 0x42d   :  { %4063 = vmatpush1.bf16.msra.mxu0 %v11672_v2  ;;  %v11786_v2 = vld [vmem:[#allocation9 + $0x440] ss:$16 sps:$4 sm:$0xff]  }
 0x42e   :  { %4064 = vmatprep.subr.bf16.mxu0 %v11680_v3  ;;  %v11749_v3 = vld [vmem:[#allocation9 + $0x3ec] ss:$16 sps:$4 sm:$0xff]  }
 0x431   :  { %4065 = vmatpush2.bf16.msra.mxu0 %v11678_v4  ;;  %v11791_v4 = vld [vmem:[#allocation9 + $0x424] ss:$16 sps:$4 sm:$0xff]  }
 0x432   :  { %4066 = vmatprep.subr.bf16.mxu0 %v11686_v5  ;;  %v11747_v5 = vld [vmem:[#allocation9 + $0x3e8] ss:$16 sps:$4 sm:$0xff]  }
 0x435   :  { %4067 = vmatpush2.bf16.msra.mxu0 %v11684_v6  ;;  %v11789_v6 = vld [vmem:[#allocation9 + $0x420] ss:$16 sps:$4 sm:$0xff]  }
 0x436   :  { %4068 = vmatprep.subr.bf16.mxu0 %v11692_v7  ;;  %v11752_v7 = vld [vmem:[#allocation9 + $0x3cc] ss:$16 sps:$4 sm:$0xff]  }
 0x439   :  { %4069 = vmatpush2.bf16.msra.mxu0 %v11690_v61  ;;  %v11794_v61 = vld [vmem:[#allocation9 + $0x404] ss:$16 sps:$4 sm:$0xff]  }
 0x43a   :  { %4070 = vmatprep.subr.bf16.mxu0 %v11698_v9  ;;  %v11750_v9 = vld [vmem:[#allocation9 + $0x3c8] ss:$16 sps:$4 sm:$0xff]  }
 0x43d   :  { %4071 = vmatpush2.bf16.msra.mxu0 %v11696_v8  ;;  %v11792_v8 = vld [vmem:[#allocation9 + $0x400] ss:$16 sps:$4 sm:$0xff]  }
 0x43e   :  { %4072 = vmatprep.subr.bf16.mxu0 %v11704_v10  ;;  %v11755_v10 = vld [vmem:[#allocation9 + $0x3ac] ss:$16 sps:$4 sm:$0xff]  }
 0x441   :  { %4073 = vmatpush2.bf16.msra.mxu0 %v11702_v11  ;;  %v11797_v11 = vld [vmem:[#allocation9 + $0x5e4] ss:$16 sps:$4 sm:$0xff]  }
 0x442   :  { %4074 = vmatprep.subr.bf16.mxu0 %v11710_v12  ;;  %v11753_v12 = vld [vmem:[#allocation9 + $0x3a8] ss:$16 sps:$4 sm:$0xff]  }
 0x445   :  { %4075 = vmatpush2.bf16.msra.mxu0 %v11708_v18  ;;  %v11758_v18 = vld [vmem:[#allocation9 + $0x38c] ss:$16 sps:$4 sm:$0xff]  }
 0x446   :  { %v3160_v23 = vpop.f32.mrf.mxu1  ;;  %4076 = vmatprep.subr.bf16.mxu0 %v11716_v19  ;;  %v11800_v19 = vld [vmem:[#allocation9 + $0x5c4] ss:$16 sps:$4 sm:$0xff]  }
 0x447   :  { %v3161_v26 = vadd.f32 %v3160_v23, %v3120_v21  ;;  %v11798_v21 = vld [vmem:[#allocation9 + $0x5c0] ss:$16 sps:$4 sm:$0xff]   ;;  %v11803_v23 = vld [vmem:[#allocation9 + $0x5a4] ss:$16 sps:$4 sm:$0xff]  }
 0x448   :  { %v3162_v27 = vpop.f32.mrf.mxu1 }
 0x449   :  { %v3163_v28 = vadd.f32 %v3162_v27, %v3122_v25  ;;  %4077 = vmatpush2.bf16.msra.mxu0 %v11714_v22  ;;  %v3169_v30 = vmax.f32 %v3161_v26, 0.0  ;;  %v11761_v22 = vld [vmem:[#allocation9 + $0x36c] ss:$16 sps:$4 sm:$0xff]   ;;  %v11801_v25 = vld [vmem:[#allocation9 + $0x5a0] ss:$16 sps:$4 sm:$0xff]  }
 0x44a   :  { %v3164_v32 = vpop.f32.mrf.mxu1  ;;  %4078 = vmatprep.subr.bf16.mxu0 %v11722_v24  ;;  %v11759_v24 = vld [vmem:[#allocation9 + $0x368] ss:$16 sps:$4 sm:$0xff]   ;;  %v11764_v26 = vld [vmem:[#allocation9 + $0x34c] ss:$16 sps:$4 sm:$0xff]   ;;  %v11806_v27 = vld [vmem:[#allocation9 + $0x584] ss:$16 sps:$4 sm:$0xff]  }
 0x44b   :  { %v3170_v33 = vmax.f32 %v3163_v28, 0.0  ;;  %v13166_v36 = vpack.c.bf16 %v3169_v30, %v3169_v30  ;;  %v11762_v28 = vld [vmem:[#allocation9 + $0x348] ss:$16 sps:$4 sm:$0xff]   ;;  %v11767_v30 = vld [vmem:[#allocation9 + $0x32c] ss:$16 sps:$4 sm:$0xff]  }
 0x44c   :  { %v3165_v34 = vpop.f32.mrf.mxu1  ;;  %v11809_v32 = vld [vmem:[#allocation9 + $0x564] ss:$16 sps:$4 sm:$0xff]  }
 0x44d   :  { %v13164_v31 = vpack.c.bf16 %v3170_v33, %v3170_v33  ;;  %4079 = vmatpush2.bf16.msra.mxu0 %v11720_v29  ;;  %v11804_v29 = vld [vmem:[#allocation9 + $0x580] ss:$16 sps:$4 sm:$0xff]   ;;  %v11765_v33 = vld [vmem:[#allocation9 + $0x328] ss:$16 sps:$4 sm:$0xff]  }
 0x44e   :  { %4930 = vmatprep.subr.bf16.mxu0 %v11773_v46  ;;  %v11807_v34 = vld [vmem:[#allocation9 + $0x560] ss:$16 sps:$4 sm:$0xff]  }
 0x44f   :  { %4039 = vmatprep.mubr.bf16.mxu1 %v13164_v31  ;;  %v11816_v46 = vld [vmem:[#allocation9 + $0x500] ss:$16 sps:$4 sm:$0xff]  }
 0x450   :  { %4040 = vmatmul.mubr.bf16.vlgmr.msra.gmra.mxu1 %v13166_v36  ;;  %4081 = vmatmul.mubr.bf16.vlgmr.msra.gmra.mxu0 %v13153_v54 }
 0x451   :  { %4090 = vmatpush1.bf16.msra.mxu1 %v11723_v35  ;;  %4121 = vmatprep.mubr.bf16.mxu1 %v13164_v31  ;;  %v11770_v35 = vld [vmem:[#allocation9 + $0x30c] ss:$16 sps:$4 sm:$0xff]  }
 0x452   :  { %4091 = vmatprep.subr.bf16.mxu1 %v11728_v38  ;;  %4931 = vmatpush1.bf16.msra.mxu0 %v11771_v43  ;;  %v11812_v38 = vld [vmem:[#allocation9 + $0x544] ss:$16 sps:$4 sm:$0xff]  }
 0x453   :  { %4932 = vmatprep.subr.bf16.mxu0 %v11776_v47  ;;  %v11818_v43 = vld [vmem:[#allocation9 + $0x504] ss:$16 sps:$4 sm:$0xff]   ;;  %v11819_v47 = vld [vmem:[#allocation9 + $0x6e0] ss:$16 sps:$4 sm:$0xff]  }
 0x455   :  { %4092 = vmatpush1.bf16.msra.mxu1 %v11726_v39  ;;  %v11768_v39 = vld [vmem:[#allocation9 + $0x308] ss:$16 sps:$4 sm:$0xff]  }
 0x456   :  { %4093 = vmatprep.subr.bf16.mxu1 %v11731_v40  ;;  %4933 = vmatpush1.bf16.msra.mxu0 %v11774_v45  ;;  %v11810_v40 = vld [vmem:[#allocation9 + $0x540] ss:$16 sps:$4 sm:$0xff]   ;;  %v11824_v45 = vld [vmem:[#allocation9 + $0x4ec] ss:$16 sps:$4 sm:$0xff]  }
 0x457   :  { %4934 = vmatprep.subr.bf16.mxu0 %v11779_v52  ;;  %v11827_v52 = vld [vmem:[#allocation9 + $0x6c4] ss:$16 sps:$4 sm:$0xff]  }
 0x459   :  { %4094 = vmatpush1.bf16.msra.mxu1 %v11729_v41  ;;  %v11815_v41 = vld [vmem:[#allocation9 + $0x524] ss:$16 sps:$4 sm:$0xff]  }
 0x45a   :  { %4095 = vmatprep.subr.bf16.mxu1 %v11734_v42  ;;  %4935 = vmatpush1.bf16.msra.mxu0 %v11777_v56  ;;  %v11813_v42 = vld [vmem:[#allocation9 + $0x520] ss:$16 sps:$4 sm:$0xff]   ;;  %v11833_v56 = vld [vmem:[#allocation9 + $0x6a4] ss:$16 sps:$4 sm:$0xff]  }
 0x45b   :  { %4936 = vmatprep.subr.bf16.mxu0 %v11782_v44  ;;  %v11839_v44 = vld [vmem:[#allocation9 + $0x684] ss:$16 sps:$4 sm:$0xff]  }
 0x45d   :  { %4096 = vmatpush1.bf16.msra.mxu1 %v11732_v48  ;;  %v11821_v48 = vld [vmem:[#allocation9 + $0x6e4] ss:$16 sps:$4 sm:$0xff]  }
 0x45e   :  { %4097 = vmatprep.subr.bf16.mxu1 %v11737_v49  ;;  %4937 = vmatpush1.bf16.msra.mxu0 %v11780_v53  ;;  %v11825_v49 = vld [vmem:[#allocation9 + $0x6c0] ss:$16 sps:$4 sm:$0xff]   ;;  %v11845_v53 = vld [vmem:[#allocation9 + $0x664] ss:$16 sps:$4 sm:$0xff]  }
 0x45f   :  { %4938 = vmatprep.subr.bf16.mxu0 %v11785_v50  ;;  %v11851_v50 = vld [vmem:[#allocation9 + $0x644] ss:$16 sps:$4 sm:$0xff]  }
 0x461   :  { %4098 = vmatpush1.bf16.msra.mxu1 %v11735_v55  ;;  %v11831_v55 = vld [vmem:[#allocation9 + $0x6a0] ss:$16 sps:$4 sm:$0xff]  }
 0x462   :  { %4099 = vmatprep.subr.bf16.mxu1 %v11740_v57  ;;  %4939 = vmatpush1.bf16.msra.mxu0 %v11783_v60  ;;  %v11837_v57 = vld [vmem:[#allocation9 + $0x680] ss:$16 sps:$4 sm:$0xff]   ;;  %v11857_v60 = vld [vmem:[#allocation9 + $0x624] ss:$16 sps:$4 sm:$0xff]  }
 0x463   :  { %4940 = vmatprep.subr.bf16.mxu0 %v11788_v63  ;;  %v11863_v63 = vld [vmem:[#allocation9 + $0x604] ss:$16 sps:$4 sm:$0xff]  }
 0x465   :  { %4100 = vmatpush1.bf16.msra.mxu1 %v11738_v58  ;;  %v11843_v58 = vld [vmem:[#allocation9 + $0x660] ss:$16 sps:$4 sm:$0xff]  }
 0x466   :  { %4101 = vmatprep.subr.bf16.mxu1 %v11743_v37  ;;  %4941 = vmatpush1.bf16.msra.mxu0 %v11786_v2  ;;  %v11849_v37 = vld [vmem:[#allocation9 + $0x640] ss:$16 sps:$4 sm:$0xff]   ;;  %v11869_v2 = vld [vmem:[#allocation9 + $0x7e4] ss:$16 sps:$4 sm:$0xff]  }
 0x467   :  { %4942 = vmatprep.subr.bf16.mxu0 %v11791_v4  ;;  %v11875_v4 = vld [vmem:[#allocation9 + $0x7c4] ss:$16 sps:$4 sm:$0xff]  }
 0x469   :  { %4102 = vmatpush1.bf16.msra.mxu1 %v11741_v59  ;;  %v11855_v59 = vld [vmem:[#allocation9 + $0x620] ss:$16 sps:$4 sm:$0xff]  }
 0x46a   :  { %4103 = vmatprep.subr.bf16.mxu1 %v11746_v62  ;;  %4943 = vmatpush1.bf16.msra.mxu0 %v11789_v6  ;;  %v11861_v62 = vld [vmem:[#allocation9 + $0x600] ss:$16 sps:$4 sm:$0xff]   ;;  %v11881_v6 = vld [vmem:[#allocation9 + $0x7a4] ss:$16 sps:$4 sm:$0xff]  }
 0x46b   :  { %4944 = vmatprep.subr.bf16.mxu0 %v11794_v61  ;;  %v11887_v61 = vld [vmem:[#allocation9 + $0x784] ss:$16 sps:$4 sm:$0xff]  }
 0x46d   :  { %4104 = vmatpush1.bf16.msra.mxu1 %v11744_v1  ;;  %v11867_v1 = vld [vmem:[#allocation9 + $0x7e0] ss:$16 sps:$4 sm:$0xff]  }
 0x46e   :  { %4105 = vmatprep.subr.bf16.mxu1 %v11749_v3  ;;  %4945 = vmatpush1.bf16.msra.mxu0 %v11792_v8  ;;  %v11873_v3 = vld [vmem:[#allocation9 + $0x7c0] ss:$16 sps:$4 sm:$0xff]   ;;  %v11893_v8 = vld [vmem:[#allocation9 + $0x764] ss:$16 sps:$4 sm:$0xff]  }
 0x46f   :  { %4946 = vmatprep.subr.bf16.mxu0 %v11797_v11  ;;  %v11899_v11 = vld [vmem:[#allocation9 + $0x744] ss:$16 sps:$4 sm:$0xff]  }
 0x471   :  { %4106 = vmatpush2.bf16.msra.mxu1 %v11747_v5  ;;  %v11879_v5 = vld [vmem:[#allocation9 + $0x7a0] ss:$16 sps:$4 sm:$0xff]  }
 0x472   :  { %4107 = vmatprep.subr.bf16.mxu1 %v11752_v7  ;;  %4947 = vmatpush2.bf16.msra.mxu0 %v11795_v17  ;;  %v11885_v7 = vld [vmem:[#allocation9 + $0x780] ss:$16 sps:$4 sm:$0xff]  }
 0x473   :  { %4948 = vmatprep.subr.bf16.mxu0 %v11800_v19 }
 0x475   :  { %4108 = vmatpush2.bf16.msra.mxu1 %v11750_v9  ;;  %v11891_v9 = vld [vmem:[#allocation9 + $0x760] ss:$16 sps:$4 sm:$0xff]  }
 0x476   :  { %4109 = vmatprep.subr.bf16.mxu1 %v11755_v10  ;;  %4949 = vmatpush2.bf16.msra.mxu0 %v11798_v21  ;;  %v11897_v10 = vld [vmem:[#allocation9 + $0x740] ss:$16 sps:$4 sm:$0xff]  }
 0x477   :  { %4950 = vmatprep.subr.bf16.mxu0 %v11803_v23 }
 0x479   :  { %4110 = vmatpush2.bf16.msra.mxu1 %v11753_v12  ;;  %v11905_v12 = vld [vmem:[#allocation9 + $0x724] ss:$16 sps:$4 sm:$0xff]  }
 0x47a   :  { %4111 = vmatprep.subr.bf16.mxu1 %v11758_v18  ;;  %4951 = vmatpush2.bf16.msra.mxu0 %v11801_v25  ;;  %v11903_v18 = vld [vmem:[#allocation9 + $0x720] ss:$16 sps:$4 sm:$0xff]  }
 0x47b   :  { %4952 = vmatprep.subr.bf16.mxu0 %v11806_v27  ;;  %v13173_v25 = vld [vmem:[#allocation10] sm:$0xf] }
 0x47c   :  { %v3313_v27 = vrot.slane %v13173_v25, %v13083_v15 }
 0x47d   :  { %4112 = vmatpush2.bf16.msra.mxu1 %v11756_v20  ;;  %v11911_v20 = vld [vmem:[#allocation9 + $0x704] ss:$16 sps:$4 sm:$0xff]  }
 0x47e   :  { %4113 = vmatprep.subr.bf16.mxu1 %v11761_v22  ;;  %4953 = vmatpush2.bf16.msra.mxu0 %v11804_v29  ;;  %v11909_v22 = vld [vmem:[#allocation9 + $0x700] ss:$16 sps:$4 sm:$0xff]  }
 0x47f   :  { %4954 = vmatprep.subr.bf16.mxu0 %v11809_v32 }
 0x481   :  { %4114 = vmatpush2.bf16.msra.mxu1 %v11759_v24  ;;  %v11917_v24 = vld [vmem:[#allocation9 + $0x6ec] ss:$16 sps:$4 sm:$0xff]  }
 0x482   :  { %4115 = vmatprep.subr.bf16.mxu1 %v11764_v26  ;;  %4955 = vmatpush2.bf16.msra.mxu0 %v11807_v34  ;;  %v3309_v26 = vrot.slane %v13173_v25, %v13079_v13 }
 0x483   :  { %4956 = vmatprep.subr.bf16.mxu0 %v11812_v38 }
 0x485   :  { %4116 = vmatpush2.bf16.msra.mxu1 %v11762_v28 }
 0x486   :  { %4117 = vmatprep.subr.bf16.mxu1 %v11767_v30  ;;  %4957 = vmatpush2.bf16.msra.mxu0 %v11810_v40 }
 0x487   :  { %4958 = vmatprep.subr.bf16.mxu0 %v11815_v41 }
 0x489   :  { %4118 = vmatpush2.bf16.msra.mxu1 %v11765_v33 }
 0x48a   :  { %4119 = vmatprep.subr.bf16.mxu1 %v11770_v35  ;;  %4959 = vmatpush2.bf16.msra.mxu0 %v11813_v42 }
 0x48b   :  { %4960 = vmatprep.subr.bf16.mxu0 %v11818_v43 }
 0x48d   :  { %4120 = vmatpush2.bf16.msra.mxu1 %v11768_v39 }
 0x48e   :  { %4961 = vmatpush2.bf16.msra.mxu0 %v11816_v46  ;;  %4971 = vmatprep.subr.bf16.mxu1 %v11821_v48  ;;  %v11822_v48 = vld [vmem:[#allocation9 + $0x4e8] ss:$16 sps:$4 sm:$0xff]  }
 0x48f   :  { %5012 = vmatprep.subr.bf16.mxu0 %v11824_v45 }
 0x490   :  { %4122 = vmatmul.mubr.bf16.vlgmr.msra.gmra.mxu1 %v13166_v36 }
 0x491   :  { %4972 = vmatpush1.bf16.msra.mxu1 %v11819_v47 }
 0x492   :  { %4973 = vmatprep.subr.bf16.mxu1 %v11827_v52  ;;  %v11828_v52 = vld [vmem:[#allocation9 + $0x4c8] ss:$16 sps:$4 sm:$0xff]  }
 0x495   :  { %4974 = vmatpush1.bf16.msra.mxu1 %v11825_v49  ;;  %v11830_v49 = vld [vmem:[#allocation9 + $0x4cc] ss:$16 sps:$4 sm:$0xff]  }
 0x496   :  { %4975 = vmatprep.subr.bf16.mxu1 %v11833_v56  ;;  %v11834_v56 = vld [vmem:[#allocation9 + $0x4a8] ss:$16 sps:$4 sm:$0xff]  }
 0x499   :  { %4976 = vmatpush1.bf16.msra.mxu1 %v11831_v55  ;;  %v11836_v55 = vld [vmem:[#allocation9 + $0x4ac] ss:$16 sps:$4 sm:$0xff]  }
 0x49a   :  { %4977 = vmatprep.subr.bf16.mxu1 %v11839_v44  ;;  %v11840_v44 = vld [vmem:[#allocation9 + $0x488] ss:$16 sps:$4 sm:$0xff]  }
 0x49d   :  { %4978 = vmatpush1.bf16.msra.mxu1 %v11837_v57  ;;  %v11842_v57 = vld [vmem:[#allocation9 + $0x48c] ss:$16 sps:$4 sm:$0xff]  }
 0x49e   :  { %4979 = vmatprep.subr.bf16.mxu1 %v11845_v53  ;;  %v11846_v53 = vld [vmem:[#allocation9 + $0x468] ss:$16 sps:$4 sm:$0xff]  }
 0x4a1   :  { %4980 = vmatpush1.bf16.msra.mxu1 %v11843_v58  ;;  %v11848_v58 = vld [vmem:[#allocation9 + $0x46c] ss:$16 sps:$4 sm:$0xff]  }
 0x4a2   :  { %4981 = vmatprep.subr.bf16.mxu1 %v11851_v50  ;;  %v11852_v50 = vld [vmem:[#allocation9 + $0x448] ss:$16 sps:$4 sm:$0xff]  }
 0x4a5   :  { %4982 = vmatpush1.bf16.msra.mxu1 %v11849_v37  ;;  %v11854_v37 = vld [vmem:[#allocation9 + $0x44c] ss:$16 sps:$4 sm:$0xff]  }
 0x4a6   :  { %4983 = vmatprep.subr.bf16.mxu1 %v11857_v60  ;;  %v11858_v60 = vld [vmem:[#allocation9 + $0x428] ss:$16 sps:$4 sm:$0xff]  }
 0x4a9   :  { %4984 = vmatpush1.bf16.msra.mxu1 %v11855_v59  ;;  %v11860_v59 = vld [vmem:[#allocation9 + $0x42c] ss:$16 sps:$4 sm:$0xff]  }
 0x4aa   :  { %4985 = vmatprep.subr.bf16.mxu1 %v11863_v63  ;;  %v11864_v63 = vld [vmem:[#allocation9 + $0x408] ss:$16 sps:$4 sm:$0xff]  }
 0x4ad   :  { %4986 = vmatpush1.bf16.msra.mxu1 %v11861_v62  ;;  %v11866_v62 = vld [vmem:[#allocation9 + $0x40c] ss:$16 sps:$4 sm:$0xff]  }
 0x4ae   :  { %4987 = vmatprep.subr.bf16.mxu1 %v11869_v2  ;;  %v11870_v2 = vld [vmem:[#allocation9 + $0x5e8] ss:$16 sps:$4 sm:$0xff]  }
 0x4b1   :  { %4988 = vmatpush2.bf16.msra.mxu1 %v11867_v1  ;;  %v11872_v1 = vld [vmem:[#allocation9 + $0x5ec] ss:$16 sps:$4 sm:$0xff]  }
 0x4b2   :  { %4989 = vmatprep.subr.bf16.mxu1 %v11875_v4  ;;  %v11876_v4 = vld [vmem:[#allocation9 + $0x5c8] ss:$16 sps:$4 sm:$0xff]  }
 0x4b5   :  { %4990 = vmatpush2.bf16.msra.mxu1 %v11873_v3  ;;  %v11878_v3 = vld [vmem:[#allocation9 + $0x5cc] ss:$16 sps:$4 sm:$0xff]  }
 0x4b6   :  { %4991 = vmatprep.subr.bf16.mxu1 %v11881_v6  ;;  %v11882_v6 = vld [vmem:[#allocation9 + $0x5a8] ss:$16 sps:$4 sm:$0xff]  }
 0x4b9   :  { %4992 = vmatpush2.bf16.msra.mxu1 %v11879_v5  ;;  %v11884_v5 = vld [vmem:[#allocation9 + $0x5ac] ss:$16 sps:$4 sm:$0xff]  }
 0x4ba   :  { %4993 = vmatprep.subr.bf16.mxu1 %v11887_v61  ;;  %v11888_v61 = vld [vmem:[#allocation9 + $0x588] ss:$16 sps:$4 sm:$0xff]  }
 0x4bd   :  { %4994 = vmatpush2.bf16.msra.mxu1 %v11885_v7  ;;  %v11890_v7 = vld [vmem:[#allocation9 + $0x58c] ss:$16 sps:$4 sm:$0xff]  }
 0x4be   :  { %4995 = vmatprep.subr.bf16.mxu1 %v11893_v8  ;;  %v11894_v8 = vld [vmem:[#allocation9 + $0x568] ss:$16 sps:$4 sm:$0xff]  }
 0x4c1   :  { %4996 = vmatpush2.bf16.msra.mxu1 %v11891_v9  ;;  %v11896_v9 = vld [vmem:[#allocation9 + $0x56c] ss:$16 sps:$4 sm:$0xff]  }
 0x4c2   :  { %4997 = vmatprep.subr.bf16.mxu1 %v11899_v11  ;;  %v3317_v11 = vrot.slane %v13173_v25, %v13081_v14 }
 0x4c5   :  { %4998 = vmatpush2.bf16.msra.mxu1 %v11897_v10  ;;  %v11902_v10 = vld [vmem:[#allocation9 + $0x54c] ss:$16 sps:$4 sm:$0xff]  }
 0x4c6   :  { %4999 = vmatprep.subr.bf16.mxu1 %v11905_v12  ;;  %v11900_v12 = vld [vmem:[#allocation9 + $0x548] ss:$16 sps:$4 sm:$0xff]  }
 0x4c9   :  { %5000 = vmatpush2.bf16.msra.mxu1 %v11903_v18  ;;  %v3321_v18 = vrot.slane %v13173_v25, %v13085_v16 }
 0x4ca   :  { %5001 = vmatprep.subr.bf16.mxu1 %v11911_v20  ;;  %v11906_v20 = vld [vmem:[#allocation9 + $0x528] ss:$16 sps:$4 sm:$0xff]  }
 0x4cd   :  { %5002 = vmatpush2.bf16.msra.mxu1 %v11909_v22  ;;  %v11914_v22 = vld [vmem:[#allocation9 + $0x50c] ss:$16 sps:$4 sm:$0xff]  }
 0x4ce   :  { %5053 = vmatprep.subr.bf16.mxu1 %v11917_v24 }
 0x4d0   :  { %v4000_v17 = vpop.f32.mrf.mxu0 }
 0x4d1   :  { %v4001_v28 = vadd.f32 %v4000_v17, %v3309_v26  ;;  %v11908_v17 = vld [vmem:[#allocation9 + $0x52c] ss:$16 sps:$4 sm:$0xff]  }
 0x4d2   :  { %v4002_v19 = vpop.f32.mrf.mxu0 }
 0x4d3   :  { %v4003_v32 = vadd.f32 %v4002_v19, %v3313_v27 }
 0x4d4   :  { %v4004_v21 = vpop.f32.mrf.mxu0 }
 0x4d6   :  { %v4005_v23 = vpop.f32.mrf.mxu0 }
 0x510   :  { %v4041_v29 = vpop.f32.mrf.mxu1  ;;  %v13179_v30 = vpop.f32.mrf.mxu0 }
 0x511   :  { %v4042_v33 = vadd.f32 %v4041_v29, %v4001_v28  ;;  %v4083_v19 = vadd.f32 %v13179_v30, %v3317_v11  ;;  %v11912_v28 = vld [vmem:[#allocation9 + $0x508] ss:$16 sps:$4 sm:$0xff]   ;;  %v11989_v11 = vld [vmem:[#allocation9 + $0x9e4] ss:$16 sps:$4 sm:$0xff]  }
 0x512   :  { %v4043_v34 = vpop.f32.mrf.mxu1  ;;  %v13181_v35 = vpop.f32.mrf.mxu0  ;;  %v11915_v30 = vld [vmem:[#allocation9 + $0x6e8] ss:$16 sps:$4 sm:$0xff]  }
 0x513   :  { %v4044_v38 = vadd.f32 %v4043_v34, %v4003_v32  ;;  %v4130_v39 = vmax.f32 %v4042_v33, 0.0  ;;  %v4085_v23 = vadd.f32 %v13181_v35, %v3321_v18  ;;  %v11918_v35 = vld [vmem:[#allocation9 + $0x6c8] ss:$16 sps:$4 sm:$0xff]   ;;  %v11950_v18 = vld [vmem:[#allocation9 + $0x78c] ss:$16 sps:$4 sm:$0xff]  }
 0x514   :  { %v4045_v40 = vpop.f32.mrf.mxu1  ;;  %v4086_v41 = vpop.f32.mrf.mxu0 }
 0x515   :  { %v4131_v42 = vmax.f32 %v4044_v38, 0.0  ;;  %v13183_v45 = vpack.c.bf16 %v4130_v39, %v4130_v39  ;;  %v11920_v39 = vld [vmem:[#allocation9 + $0x6cc] ss:$16 sps:$4 sm:$0xff]   ;;  %v11921_v41 = vld [vmem:[#allocation9 + $0x6a8] ss:$16 sps:$4 sm:$0xff]  }
 0x516   :  { %v4046_v43 = vpop.f32.mrf.mxu1  ;;  %v4087_v46 = vpop.f32.mrf.mxu0  ;;  %v11923_v40 = vld [vmem:[#allocation9 + $0x6ac] ss:$16 sps:$4 sm:$0xff]  }
 0x517   :  { %v4135_v47 = vpack.c.bf16 %v4131_v42, %v4131_v42  ;;  %v11926_v42 = vld [vmem:[#allocation9 + $0x68c] ss:$16 sps:$4 sm:$0xff]   ;;  %v11963_v43 = vld [vmem:[#allocation9 + $0x8e0] ss:$16 sps:$4 sm:$0xff]   ;;  %v11965_v46 = vld [vmem:[#allocation9 + $0x8e4] ss:$16 sps:$4 sm:$0xff]  }
 0x519   :  { %4962 = vmatprep.mubr.bf16.mxu0 %v4135_v47 }
 0x51a   :  { %4963 = vmatmul.mubr.bf16.vlgmr.msra.gmra.mxu0 %v13183_v45 }
 0x51b   :  { %5013 = vmatpush1.bf16.msra.mxu0 %v11822_v48  ;;  %5044 = vmatprep.mubr.bf16.mxu0 %v4135_v47  ;;  %v11968_v47 = vld [vmem:[#allocation9 + $0x8c4] ss:$16 sps:$4 sm:$0xff]   ;;  %v11924_v48 = vld [vmem:[#allocation9 + $0x688] ss:$16 sps:$4 sm:$0xff]  }
 0x51c   :  { %5014 = vmatprep.subr.bf16.mxu0 %v11830_v49  ;;  %v11966_v49 = vld [vmem:[#allocation9 + $0x8c0] ss:$16 sps:$4 sm:$0xff]  }
 0x51f   :  { %5015 = vmatpush1.bf16.msra.mxu0 %v11828_v52  ;;  %v11929_v52 = vld [vmem:[#allocation9 + $0x66c] ss:$16 sps:$4 sm:$0xff]  }
 0x520   :  { %5016 = vmatprep.subr.bf16.mxu0 %v11836_v55  ;;  %v11927_v55 = vld [vmem:[#allocation9 + $0x668] ss:$16 sps:$4 sm:$0xff]  }
 0x523   :  { %5017 = vmatpush1.bf16.msra.mxu0 %v11834_v56  ;;  %v11969_v56 = vld [vmem:[#allocation9 + $0x8a0] ss:$16 sps:$4 sm:$0xff]  }
 0x524   :  { %5018 = vmatprep.subr.bf16.mxu0 %v11842_v57  ;;  %v11932_v57 = vld [vmem:[#allocation9 + $0x64c] ss:$16 sps:$4 sm:$0xff]  }
 0x527   :  { %5019 = vmatpush1.bf16.msra.mxu0 %v11840_v44  ;;  %v11974_v44 = vld [vmem:[#allocation9 + $0x884] ss:$16 sps:$4 sm:$0xff]  }
 0x528   :  { %5020 = vmatprep.subr.bf16.mxu0 %v11848_v58  ;;  %v11930_v58 = vld [vmem:[#allocation9 + $0x648] ss:$16 sps:$4 sm:$0xff]  }
 0x52b   :  { %5021 = vmatpush1.bf16.msra.mxu0 %v11846_v53  ;;  %v11972_v53 = vld [vmem:[#allocation9 + $0x880] ss:$16 sps:$4 sm:$0xff]  }
 0x52c   :  { %5022 = vmatprep.subr.bf16.mxu0 %v11854_v37  ;;  %v11935_v37 = vld [vmem:[#allocation9 + $0x62c] ss:$16 sps:$4 sm:$0xff]  }
 0x52f   :  { %5023 = vmatpush1.bf16.msra.mxu0 %v11852_v50  ;;  %v11977_v50 = vld [vmem:[#allocation9 + $0x864] ss:$16 sps:$4 sm:$0xff]  }
 0x530   :  { %5024 = vmatprep.subr.bf16.mxu0 %v11860_v59  ;;  %v11933_v59 = vld [vmem:[#allocation9 + $0x628] ss:$16 sps:$4 sm:$0xff]  }
 0x533   :  { %5025 = vmatpush1.bf16.msra.mxu0 %v11858_v60  ;;  %v11975_v60 = vld [vmem:[#allocation9 + $0x860] ss:$16 sps:$4 sm:$0xff]  }
 0x534   :  { %5026 = vmatprep.subr.bf16.mxu0 %v11866_v62  ;;  %v11938_v62 = vld [vmem:[#allocation9 + $0x60c] ss:$16 sps:$4 sm:$0xff]  }
 0x537   :  { %5027 = vmatpush1.bf16.msra.mxu0 %v11864_v63  ;;  %v11980_v63 = vld [vmem:[#allocation9 + $0x844] ss:$16 sps:$4 sm:$0xff]  }
 0x538   :  { %5028 = vmatprep.subr.bf16.mxu0 %v11872_v1  ;;  %v11936_v1 = vld [vmem:[#allocation9 + $0x608] ss:$16 sps:$4 sm:$0xff]  }
 0x53b   :  { %5029 = vmatpush2.bf16.msra.mxu0 %v11870_v2  ;;  %v11978_v2 = vld [vmem:[#allocation9 + $0x840] ss:$16 sps:$4 sm:$0xff]  }
 0x53c   :  { %5030 = vmatprep.subr.bf16.mxu0 %v11878_v3  ;;  %v11941_v3 = vld [vmem:[#allocation9 + $0x7ec] ss:$16 sps:$4 sm:$0xff]  }
 0x53f   :  { %5031 = vmatpush2.bf16.msra.mxu0 %v11876_v4  ;;  %v11983_v4 = vld [vmem:[#allocation9 + $0x824] ss:$16 sps:$4 sm:$0xff]  }
 0x540   :  { %5032 = vmatprep.subr.bf16.mxu0 %v11884_v5  ;;  %v11939_v5 = vld [vmem:[#allocation9 + $0x7e8] ss:$16 sps:$4 sm:$0xff]  }
 0x543   :  { %5033 = vmatpush2.bf16.msra.mxu0 %v11882_v6  ;;  %v11981_v6 = vld [vmem:[#allocation9 + $0x820] ss:$16 sps:$4 sm:$0xff]  }
 0x544   :  { %5034 = vmatprep.subr.bf16.mxu0 %v11890_v7  ;;  %v11944_v7 = vld [vmem:[#allocation9 + $0x7cc] ss:$16 sps:$4 sm:$0xff]  }
 0x547   :  { %5035 = vmatpush2.bf16.msra.mxu0 %v11888_v61  ;;  %v11986_v61 = vld [vmem:[#allocation9 + $0x804] ss:$16 sps:$4 sm:$0xff]  }
 0x548   :  { %5036 = vmatprep.subr.bf16.mxu0 %v11896_v9  ;;  %v11942_v9 = vld [vmem:[#allocation9 + $0x7c8] ss:$16 sps:$4 sm:$0xff]  }
 0x54b   :  { %5037 = vmatpush2.bf16.msra.mxu0 %v11894_v8  ;;  %v11984_v8 = vld [vmem:[#allocation9 + $0x800] ss:$16 sps:$4 sm:$0xff]  }
 0x54c   :  { %5038 = vmatprep.subr.bf16.mxu0 %v11902_v10  ;;  %v11947_v10 = vld [vmem:[#allocation9 + $0x7ac] ss:$16 sps:$4 sm:$0xff]  }
 0x54f   :  { %5039 = vmatpush2.bf16.msra.mxu0 %v11900_v12  ;;  %v11945_v12 = vld [vmem:[#allocation9 + $0x7a8] ss:$16 sps:$4 sm:$0xff]  }
 0x550   :  { %v4123_v21 = vpop.f32.mrf.mxu1  ;;  %5040 = vmatprep.subr.bf16.mxu0 %v11908_v17  ;;  %v11987_v17 = vld [vmem:[#allocation9 + $0x9e0] ss:$16 sps:$4 sm:$0xff]  }
 0x551   :  { %v4124_v24 = vadd.f32 %v4123_v21, %v4083_v19  ;;  %v11992_v19 = vld [vmem:[#allocation9 + $0x9c4] ss:$16 sps:$4 sm:$0xff]   ;;  %v11990_v21 = vld [vmem:[#allocation9 + $0x9c0] ss:$16 sps:$4 sm:$0xff]  }
 0x552   :  { %v4125_v26 = vpop.f32.mrf.mxu1 }
 0x553   :  { %v4126_v27 = vadd.f32 %v4125_v26, %v4085_v23  ;;  %5041 = vmatpush2.bf16.msra.mxu0 %v11906_v20  ;;  %v4132_v29 = vmax.f32 %v4124_v24, 0.0  ;;  %v11948_v20 = vld [vmem:[#allocation9 + $0x788] ss:$16 sps:$4 sm:$0xff]   ;;  %v11995_v23 = vld [vmem:[#allocation9 + $0x9a4] ss:$16 sps:$4 sm:$0xff]  }
 0x554   :  { %v4127_v32 = vpop.f32.mrf.mxu1  ;;  %5042 = vmatprep.subr.bf16.mxu0 %v11914_v22  ;;  %v11953_v22 = vld [vmem:[#allocation9 + $0x76c] ss:$16 sps:$4 sm:$0xff]   ;;  %v11951_v24 = vld [vmem:[#allocation9 + $0x768] ss:$16 sps:$4 sm:$0xff]   ;;  %v11993_v26 = vld [vmem:[#allocation9 + $0x9a0] ss:$16 sps:$4 sm:$0xff]  }
 0x555   :  { %v4133_v33 = vmax.f32 %v4126_v27, 0.0  ;;  %v13192_v38 = vpack.c.bf16 %v4132_v29, %v4132_v29  ;;  %v11956_v27 = vld [vmem:[#allocation9 + $0x74c] ss:$16 sps:$4 sm:$0xff]   ;;  %v11954_v29 = vld [vmem:[#allocation9 + $0x748] ss:$16 sps:$4 sm:$0xff]  }
 0x556   :  { %v4128_v34 = vpop.f32.mrf.mxu1  ;;  %v11996_v32 = vld [vmem:[#allocation9 + $0x980] ss:$16 sps:$4 sm:$0xff]  }
 0x557   :  { %v4137_v25 = vpack.c.bf16 %v4133_v33, %v4133_v33  ;;  %5043 = vmatpush2.bf16.msra.mxu0 %v11912_v28  ;;  %v11998_v28 = vld [vmem:[#allocation9 + $0x984] ss:$16 sps:$4 sm:$0xff]   ;;  %v11959_v33 = vld [vmem:[#allocation9 + $0x72c] ss:$16 sps:$4 sm:$0xff]  }
 0x558   :  { %5894 = vmatprep.subr.bf16.mxu0 %v11965_v46  ;;  %v12001_v34 = vld [vmem:[#allocation9 + $0x964] ss:$16 sps:$4 sm:$0xff]  }
 0x559   :  { %5003 = vmatprep.mubr.bf16.mxu1 %v4137_v25  ;;  %v12010_v46 = vld [vmem:[#allocation9 + $0x904] ss:$16 sps:$4 sm:$0xff]  }
 0x55a   :  { %5004 = vmatmul.mubr.bf16.vlgmr.msra.gmra.mxu1 %v13192_v38  ;;  %5045 = vmatmul.mubr.bf16.vlgmr.msra.gmra.mxu0 %v13183_v45  ;;  %v11971_v45 = vld [vmem:[#allocation9 + $0x8a4] ss:$16 sps:$4 sm:$0xff]  }
 0x55b   :  { %5054 = vmatpush1.bf16.msra.mxu1 %v11915_v30  ;;  %5085 = vmatprep.mubr.bf16.mxu1 %v4137_v25  ;;  %v11957_v25 = vld [vmem:[#allocation9 + $0x728] ss:$16 sps:$4 sm:$0xff]   ;;  %v11999_v30 = vld [vmem:[#allocation9 + $0x960] ss:$16 sps:$4 sm:$0xff]  }
 0x55c   :  { %5055 = vmatprep.subr.bf16.mxu1 %v11920_v39  ;;  %5895 = vmatpush1.bf16.msra.mxu0 %v11963_v43  ;;  %v11962_v39 = vld [vmem:[#allocation9 + $0x70c] ss:$16 sps:$4 sm:$0xff]   ;;  %v12005_v43 = vld [vmem:[#allocation9 + $0x920] ss:$16 sps:$4 sm:$0xff]  }
 0x55d   :  { %5896 = vmatprep.subr.bf16.mxu0 %v11968_v47  ;;  %v12008_v47 = vld [vmem:[#allocation9 + $0x900] ss:$16 sps:$4 sm:$0xff]  }
 0x55f   :  { %5056 = vmatpush1.bf16.msra.mxu1 %v11918_v35  ;;  %v12004_v35 = vld [vmem:[#allocation9 + $0x944] ss:$16 sps:$4 sm:$0xff]  }
 0x560   :  { %5057 = vmatprep.subr.bf16.mxu1 %v11923_v40  ;;  %5897 = vmatpush1.bf16.msra.mxu0 %v11966_v49  ;;  %v11960_v40 = vld [vmem:[#allocation9 + $0x708] ss:$16 sps:$4 sm:$0xff]   ;;  %v12013_v49 = vld [vmem:[#allocation9 + $0xae4] ss:$16 sps:$4 sm:$0xff]  }
 0x561   :  { %5898 = vmatprep.subr.bf16.mxu0 %v11971_v45  ;;  %v12017_v45 = vld [vmem:[#allocation9 + $0xac0] ss:$16 sps:$4 sm:$0xff]  }
 0x563   :  { %5058 = vmatpush1.bf16.msra.mxu1 %v11921_v41  ;;  %v12002_v41 = vld [vmem:[#allocation9 + $0x940] ss:$16 sps:$4 sm:$0xff]  }
 0x564   :  { %5059 = vmatprep.subr.bf16.mxu1 %v11926_v42  ;;  %5899 = vmatpush1.bf16.msra.mxu0 %v11969_v56  ;;  %v12007_v42 = vld [vmem:[#allocation9 + $0x924] ss:$16 sps:$4 sm:$0xff]   ;;  %v12023_v56 = vld [vmem:[#allocation9 + $0xaa0] ss:$16 sps:$4 sm:$0xff]  }
 0x565   :  { %5900 = vmatprep.subr.bf16.mxu0 %v11974_v44  ;;  %v12031_v44 = vld [vmem:[#allocation9 + $0xa84] ss:$16 sps:$4 sm:$0xff]  }
 0x567   :  { %5060 = vmatpush1.bf16.msra.mxu1 %v11924_v48  ;;  %v12011_v48 = vld [vmem:[#allocation9 + $0xae0] ss:$16 sps:$4 sm:$0xff]  }
 0x568   :  { %5061 = vmatprep.subr.bf16.mxu1 %v11929_v52  ;;  %5901 = vmatpush1.bf16.msra.mxu0 %v11972_v53  ;;  %v12016_v52 = vld [vmem:[#allocation9 + $0x8ec] ss:$16 sps:$4 sm:$0xff]   ;;  %v12037_v53 = vld [vmem:[#allocation9 + $0xa64] ss:$16 sps:$4 sm:$0xff]  }
 0x569   :  { %5902 = vmatprep.subr.bf16.mxu0 %v11977_v50  ;;  %v12043_v50 = vld [vmem:[#allocation9 + $0xa44] ss:$16 sps:$4 sm:$0xff]  }
 0x56b   :  { %5062 = vmatpush1.bf16.msra.mxu1 %v11927_v55  ;;  %v12019_v55 = vld [vmem:[#allocation9 + $0xac4] ss:$16 sps:$4 sm:$0xff]  }
 0x56c   :  { %5063 = vmatprep.subr.bf16.mxu1 %v11932_v57  ;;  %5903 = vmatpush1.bf16.msra.mxu0 %v11975_v60  ;;  %v12029_v57 = vld [vmem:[#allocation9 + $0xa80] ss:$16 sps:$4 sm:$0xff]   ;;  %v12049_v60 = vld [vmem:[#allocation9 + $0xa24] ss:$16 sps:$4 sm:$0xff]  }
 0x56d   :  { %5904 = vmatprep.subr.bf16.mxu0 %v11980_v63  ;;  %v12055_v63 = vld [vmem:[#allocation9 + $0xa04] ss:$16 sps:$4 sm:$0xff]  }
 0x56f   :  { %5064 = vmatpush1.bf16.msra.mxu1 %v11930_v58  ;;  %v12035_v58 = vld [vmem:[#allocation9 + $0xa60] ss:$16 sps:$4 sm:$0xff]  }
 0x570   :  { %5065 = vmatprep.subr.bf16.mxu1 %v11935_v37  ;;  %5905 = vmatpush1.bf16.msra.mxu0 %v11978_v2  ;;  %v12041_v37 = vld [vmem:[#allocation9 + $0xa40] ss:$16 sps:$4 sm:$0xff]   ;;  %v12061_v2 = vld [vmem:[#allocation9 + $0xbe4] ss:$16 sps:$4 sm:$0xff]  }
 0x571   :  { %5906 = vmatprep.subr.bf16.mxu0 %v11983_v4  ;;  %v12067_v4 = vld [vmem:[#allocation9 + $0xbc4] ss:$16 sps:$4 sm:$0xff]  }
 0x573   :  { %5066 = vmatpush1.bf16.msra.mxu1 %v11933_v59  ;;  %v12047_v59 = vld [vmem:[#allocation9 + $0xa20] ss:$16 sps:$4 sm:$0xff]  }
 0x574   :  { %5067 = vmatprep.subr.bf16.mxu1 %v11938_v62  ;;  %5907 = vmatpush1.bf16.msra.mxu0 %v11981_v6  ;;  %v12053_v62 = vld [vmem:[#allocation9 + $0xa00] ss:$16 sps:$4 sm:$0xff]   ;;  %v12073_v6 = vld [vmem:[#allocation9 + $0xba4] ss:$16 sps:$4 sm:$0xff]  }
 0x575   :  { %5908 = vmatprep.subr.bf16.mxu0 %v11986_v61  ;;  %v12079_v61 = vld [vmem:[#allocation9 + $0xb84] ss:$16 sps:$4 sm:$0xff]  }
 0x577   :  { %5068 = vmatpush1.bf16.msra.mxu1 %v11936_v1  ;;  %v12059_v1 = vld [vmem:[#allocation9 + $0xbe0] ss:$16 sps:$4 sm:$0xff]  }
 0x578   :  { %5069 = vmatprep.subr.bf16.mxu1 %v11941_v3  ;;  %5909 = vmatpush1.bf16.msra.mxu0 %v11984_v8  ;;  %v12065_v3 = vld [vmem:[#allocation9 + $0xbc0] ss:$16 sps:$4 sm:$0xff]   ;;  %v12085_v8 = vld [vmem:[#allocation9 + $0xb64] ss:$16 sps:$4 sm:$0xff]  }
 0x579   :  { %5910 = vmatprep.subr.bf16.mxu0 %v11989_v11  ;;  %v12091_v11 = vld [vmem:[#allocation9 + $0xb44] ss:$16 sps:$4 sm:$0xff]  }
 0x57b   :  { %5070 = vmatpush2.bf16.msra.mxu1 %v11939_v5  ;;  %v12071_v5 = vld [vmem:[#allocation9 + $0xba0] ss:$16 sps:$4 sm:$0xff]  }
 0x57c   :  { %5071 = vmatprep.subr.bf16.mxu1 %v11944_v7  ;;  %5911 = vmatpush2.bf16.msra.mxu0 %v11987_v17  ;;  %v12077_v7 = vld [vmem:[#allocation9 + $0xb80] ss:$16 sps:$4 sm:$0xff]  }
 0x57d   :  { %5912 = vmatprep.subr.bf16.mxu0 %v11992_v19 }
 0x57f   :  { %5072 = vmatpush2.bf16.msra.mxu1 %v11942_v9  ;;  %v12083_v9 = vld [vmem:[#allocation9 + $0xb60] ss:$16 sps:$4 sm:$0xff]  }
 0x580   :  { %5073 = vmatprep.subr.bf16.mxu1 %v11947_v10  ;;  %5913 = vmatpush2.bf16.msra.mxu0 %v11990_v21  ;;  %v12089_v10 = vld [vmem:[#allocation9 + $0xb40] ss:$16 sps:$4 sm:$0xff]  }
 0x581   :  { %5914 = vmatprep.subr.bf16.mxu0 %v11995_v23 }
 0x583   :  { %5074 = vmatpush2.bf16.msra.mxu1 %v11945_v12  ;;  %v12097_v12 = vld [vmem:[#allocation9 + $0xb24] ss:$16 sps:$4 sm:$0xff]  }
 0x584   :  { %5075 = vmatprep.subr.bf16.mxu1 %v11950_v18  ;;  %5915 = vmatpush2.bf16.msra.mxu0 %v11993_v26  ;;  %v12095_v18 = vld [vmem:[#allocation9 + $0xb20] ss:$16 sps:$4 sm:$0xff]   ;;  %v13197_v26 = vld [vmem:[#allocation10 + $0x4] sm:$0xf] }
 0x585   :  { %5916 = vmatprep.subr.bf16.mxu0 %v11998_v28  ;;  %v4277_v28 = vrot.slane %v13197_v26, %v13083_v15 }
 0x587   :  { %5076 = vmatpush2.bf16.msra.mxu1 %v11948_v20  ;;  %v12103_v20 = vld [vmem:[#allocation9 + $0xb04] ss:$16 sps:$4 sm:$0xff]  }
 0x588   :  { %5077 = vmatprep.subr.bf16.mxu1 %v11953_v22  ;;  %5917 = vmatpush2.bf16.msra.mxu0 %v11996_v32  ;;  %v12101_v22 = vld [vmem:[#allocation9 + $0xb00] ss:$16 sps:$4 sm:$0xff]  }
 0x589   :  { %5918 = vmatprep.subr.bf16.mxu0 %v12001_v34 }
 0x58b   :  { %5078 = vmatpush2.bf16.msra.mxu1 %v11951_v24  ;;  %v12109_v24 = vld [vmem:[#allocation9 + $0xaec] ss:$16 sps:$4 sm:$0xff]  }
 0x58c   :  { %5079 = vmatprep.subr.bf16.mxu1 %v11956_v27  ;;  %5919 = vmatpush2.bf16.msra.mxu0 %v11999_v30  ;;  %v4273_v27 = vrot.slane %v13197_v26, %v13079_v13 }
 0x58d   :  { %5920 = vmatprep.subr.bf16.mxu0 %v12004_v35 }
 0x58f   :  { %5080 = vmatpush2.bf16.msra.mxu1 %v11954_v29 }
 0x590   :  { %5081 = vmatprep.subr.bf16.mxu1 %v11959_v33  ;;  %5921 = vmatpush2.bf16.msra.mxu0 %v12002_v41 }
 0x591   :  { %5922 = vmatprep.subr.bf16.mxu0 %v12007_v42 }
 0x593   :  { %5082 = vmatpush2.bf16.msra.mxu1 %v11957_v25 }
 0x594   :  { %5083 = vmatprep.subr.bf16.mxu1 %v11962_v39  ;;  %5923 = vmatpush2.bf16.msra.mxu0 %v12005_v43 }
 0x595   :  { %5924 = vmatprep.subr.bf16.mxu0 %v12010_v46 }
 0x597   :  { %5084 = vmatpush2.bf16.msra.mxu1 %v11960_v40 }
 0x598   :  { %5925 = vmatpush2.bf16.msra.mxu0 %v12008_v47  ;;  %5935 = vmatprep.subr.bf16.mxu1 %v12013_v49  ;;  %v12014_v49 = vld [vmem:[#allocation9 + $0x8e8] ss:$16 sps:$4 sm:$0xff]  }
 0x599   :  { %5976 = vmatprep.subr.bf16.mxu0 %v12016_v52 }
 0x59a   :  { %5086 = vmatmul.mubr.bf16.vlgmr.msra.gmra.mxu1 %v13192_v38  ;;  %v12025_v38 = vld [vmem:[#allocation9 + $0xaa4] ss:$16 sps:$4 sm:$0xff]  }
 0x59b   :  { %5936 = vmatpush1.bf16.msra.mxu1 %v12011_v48 }
 0x59c   :  { %5937 = vmatprep.subr.bf16.mxu1 %v12019_v55  ;;  %v12020_v55 = vld [vmem:[#allocation9 + $0x8c8] ss:$16 sps:$4 sm:$0xff]  }
 0x59f   :  { %5938 = vmatpush1.bf16.msra.mxu1 %v12017_v45  ;;  %v12022_v45 = vld [vmem:[#allocation9 + $0x8cc] ss:$16 sps:$4 sm:$0xff]  }
 0x5a0   :  { %5939 = vmatprep.subr.bf16.mxu1 %v12025_v38  ;;  %v12026_v38 = vld [vmem:[#allocation9 + $0x8a8] ss:$16 sps:$4 sm:$0xff]  }
 0x5a3   :  { %5940 = vmatpush1.bf16.msra.mxu1 %v12023_v56  ;;  %v12028_v56 = vld [vmem:[#allocation9 + $0x8ac] ss:$16 sps:$4 sm:$0xff]  }
 0x5a4   :  { %5941 = vmatprep.subr.bf16.mxu1 %v12031_v44  ;;  %v12032_v44 = vld [vmem:[#allocation9 + $0x888] ss:$16 sps:$4 sm:$0xff]  }
 0x5a7   :  { %5942 = vmatpush1.bf16.msra.mxu1 %v12029_v57  ;;  %v12034_v57 = vld [vmem:[#allocation9 + $0x88c] ss:$16 sps:$4 sm:$0xff]  }
 0x5a8   :  { %5943 = vmatprep.subr.bf16.mxu1 %v12037_v53  ;;  %v12038_v53 = vld [vmem:[#allocation9 + $0x868] ss:$16 sps:$4 sm:$0xff]  }
 0x5ab   :  { %5944 = vmatpush1.bf16.msra.mxu1 %v12035_v58  ;;  %v12040_v58 = vld [vmem:[#allocation9 + $0x86c] ss:$16 sps:$4 sm:$0xff]  }
 0x5ac   :  { %5945 = vmatprep.subr.bf16.mxu1 %v12043_v50  ;;  %v12044_v50 = vld [vmem:[#allocation9 + $0x848] ss:$16 sps:$4 sm:$0xff]  }
 0x5af   :  { %5946 = vmatpush1.bf16.msra.mxu1 %v12041_v37  ;;  %v12046_v37 = vld [vmem:[#allocation9 + $0x84c] ss:$16 sps:$4 sm:$0xff]  }
 0x5b0   :  { %5947 = vmatprep.subr.bf16.mxu1 %v12049_v60  ;;  %v12050_v60 = vld [vmem:[#allocation9 + $0x828] ss:$16 sps:$4 sm:$0xff]  }
 0x5b3   :  { %5948 = vmatpush1.bf16.msra.mxu1 %v12047_v59  ;;  %v12052_v59 = vld [vmem:[#allocation9 + $0x82c] ss:$16 sps:$4 sm:$0xff]  }
 0x5b4   :  { %5949 = vmatprep.subr.bf16.mxu1 %v12055_v63  ;;  %v12056_v63 = vld [vmem:[#allocation9 + $0x808] ss:$16 sps:$4 sm:$0xff]  }
 0x5b7   :  { %5950 = vmatpush1.bf16.msra.mxu1 %v12053_v62  ;;  %v12058_v62 = vld [vmem:[#allocation9 + $0x80c] ss:$16 sps:$4 sm:$0xff]  }
 0x5b8   :  { %5951 = vmatprep.subr.bf16.mxu1 %v12061_v2  ;;  %v12062_v2 = vld [vmem:[#allocation9 + $0x9e8] ss:$16 sps:$4 sm:$0xff]  }
 0x5bb   :  { %5952 = vmatpush2.bf16.msra.mxu1 %v12059_v1  ;;  %v12064_v1 = vld [vmem:[#allocation9 + $0x9ec] ss:$16 sps:$4 sm:$0xff]  }
 0x5bc   :  { %5953 = vmatprep.subr.bf16.mxu1 %v12067_v4  ;;  %v12068_v4 = vld [vmem:[#allocation9 + $0x9c8] ss:$16 sps:$4 sm:$0xff]  }
 0x5bf   :  { %5954 = vmatpush2.bf16.msra.mxu1 %v12065_v3  ;;  %v12070_v3 = vld [vmem:[#allocation9 + $0x9cc] ss:$16 sps:$4 sm:$0xff]  }
 0x5c0   :  { %5955 = vmatprep.subr.bf16.mxu1 %v12073_v6  ;;  %v12074_v6 = vld [vmem:[#allocation9 + $0x9a8] ss:$16 sps:$4 sm:$0xff]  }
 0x5c3   :  { %5956 = vmatpush2.bf16.msra.mxu1 %v12071_v5  ;;  %v12076_v5 = vld [vmem:[#allocation9 + $0x9ac] ss:$16 sps:$4 sm:$0xff]  }
 0x5c4   :  { %5957 = vmatprep.subr.bf16.mxu1 %v12079_v61  ;;  %v12080_v61 = vld [vmem:[#allocation9 + $0x988] ss:$16 sps:$4 sm:$0xff]  }
 0x5c7   :  { %5958 = vmatpush2.bf16.msra.mxu1 %v12077_v7  ;;  %v12082_v7 = vld [vmem:[#allocation9 + $0x98c] ss:$16 sps:$4 sm:$0xff]  }
 0x5c8   :  { %5959 = vmatprep.subr.bf16.mxu1 %v12085_v8  ;;  %v12086_v8 = vld [vmem:[#allocation9 + $0x968] ss:$16 sps:$4 sm:$0xff]  }
 0x5cb   :  { %5960 = vmatpush2.bf16.msra.mxu1 %v12083_v9  ;;  %v12088_v9 = vld [vmem:[#allocation9 + $0x96c] ss:$16 sps:$4 sm:$0xff]  }
 0x5cc   :  { %5961 = vmatprep.subr.bf16.mxu1 %v12091_v11  ;;  %v4281_v11 = vrot.slane %v13197_v26, %v13081_v14 }
 0x5cf   :  { %5962 = vmatpush2.bf16.msra.mxu1 %v12089_v10  ;;  %v12094_v10 = vld [vmem:[#allocation9 + $0x94c] ss:$16 sps:$4 sm:$0xff]  }
 0x5d0   :  { %5963 = vmatprep.subr.bf16.mxu1 %v12097_v12  ;;  %v12092_v12 = vld [vmem:[#allocation9 + $0x948] ss:$16 sps:$4 sm:$0xff]  }
 0x5d3   :  { %5964 = vmatpush2.bf16.msra.mxu1 %v12095_v18  ;;  %v4285_v18 = vrot.slane %v13197_v26, %v13085_v16 }
 0x5d4   :  { %5965 = vmatprep.subr.bf16.mxu1 %v12103_v20  ;;  %v12098_v20 = vld [vmem:[#allocation9 + $0x928] ss:$16 sps:$4 sm:$0xff]  }
 0x5d7   :  { %5966 = vmatpush2.bf16.msra.mxu1 %v12101_v22  ;;  %v12106_v22 = vld [vmem:[#allocation9 + $0x90c] ss:$16 sps:$4 sm:$0xff]  }
 0x5d8   :  { %6017 = vmatprep.subr.bf16.mxu1 %v12109_v24 }
 0x5da   :  { %v4964_v17 = vpop.f32.mrf.mxu0 }
 0x5db   :  { %v4965_v29 = vadd.f32 %v4964_v17, %v4273_v27  ;;  %v12100_v17 = vld [vmem:[#allocation9 + $0x92c] ss:$16 sps:$4 sm:$0xff]  }
 0x5dc   :  { %v4966_v19 = vpop.f32.mrf.mxu0 }
 0x5dd   :  { %v4967_v34 = vadd.f32 %v4966_v19, %v4277_v28 }
 0x5de   :  { %v4968_v21 = vpop.f32.mrf.mxu0 }
 0x5e0   :  { %v4969_v23 = vpop.f32.mrf.mxu0 }
 0x61a   :  { %v5005_v32 = vpop.f32.mrf.mxu1  ;;  %v13203_v33 = vpop.f32.mrf.mxu0 }
 0x61b   :  { %v5006_v25 = vadd.f32 %v5005_v32, %v4965_v29  ;;  %v5047_v19 = vadd.f32 %v13203_v33, %v4281_v11  ;;  %v12104_v29 = vld [vmem:[#allocation9 + $0x908] ss:$16 sps:$4 sm:$0xff]  }
 0x61c   :  { %v5007_v30 = vpop.f32.mrf.mxu1  ;;  %v13205_v39 = vpop.f32.mrf.mxu0  ;;  %v12107_v33 = vld [vmem:[#allocation9 + $0xae8] ss:$16 sps:$4 sm:$0xff]  }
 0x61d   :  { %v5008_v35 = vadd.f32 %v5007_v30, %v4967_v34  ;;  %v5094_v40 = vmax.f32 %v5006_v25, 0.0  ;;  %v5049_v23 = vadd.f32 %v13205_v39, %v4285_v18  ;;  %v12110_v39 = vld [vmem:[#allocation9 + $0xac8] ss:$16 sps:$4 sm:$0xff]   ;;  %v12151_v18 = vld [vmem:[#allocation9 + $0xb2c] ss:$16 sps:$4 sm:$0xff]  }
 0x61e   :  { %v5009_v41 = vpop.f32.mrf.mxu1  ;;  %v5050_v42 = vpop.f32.mrf.mxu0  ;;  %v12143_v11 = vld [vmem:[#allocation9 + $0xb68] ss:$16 sps:$4 sm:$0xff]  }
 0x61f   :  { %v5095_v43 = vmax.f32 %v5008_v35, 0.0  ;;  %v13207_v52 = vpack.c.bf16 %v5094_v40, %v5094_v40  ;;  %v12112_v40 = vld [vmem:[#allocation9 + $0xacc] ss:$16 sps:$4 sm:$0xff]   ;;  %v12113_v42 = vld [vmem:[#allocation9 + $0xaa8] ss:$16 sps:$4 sm:$0xff]  }
 0x620   :  { %v5010_v46 = vpop.f32.mrf.mxu1  ;;  %v5051_v47 = vpop.f32.mrf.mxu0  ;;  %v12115_v41 = vld [vmem:[#allocation9 + $0xaac] ss:$16 sps:$4 sm:$0xff]  }
 0x621   :  { %v5099_v48 = vpack.c.bf16 %v5095_v43, %v5095_v43  ;;  %v12118_v43 = vld [vmem:[#allocation9 + $0xa8c] ss:$16 sps:$4 sm:$0xff]   ;;  %v12155_v46 = vld [vmem:[#allocation12 + $0x78] sm:$0xff]  }
 0x622   :  { %v12156_v47 = vld [vmem:[#allocation12 + $0x38] sm:$0xff]  }
 0x623   :  { %5926 = vmatprep.mubr.bf16.mxu0 %v5099_v48 }
 0x624   :  { %5927 = vmatmul.mubr.bf16.vlgmr.msra.gmra.mxu0 %v13207_v52 }
 0x625   :  { %5977 = vmatpush1.bf16.msra.mxu0 %v12014_v49  ;;  %6008 = vmatprep.mubr.bf16.mxu0 %v5099_v48  ;;  %v12157_v48 = vld [vmem:[#allocation12 + $0x70] sm:$0xff]  }
 0x626   :  { %5978 = vmatprep.subr.bf16.mxu0 %v12022_v45  ;;  %v12116_v49 = vld [vmem:[#allocation9 + $0xa88] ss:$16 sps:$4 sm:$0xff]  }
 0x627   :  { %v12158_v45 = vld [vmem:[#allocation12 + $0x30] sm:$0xff]  }
 0x629   :  { %5979 = vmatpush1.bf16.msra.mxu0 %v12020_v55  ;;  %v12121_v55 = vld [vmem:[#allocation9 + $0xa6c] ss:$16 sps:$4 sm:$0xff]  }
 0x62a   :  { %5980 = vmatprep.subr.bf16.mxu0 %v12028_v56  ;;  %v12119_v56 = vld [vmem:[#allocation9 + $0xa68] ss:$16 sps:$4 sm:$0xff]  }
 0x62d   :  { %5981 = vmatpush1.bf16.msra.mxu0 %v12026_v38  ;;  %v12160_v38 = vld [vmem:[#allocation12 + $0x28] sm:$0xff]  }
 0x62e   :  { %5982 = vmatprep.subr.bf16.mxu0 %v12034_v57  ;;  %v12124_v57 = vld [vmem:[#allocation9 + $0xa4c] ss:$16 sps:$4 sm:$0xff]  }
 0x631   :  { %5983 = vmatpush1.bf16.msra.mxu0 %v12032_v44  ;;  %v12161_v44 = vld [vmem:[#allocation12 + $0x60] sm:$0xff]  }
 0x632   :  { %5984 = vmatprep.subr.bf16.mxu0 %v12040_v58  ;;  %v12122_v58 = vld [vmem:[#allocation9 + $0xa48] ss:$16 sps:$4 sm:$0xff]  }
 0x635   :  { %5985 = vmatpush1.bf16.msra.mxu0 %v12038_v53  ;;  %v12162_v53 = vld [vmem:[#allocation12 + $0x20] sm:$0xff]  }
 0x636   :  { %5986 = vmatprep.subr.bf16.mxu0 %v12046_v37  ;;  %v12127_v37 = vld [vmem:[#allocation9 + $0xa2c] ss:$16 sps:$4 sm:$0xff]  }
 0x639   :  { %5987 = vmatpush1.bf16.msra.mxu0 %v12044_v50  ;;  %v12163_v50 = vld [vmem:[#allocation12 + $0x58] sm:$0xff]  }
 0x63a   :  { %5988 = vmatprep.subr.bf16.mxu0 %v12052_v59  ;;  %v12125_v59 = vld [vmem:[#allocation9 + $0xa28] ss:$16 sps:$4 sm:$0xff]  }
 0x63d   :  { %5989 = vmatpush1.bf16.msra.mxu0 %v12050_v60  ;;  %v12164_v60 = vld [vmem:[#allocation12 + $0x18] sm:$0xff]  }
 0x63e   :  { %5990 = vmatprep.subr.bf16.mxu0 %v12058_v62  ;;  %v12130_v62 = vld [vmem:[#allocation9 + $0xa0c] ss:$16 sps:$4 sm:$0xff]  }
 0x641   :  { %5991 = vmatpush1.bf16.msra.mxu0 %v12056_v63  ;;  %v12165_v63 = vld [vmem:[#allocation12 + $0x50] sm:$0xff]  }
 0x642   :  { %5992 = vmatprep.subr.bf16.mxu0 %v12064_v1  ;;  %v12128_v1 = vld [vmem:[#allocation9 + $0xa08] ss:$16 sps:$4 sm:$0xff]  }
 0x645   :  { %5993 = vmatpush2.bf16.msra.mxu0 %v12062_v2  ;;  %v12166_v2 = vld [vmem:[#allocation12 + $0x10] sm:$0xff]  }
 0x646   :  { %5994 = vmatprep.subr.bf16.mxu0 %v12070_v3  ;;  %v12133_v3 = vld [vmem:[#allocation9 + $0xbec] ss:$16 sps:$4 sm:$0xff]  }
 0x649   :  { %5995 = vmatpush2.bf16.msra.mxu0 %v12068_v4  ;;  %v12131_v4 = vld [vmem:[#allocation9 + $0xbe8] ss:$16 sps:$4 sm:$0xff]  }
 0x64a   :  { %5996 = vmatprep.subr.bf16.mxu0 %v12076_v5  ;;  %v12136_v5 = vld [vmem:[#allocation9 + $0xbcc] ss:$16 sps:$4 sm:$0xff]  }
 0x64d   :  { %5997 = vmatpush2.bf16.msra.mxu0 %v12074_v6  ;;  %v12134_v6 = vld [vmem:[#allocation9 + $0xbc8] ss:$16 sps:$4 sm:$0xff]  }
 0x64e   :  { %5998 = vmatprep.subr.bf16.mxu0 %v12082_v7  ;;  %v12139_v7 = vld [vmem:[#allocation9 + $0xbac] ss:$16 sps:$4 sm:$0xff]  }
 0x651   :  { %5999 = vmatpush2.bf16.msra.mxu0 %v12080_v61  ;;  %v12137_v61 = vld [vmem:[#allocation9 + $0xba8] ss:$16 sps:$4 sm:$0xff]  }
 0x652   :  { %6000 = vmatprep.subr.bf16.mxu0 %v12088_v9  ;;  %v12142_v9 = vld [vmem:[#allocation9 + $0xb8c] ss:$16 sps:$4 sm:$0xff]  }
 0x655   :  { %6001 = vmatpush2.bf16.msra.mxu0 %v12086_v8  ;;  %v12140_v8 = vld [vmem:[#allocation9 + $0xb88] ss:$16 sps:$4 sm:$0xff]  }
 0x656   :  { %6002 = vmatprep.subr.bf16.mxu0 %v12094_v10  ;;  %v12145_v10 = vld [vmem:[#allocation9 + $0xb6c] ss:$16 sps:$4 sm:$0xff]  }
 0x659   :  { %6003 = vmatpush2.bf16.msra.mxu0 %v12092_v12  ;;  %v12148_v12 = vld [vmem:[#allocation9 + $0xb4c] ss:$16 sps:$4 sm:$0xff]  }
 0x65a   :  { %v5087_v21 = vpop.f32.mrf.mxu1  ;;  %6004 = vmatprep.subr.bf16.mxu0 %v12100_v17  ;;  %v12146_v17 = vld [vmem:[#allocation9 + $0xb48] ss:$16 sps:$4 sm:$0xff]  }
 0x65b   :  { %v5088_v24 = vadd.f32 %v5087_v21, %v5047_v19  ;;  %v12149_v19 = vld [vmem:[#allocation9 + $0xb28] ss:$16 sps:$4 sm:$0xff]  }
 0x65c   :  { %v5089_v27 = vpop.f32.mrf.mxu1  ;;  %v12152_v21 = vld [vmem:[#allocation9 + $0xb08] ss:$16 sps:$4 sm:$0xff]  }
 0x65d   :  { %v5090_v28 = vadd.f32 %v5089_v27, %v5049_v23  ;;  %6005 = vmatpush2.bf16.msra.mxu0 %v12098_v20  ;;  %v5096_v32 = vmax.f32 %v5088_v24, 0.0  ;;  %v12154_v20 = vld [vmem:[#allocation9 + $0xb0c] ss:$16 sps:$4 sm:$0xff]   ;;  %v12168_v23 = vld [vmem:[#allocation12 + $0x8] sm:$0xff]  }
 0x65e   :  { %v5091_v34 = vpop.f32.mrf.mxu1  ;;  %6006 = vmatprep.subr.bf16.mxu0 %v12106_v22  ;;  %v12167_v22 = vld [vmem:[#allocation12 + $0x48] sm:$0xff]   ;;  %v12169_v24 = vld [vmem:[#allocation12 + $0x40] sm:$0xff]  }
 0x65f   :  { %v5097_v25 = vmax.f32 %v5090_v28, 0.0  ;;  %v13216_v35 = vpack.c.bf16 %v5096_v32, %v5096_v32  ;;  %v12170_v27 = vld [vmem:[#allocation12] sm:$0xff]   ;;  %v12173_v28 = vld [vmem:[#allocation9 + $0xce4] ss:$16 sps:$4 sm:$0xff]   ;;  %v12200_v34 = vld [vmem:[#allocation12 + $0xf0] sm:$0xff]  }
 0x660   :  { %v5092_v30 = vpop.f32.mrf.mxu1  ;;  %v12196_v32 = vld [vmem:[#allocation12 + $0xb8] sm:$0xff]  }
 0x661   :  { %v5101_v26 = vpack.c.bf16 %v5097_v25, %v5097_v25  ;;  %6007 = vmatpush2.bf16.msra.mxu0 %v12104_v29  ;;  %v12195_v29 = vld [vmem:[#allocation12 + $0xf8] sm:$0xff]   ;;  %v12201_v25 = vld [vmem:[#allocation12 + $0xb0] sm:$0xff]   ;;  %v12205_v30 = vld [vmem:[#allocation12 + $0xe8] sm:$0xff]  }
 0x662   :  { %10894 = vmatprep.subr.bf16.mxu0 %v12155_v46 }
 0x663   :  { %5967 = vmatprep.mubr.bf16.mxu1 %v5101_v26 }
 0x664   :  { %5968 = vmatmul.mubr.bf16.vlgmr.msra.gmra.mxu1 %v13216_v35  ;;  %6009 = vmatmul.mubr.bf16.vlgmr.msra.gmra.mxu0 %v13207_v52  ;;  %v12159_v52 = vld [vmem:[#allocation12 + $0x68] sm:$0xff]  }
 0x665   :  { %6018 = vmatpush1.bf16.msra.mxu1 %v12107_v33  ;;  %6049 = vmatprep.mubr.bf16.mxu1 %v5101_v26  ;;  %v12206_v26 = vld [vmem:[#allocation12 + $0xa8] sm:$0xff]   ;;  %v12210_v33 = vld [vmem:[#allocation12 + $0xe0] sm:$0xff]  }
 0x666   :  { %6019 = vmatprep.subr.bf16.mxu1 %v12112_v40  ;;  %10895 = vmatpush3.bf16.msra.mxu0 %v12156_v47  ;;  %v12215_v40 = vld [vmem:[#allocation12 + $0xd8] sm:$0xff]   ;;  %v12226_v47 = vld [vmem:[#allocation12 + $0x88] sm:$0xff]  }
 0x667   :  { %10896 = vmatprep.subr.bf16.mxu0 %v12157_v48 }
 0x669   :  { %6020 = vmatpush1.bf16.msra.mxu1 %v12110_v39  ;;  %v12216_v39 = vld [vmem:[#allocation12 + $0x98] sm:$0xff]  }
 0x66a   :  { %6021 = vmatprep.subr.bf16.mxu1 %v12115_v41  ;;  %10897 = vmatpush3.bf16.msra.mxu0 %v12158_v45  ;;  %v12220_v41 = vld [vmem:[#allocation12 + $0xd0] sm:$0xff]  }
 0x66b   :  { %10898 = vmatprep.subr.bf16.mxu0 %v12159_v52 }
 0x66d   :  { %6022 = vmatpush1.bf16.msra.mxu1 %v12113_v42  ;;  %v12221_v42 = vld [vmem:[#allocation12 + $0x90] sm:$0xff]  }
 0x66e   :  { %6023 = vmatprep.subr.bf16.mxu1 %v12118_v43  ;;  %10899 = vmatpush3.bf16.msra.mxu0 %v12160_v38  ;;  %v12225_v43 = vld [vmem:[#allocation12 + $0xc8] sm:$0xff]   ;;  %v13221_v38 = vld [vmem:[#allocation10 + $0x8] sm:$0xf] }
 0x66f   :  { %10900 = vmatprep.subr.bf16.mxu0 %v12161_v44  ;;  %v5241_v44 = vrot.slane %v13221_v38, %v13083_v15 }
 0x671   :  { %6024 = vmatpush1.bf16.msra.mxu1 %v12116_v49  ;;  %v12230_v49 = vld [vmem:[#allocation12 + $0xc0] sm:$0xff]  }
 0x672   :  { %6025 = vmatprep.subr.bf16.mxu1 %v12121_v55  ;;  %10901 = vmatpush3.bf16.msra.mxu0 %v12162_v53  ;;  %v12231_v55 = vld [vmem:[#allocation12 + $0x80] sm:$0xff]  }
 0x673   :  { %10902 = vmatprep.subr.bf16.mxu0 %v12163_v50 }
 0x675   :  { %6026 = vmatpush1.bf16.msra.mxu1 %v12119_v56  ;;  %v12237_v56 = vld [vmem:[#allocation9 + $0xee4] ss:$16 sps:$4 sm:$0xff]  }
 0x676   :  { %6027 = vmatprep.subr.bf16.mxu1 %v12124_v57  ;;  %10903 = vmatpush3.bf16.msra.mxu0 %v12164_v60  ;;  %v5237_v57 = vrot.slane %v13221_v38, %v13079_v13 }
 0x677   :  { %10904 = vmatprep.subr.bf16.mxu0 %v12165_v63 }
 0x679   :  { %6028 = vmatpush1.bf16.msra.mxu1 %v12122_v58 }
 0x67a   :  { %6029 = vmatprep.subr.bf16.mxu1 %v12127_v37  ;;  %10905 = vmatpush3.bf16.msra.mxu0 %v12166_v2 }
 0x67b   :  { %10906 = vmatprep.subr.bf16.mxu0 %v12167_v22  ;;  %v12183_v22 = vld [vmem:[#allocation9 + $0xc60] ss:$16 sps:$4 sm:$0xff]  }
 0x67d   :  { %6030 = vmatpush1.bf16.msra.mxu1 %v12125_v59 }
 0x67e   :  { %6031 = vmatprep.subr.bf16.mxu1 %v12130_v62  ;;  %10907 = vmatpush3.bf16.msra.mxu0 %v12168_v23  ;;  %v12188_v23 = vld [vmem:[#allocation9 + $0xc44] ss:$16 sps:$4 sm:$0xff]  }
 0x67f   :  { %10908 = vmatprep.subr.bf16.mxu0 %v12169_v24  ;;  %v12186_v24 = vld [vmem:[#allocation9 + $0xc40] ss:$16 sps:$4 sm:$0xff]  }
 0x681   :  { %6032 = vmatpush1.bf16.msra.mxu1 %v12128_v1 }
 0x682   :  { %6033 = vmatprep.subr.bf16.mxu1 %v12133_v3  ;;  %10909 = vmatpush3.bf16.msra.mxu0 %v12170_v27  ;;  %v12191_v27 = vld [vmem:[#allocation9 + $0xc24] ss:$16 sps:$4 sm:$0xff]  }
 0x683   :  { %7208 = vmatprep.subr.bf16.mxu0 %v12173_v28  ;;  %v12189_v28 = vld [vmem:[#allocation9 + $0xc20] ss:$16 sps:$4 sm:$0xff]  }
 0x685   :  { %6034 = vmatpush2.bf16.msra.mxu1 %v12131_v4 }
 0x686   :  { %6035 = vmatprep.subr.bf16.mxu1 %v12136_v5 }
 0x689   :  { %6036 = vmatpush2.bf16.msra.mxu1 %v12134_v6 }
 0x68a   :  { %6037 = vmatprep.subr.bf16.mxu1 %v12139_v7 }
 0x68d   :  { %6038 = vmatpush2.bf16.msra.mxu1 %v12137_v61  ;;  %v12171_v61 = vld [vmem:[#allocation9 + $0xce0] ss:$16 sps:$4 sm:$0xff]  }
 0x68e   :  { %6039 = vmatprep.subr.bf16.mxu1 %v12142_v9 }
 0x691   :  { %6040 = vmatpush2.bf16.msra.mxu1 %v12140_v8  ;;  %v12176_v8 = vld [vmem:[#allocation9 + $0xcc4] ss:$16 sps:$4 sm:$0xff]  }
 0x692   :  { %6041 = vmatprep.subr.bf16.mxu1 %v12145_v10  ;;  %v12174_v10 = vld [vmem:[#allocation9 + $0xcc0] ss:$16 sps:$4 sm:$0xff]  }
 0x695   :  { %6042 = vmatpush2.bf16.msra.mxu1 %v12143_v11  ;;  %v12179_v11 = vld [vmem:[#allocation9 + $0xca4] ss:$16 sps:$4 sm:$0xff]  }
 0x696   :  { %6043 = vmatprep.subr.bf16.mxu1 %v12148_v12  ;;  %v12177_v12 = vld [vmem:[#allocation9 + $0xca0] ss:$16 sps:$4 sm:$0xff]  }
 0x699   :  { %6044 = vmatpush2.bf16.msra.mxu1 %v12146_v17  ;;  %v12182_v17 = vld [vmem:[#allocation9 + $0xc84] ss:$16 sps:$4 sm:$0xff]  }
 0x69a   :  { %6045 = vmatprep.subr.bf16.mxu1 %v12151_v18  ;;  %v12180_v18 = vld [vmem:[#allocation9 + $0xc80] ss:$16 sps:$4 sm:$0xff]  }
 0x69d   :  { %6046 = vmatpush2.bf16.msra.mxu1 %v12149_v19  ;;  %v3171_v19 = vld [vmem:[%s13315_s1] sm:$0xff] }
 0x69e   :  { %6047 = vmatprep.subr.bf16.mxu1 %v12154_v20  ;;  %v12185_v20 = vld [vmem:[#allocation9 + $0xc64] ss:$16 sps:$4 sm:$0xff]   ;;  %vm6409_vm1 = vcmp.eq.s32.totalorder %v3171_v19, 0 }
 0x69f   :  { %v12261_v19 = vld [vmem:[#allocation9 + $0xe64] ss:$16 sps:$4 sm:$0xff]  }
 0x6a1   :  { %6048 = vmatpush2.bf16.msra.mxu1 %v12152_v21  ;;  %v6410_v21 = vsel %vm6409_vm1, 1, %v12979_v0 }
 0x6a2   :  { %10916 = vmatprep.subr.bf16.mxu1 %v12195_v29  ;;  %6412 = vperm.xlu0 %10996, %v6410_v21   ;;  %v12194_v29 = vld [vmem:[#allocation9 + $0xc04] ss:$16 sps:$4 sm:$0xff]   ;;  %v12262_v21 = vld [vmem:[#allocation9 + $0xc68] ss:$16 sps:$4 sm:$0xff]  }
 0x6a4   :  { %6050 = vmatmul.mubr.bf16.vlgmr.msra.gmra.mxu1 %v13216_v35  ;;  %v12211_v35 = vld [vmem:[#allocation12 + $0xa0] sm:$0xff]  }
 0x6a5   :  { %10917 = vmatpush3.bf16.msra.mxu1 %v12196_v32  ;;  %v12192_v32 = vld [vmem:[#allocation9 + $0xc00] ss:$16 sps:$4 sm:$0xff]  }
 0x6a6   :  { %10918 = vmatprep.subr.bf16.mxu1 %v12200_v34  ;;  %v12199_v34 = vld [vmem:[#allocation9 + $0xde4] ss:$16 sps:$4 sm:$0xff]  }
 0x6a9   :  { %10919 = vmatpush3.bf16.msra.mxu1 %v12201_v25  ;;  %v12197_v25 = vld [vmem:[#allocation9 + $0xde0] ss:$16 sps:$4 sm:$0xff]  }
 0x6aa   :  { %10920 = vmatprep.subr.bf16.mxu1 %v12205_v30  ;;  %v12204_v30 = vld [vmem:[#allocation9 + $0xdc4] ss:$16 sps:$4 sm:$0xff]  }
 0x6ad   :  { %10921 = vmatpush3.bf16.msra.mxu1 %v12206_v26  ;;  %v12202_v26 = vld [vmem:[#allocation9 + $0xdc0] ss:$16 sps:$4 sm:$0xff]  }
 0x6ae   :  { %10922 = vmatprep.subr.bf16.mxu1 %v12210_v33  ;;  %v12209_v33 = vld [vmem:[#allocation9 + $0xda4] ss:$16 sps:$4 sm:$0xff]  }
 0x6b1   :  { %10923 = vmatpush3.bf16.msra.mxu1 %v12211_v35  ;;  %v12207_v35 = vld [vmem:[#allocation9 + $0xda0] ss:$16 sps:$4 sm:$0xff]  }
 0x6b2   :  { %10924 = vmatprep.subr.bf16.mxu1 %v12215_v40  ;;  %v12214_v40 = vld [vmem:[#allocation9 + $0xd84] ss:$16 sps:$4 sm:$0xff]  }
 0x6b5   :  { %10925 = vmatpush3.bf16.msra.mxu1 %v12216_v39  ;;  %v12212_v39 = vld [vmem:[#allocation9 + $0xd80] ss:$16 sps:$4 sm:$0xff]  }
 0x6b6   :  { %10926 = vmatprep.subr.bf16.mxu1 %v12220_v41  ;;  %v12219_v41 = vld [vmem:[#allocation9 + $0xd64] ss:$16 sps:$4 sm:$0xff]  }
 0x6b9   :  { %10927 = vmatpush3.bf16.msra.mxu1 %v12221_v42  ;;  %v12217_v42 = vld [vmem:[#allocation9 + $0xd60] ss:$16 sps:$4 sm:$0xff]  }
 0x6ba   :  { %10928 = vmatprep.subr.bf16.mxu1 %v12225_v43  ;;  %v12224_v43 = vld [vmem:[#allocation9 + $0xd44] ss:$16 sps:$4 sm:$0xff]  }
 0x6bd   :  { %10929 = vmatpush3.bf16.msra.mxu1 %v12226_v47  ;;  %v12222_v47 = vld [vmem:[#allocation9 + $0xd40] ss:$16 sps:$4 sm:$0xff]  }
 0x6be   :  { %10930 = vmatprep.subr.bf16.mxu1 %v12230_v49  ;;  %v5249_v49 = vrot.slane %v13221_v38, %v13085_v16 }
 0x6c1   :  { %10931 = vmatpush3.bf16.msra.mxu1 %v12231_v55  ;;  %v12227_v55 = vld [vmem:[#allocation9 + $0xd20] ss:$16 sps:$4 sm:$0xff]  }
 0x6c2   :  { %7249 = vmatprep.subr.bf16.mxu1 %v12237_v56  ;;  %v12234_v56 = vld [vmem:[#allocation9 + $0xd04] ss:$16 sps:$4 sm:$0xff]  }
 0x6e4   :  { %v5928_v46 = vpop.f32.mrf.mxu0 }
 0x6e5   :  { %v5929_v58 = vadd.f32 %v5928_v46, %v5237_v57  ;;  %v5245_v46 = vrot.slane %v13221_v38, %v13081_v14 }
 0x6e6   :  { %v5930_v48 = vpop.f32.mrf.mxu0 }
 0x6e7   :  { %v5931_v50 = vadd.f32 %v5930_v48, %v5241_v44  ;;  %v12229_v48 = vld [vmem:[#allocation9 + $0xd24] ss:$16 sps:$4 sm:$0xff]  }
 0x6e8   :  { %v5932_v45 = vpop.f32.mrf.mxu0 }
 0x6ea   :  { %v5933_v52 = vpop.f32.mrf.mxu0 }
 0x724   :  { %v5969_v53 = vpop.f32.mrf.mxu1  ;;  %v13227_v37 = vpop.f32.mrf.mxu0 }
 0x725   :  { %v5970_v59 = vadd.f32 %v5969_v53, %v5929_v58  ;;  %v6011_v45 = vadd.f32 %v13227_v37, %v5245_v46  ;;  %v12235_v37 = vld [vmem:[#allocation9 + $0xee0] ss:$16 sps:$4 sm:$0xff]  }
 0x726   :  { %v5971_v60 = vpop.f32.mrf.mxu1  ;;  %v13229_v62 = vpop.f32.mrf.mxu0  ;;  %v12289_v46 = vld [vmem:[#allocation9 + $0xfc0] ss:$16 sps:$4 sm:$0xff]  }
 0x727   :  { %v5972_v63 = vadd.f32 %v5971_v60, %v5931_v50  ;;  %v6058_v1 = vmax.f32 %v5970_v59, 0.0  ;;  %v6013_v57 = vadd.f32 %v13229_v62, %v5249_v49  ;;  %v12232_v50 = vld [vmem:[#allocation9 + $0xd00] ss:$16 sps:$4 sm:$0xff]   ;;  %v12246_v62 = vld [vmem:[#allocation9 + $0xccc] ss:$16 sps:$4 sm:$0xff]  }
 0x728   :  { %v5973_v2 = vpop.f32.mrf.mxu1  ;;  %v6014_v3 = vpop.f32.mrf.mxu0  ;;  %v12300_v49 = vld [vmem:[#allocation9 + $0xdac] ss:$16 sps:$4 sm:$0xff]  }
 0x729   :  { %v6059_v4 = vmax.f32 %v5972_v63, 0.0  ;;  %v6062_v9 = vpack.c.bf16 %v6058_v1, %v6058_v1  ;;  %v12240_v63 = vld [vmem:[#allocation9 + $0xcec] ss:$16 sps:$4 sm:$0xff]  }
 0x72a   :  { %v5974_v5 = vpop.f32.mrf.mxu1  ;;  %v6015_v6 = vpop.f32.mrf.mxu0 }
 0x72b   :  { %v6063_v7 = vpack.c.bf16 %v6059_v4, %v6059_v4  ;;  %v12238_v4 = vld [vmem:[#allocation9 + $0xce8] ss:$16 sps:$4 sm:$0xff]   ;;  %v12243_v5 = vld [vmem:[#allocation9 + $0xec4] ss:$16 sps:$4 sm:$0xff]   ;;  %v12241_v6 = vld [vmem:[#allocation9 + $0xec0] ss:$16 sps:$4 sm:$0xff]  }
 0x72d   :  { %6361 = vmatprep.mubr.bf16.mxu0 %v6063_v7  ;;  %v12244_v7 = vld [vmem:[#allocation9 + $0xcc8] ss:$16 sps:$4 sm:$0xff]  }
 0x72e   :  { %6362 = vmatmul.mubr.bf16.vlgmr.msra.gmra.mxu0 %v6062_v9  ;;  %v12252_v9 = vld [vmem:[#allocation9 + $0xcac] ss:$16 sps:$4 sm:$0xff]  }
 0x72f   :  { %7209 = vmatpush1.bf16.msra.mxu0 %v12171_v61  ;;  %7240 = vmatprep.mubr.bf16.mxu0 %v13151_v51  ;;  %v12249_v61 = vld [vmem:[#allocation9 + $0xea4] ss:$16 sps:$4 sm:$0xff]  }
 0x730   :  { %7210 = vmatprep.subr.bf16.mxu0 %v12176_v8  ;;  %v12247_v8 = vld [vmem:[#allocation9 + $0xea0] ss:$16 sps:$4 sm:$0xff]  }
 0x733   :  { %7211 = vmatpush1.bf16.msra.mxu0 %v12174_v10  ;;  %v12250_v10 = vld [vmem:[#allocation9 + $0xca8] ss:$16 sps:$4 sm:$0xff]  }
 0x734   :  { %7212 = vmatprep.subr.bf16.mxu0 %v12179_v11  ;;  %v12255_v11 = vld [vmem:[#allocation9 + $0xe84] ss:$16 sps:$4 sm:$0xff]  }
 0x737   :  { %7213 = vmatpush1.bf16.msra.mxu0 %v12177_v12  ;;  %v12258_v12 = vld [vmem:[#allocation9 + $0xc8c] ss:$16 sps:$4 sm:$0xff]  }
 0x738   :  { %7214 = vmatprep.subr.bf16.mxu0 %v12182_v17  ;;  %v12253_v17 = vld [vmem:[#allocation9 + $0xe80] ss:$16 sps:$4 sm:$0xff]  }
 0x73b   :  { %7215 = vmatpush1.bf16.msra.mxu0 %v12180_v18  ;;  %v12256_v18 = vld [vmem:[#allocation9 + $0xc88] ss:$16 sps:$4 sm:$0xff]  }
 0x73c   :  { %7216 = vmatprep.subr.bf16.mxu0 %v12185_v20  ;;  %v12259_v20 = vld [vmem:[#allocation9 + $0xe60] ss:$16 sps:$4 sm:$0xff]  }
 0x73f   :  { %7217 = vmatpush1.bf16.msra.mxu0 %v12183_v22  ;;  %v12267_v22 = vld [vmem:[#allocation9 + $0xe44] ss:$16 sps:$4 sm:$0xff]  }
 0x740   :  { %7218 = vmatprep.subr.bf16.mxu0 %v12188_v23  ;;  %v12270_v23 = vld [vmem:[#allocation9 + $0xc4c] ss:$16 sps:$4 sm:$0xff]  }
 0x743   :  { %7219 = vmatpush1.bf16.msra.mxu0 %v12186_v24  ;;  %v12265_v24 = vld [vmem:[#allocation9 + $0xe40] ss:$16 sps:$4 sm:$0xff]  }
 0x744   :  { %7220 = vmatprep.subr.bf16.mxu0 %v12191_v27  ;;  %v12268_v27 = vld [vmem:[#allocation9 + $0xc48] ss:$16 sps:$4 sm:$0xff]  }
 0x747   :  { %7221 = vmatpush1.bf16.msra.mxu0 %v12189_v28  ;;  %v12273_v28 = vld [vmem:[#allocation9 + $0xe24] ss:$16 sps:$4 sm:$0xff]  }
 0x748   :  { %7222 = vmatprep.subr.bf16.mxu0 %v12194_v29  ;;  %v12276_v29 = vld [vmem:[#allocation9 + $0xc2c] ss:$16 sps:$4 sm:$0xff]  }
 0x74b   :  { %7223 = vmatpush1.bf16.msra.mxu0 %v12192_v32  ;;  %v12271_v32 = vld [vmem:[#allocation9 + $0xe20] ss:$16 sps:$4 sm:$0xff]  }
 0x74c   :  { %7224 = vmatprep.subr.bf16.mxu0 %v12199_v34  ;;  %v12274_v34 = vld [vmem:[#allocation9 + $0xc28] ss:$16 sps:$4 sm:$0xff]  }
 0x74f   :  { %7225 = vmatpush2.bf16.msra.mxu0 %v12197_v25  ;;  %v12279_v25 = vld [vmem:[#allocation9 + $0xe04] ss:$16 sps:$4 sm:$0xff]  }
 0x750   :  { %7226 = vmatprep.subr.bf16.mxu0 %v12204_v30  ;;  %v12282_v30 = vld [vmem:[#allocation9 + $0xc0c] ss:$16 sps:$4 sm:$0xff]  }
 0x753   :  { %7227 = vmatpush2.bf16.msra.mxu0 %v12202_v26  ;;  %v12277_v26 = vld [vmem:[#allocation9 + $0xe00] ss:$16 sps:$4 sm:$0xff]  }
 0x754   :  { %7228 = vmatprep.subr.bf16.mxu0 %v12209_v33  ;;  %v12280_v33 = vld [vmem:[#allocation9 + $0xc08] ss:$16 sps:$4 sm:$0xff]  }
 0x757   :  { %7229 = vmatpush2.bf16.msra.mxu0 %v12207_v35  ;;  %v12285_v35 = vld [vmem:[#allocation9 + $0xfe4] ss:$16 sps:$4 sm:$0xff]  }
 0x758   :  { %7230 = vmatprep.subr.bf16.mxu0 %v12214_v40  ;;  %v12288_v40 = vld [vmem:[#allocation9 + $0xdec] ss:$16 sps:$4 sm:$0xff]  }
 0x75b   :  { %7231 = vmatpush2.bf16.msra.mxu0 %v12212_v39  ;;  %v12283_v39 = vld [vmem:[#allocation9 + $0xfe0] ss:$16 sps:$4 sm:$0xff]  }
 0x75c   :  { %7232 = vmatprep.subr.bf16.mxu0 %v12219_v41  ;;  %v12286_v41 = vld [vmem:[#allocation9 + $0xde8] ss:$16 sps:$4 sm:$0xff]  }
 0x75f   :  { %7233 = vmatpush2.bf16.msra.mxu0 %v12217_v42  ;;  %v12291_v42 = vld [vmem:[#allocation9 + $0xfc4] ss:$16 sps:$4 sm:$0xff]  }
 0x760   :  { %7234 = vmatprep.subr.bf16.mxu0 %v12224_v43  ;;  %v12294_v43 = vld [vmem:[#allocation9 + $0xdcc] ss:$16 sps:$4 sm:$0xff]  }
 0x763   :  { %7235 = vmatpush2.bf16.msra.mxu0 %v12222_v47  ;;  %v12292_v47 = vld [vmem:[#allocation9 + $0xdc8] ss:$16 sps:$4 sm:$0xff]  }
 0x764   :  { %v6051_v52 = vpop.f32.mrf.mxu1  ;;  %7236 = vmatprep.subr.bf16.mxu0 %v12229_v48  ;;  %v12297_v48 = vld [vmem:[#allocation9 + $0xfa4] ss:$16 sps:$4 sm:$0xff]  }
 0x765   :  { %v6052_v44 = vadd.f32 %v6051_v52, %v6011_v45  ;;  %v12295_v45 = vld [vmem:[#allocation9 + $0xfa0] ss:$16 sps:$4 sm:$0xff]   ;;  %v12303_v52 = vld [vmem:[#allocation9 + $0xf84] ss:$16 sps:$4 sm:$0xff]  }
 0x766   :  { %v6053_v58 = vpop.f32.mrf.mxu1 }
 0x767   :  { %v6054_v53 = vadd.f32 %v6053_v58, %v6013_v57  ;;  %7237 = vmatpush2.bf16.msra.mxu0 %v12227_v55  ;;  %v6060_v59 = vmax.f32 %v6052_v44, 0.0  ;;  %v12298_v55 = vld [vmem:[#allocation9 + $0xda8] ss:$16 sps:$4 sm:$0xff]   ;;  %v12301_v57 = vld [vmem:[#allocation9 + $0xf80] ss:$16 sps:$4 sm:$0xff]  }
 0x768   :  { %v6055_v60 = vpop.f32.mrf.mxu1  ;;  %7238 = vmatprep.subr.bf16.mxu0 %v12234_v56  ;;  %v12306_v56 = vld [vmem:[#allocation9 + $0xd8c] ss:$16 sps:$4 sm:$0xff]   ;;  %v12304_v44 = vld [vmem:[#allocation9 + $0xd88] ss:$16 sps:$4 sm:$0xff]   ;;  %v12309_v58 = vld [vmem:[#allocation9 + $0xf64] ss:$16 sps:$4 sm:$0xff]  }
 0x769   :  { %v6061_v1 = vmax.f32 %v6054_v53, 0.0  ;;  %v6064_v3 = vpack.c.bf16 %v6060_v59, %v6060_v59  ;;  %v12312_v53 = vld [vmem:[#allocation9 + $0xd6c] ss:$16 sps:$4 sm:$0xff]   ;;  %v12310_v59 = vld [vmem:[#allocation9 + $0xd68] ss:$16 sps:$4 sm:$0xff]  }
 0x76a   :  { %v6056_v38 = vpop.f32.mrf.mxu1  ;;  %v12315_v60 = vld [vmem:[#allocation9 + $0xf44] ss:$16 sps:$4 sm:$0xff]  }
 0x76b   :  { %v6065_v2 = vpack.c.bf16 %v6061_v1, %v6061_v1  ;;  %7239 = vmatpush2.bf16.msra.mxu0 %v12232_v50  ;;  %v12307_v50 = vld [vmem:[#allocation9 + $0xf60] ss:$16 sps:$4 sm:$0xff]   ;;  %v12316_v38 = vld [vmem:[#allocation9 + $0xd48] ss:$16 sps:$4 sm:$0xff]  }
 0x76c   :  { %7290 = vmatprep.subr.bf16.mxu0 %v12240_v63  ;;  %v12318_v63 = vld [vmem:[#allocation9 + $0xd4c] ss:$16 sps:$4 sm:$0xff]   ;;  %v12313_v1 = vld [vmem:[#allocation9 + $0xf40] ss:$16 sps:$4 sm:$0xff]  }
 0x76d   :  { %6401 = vmatprep.mubr.bf16.mxu1 %v6065_v2  ;;  %v12321_v2 = vld [vmem:[#allocation9 + $0xf24] ss:$16 sps:$4 sm:$0xff]  }
 0x76e   :  { %6402 = vmatmul.mubr.bf16.vlgmr.msra.gmra.mxu1 %v6064_v3  ;;  %7241 = vmatmul.mubr.bf16.vlgmr.msra.gmra.mxu0 %v13153_v54  ;;  %v12319_v3 = vld [vmem:[#allocation9 + $0xf20] ss:$16 sps:$4 sm:$0xff]  }
 0x76f   :  { %7250 = vmatpush1.bf16.msra.mxu1 %v12235_v37  ;;  %7281 = vmatprep.mubr.bf16.mxu1 %v13164_v31  ;;  %v12324_v37 = vld [vmem:[#allocation9 + $0xd2c] ss:$16 sps:$4 sm:$0xff]  }
 0x770   :  { %7291 = vmatpush1.bf16.msra.mxu0 %v12238_v4  ;;  %7322 = vmatprep.mubr.bf16.mxu0 %v13151_v51  ;;  %v12264_v51 = vld [vmem:[#allocation9 + $0xc6c] ss:$16 sps:$4 sm:$0xff]   ;;  %v12322_v4 = vld [vmem:[#allocation9 + $0xd28] ss:$16 sps:$4 sm:$0xff]  }
 0x771   :  { %7251 = vmatprep.subr.bf16.mxu1 %v12243_v5  ;;  %7292 = vmatprep.subr.bf16.mxu0 %v12246_v62  ;;  %v12327_v5 = vld [vmem:[#allocation9 + $0xf04] ss:$16 sps:$4 sm:$0xff]   ;;  %v12330_v62 = vld [vmem:[#allocation9 + $0xd0c] ss:$16 sps:$4 sm:$0xff]  }
 0x773   :  { %7252 = vmatpush1.bf16.msra.mxu1 %v12241_v6  ;;  %v12325_v6 = vld [vmem:[#allocation9 + $0xf00] ss:$16 sps:$4 sm:$0xff]  }
 0x774   :  { %7293 = vmatpush1.bf16.msra.mxu0 %v12244_v7  ;;  %7253 = vmatprep.subr.bf16.mxu1 %v12249_v61  ;;  %v12328_v7 = vld [vmem:[#allocation9 + $0xd08] ss:$16 sps:$4 sm:$0xff]   ;;  %v12333_v61 = vld [vmem:[#allocation9 + $0xeec] ss:$16 sps:$4 sm:$0xff]  }
 0x775   :  { %7294 = vmatprep.subr.bf16.mxu0 %v12252_v9  ;;  %v12331_v9 = vld [vmem:[#allocation9 + $0xee8] ss:$16 sps:$4 sm:$0xff]  }
 0x777   :  { %7254 = vmatpush1.bf16.msra.mxu1 %v12247_v8  ;;  %v12336_v8 = vld [vmem:[#allocation9 + $0xecc] ss:$16 sps:$4 sm:$0xff]  }
 0x778   :  { %7295 = vmatpush1.bf16.msra.mxu0 %v12250_v10  ;;  %7255 = vmatprep.subr.bf16.mxu1 %v12255_v11  ;;  %v12334_v10 = vld [vmem:[#allocation9 + $0xec8] ss:$16 sps:$4 sm:$0xff]   ;;  %v12339_v11 = vld [vmem:[#allocation9 + $0xeac] ss:$16 sps:$4 sm:$0xff]  }
 0x779   :  { %7296 = vmatprep.subr.bf16.mxu0 %v12258_v12  ;;  %v12337_v12 = vld [vmem:[#allocation9 + $0xea8] ss:$16 sps:$4 sm:$0xff]  }
 0x77b   :  { %7256 = vmatpush1.bf16.msra.mxu1 %v12253_v17  ;;  %v12342_v17 = vld [vmem:[#allocation9 + $0xe8c] ss:$16 sps:$4 sm:$0xff]  }
 0x77c   :  { %7297 = vmatpush1.bf16.msra.mxu0 %v12256_v18  ;;  %7257 = vmatprep.subr.bf16.mxu1 %v12261_v19  ;;  %v12379_v18 = vld [vmem:[#allocation9 + $0x10e0] ss:$16 sps:$4 sm:$0xff]   ;;  %v12381_v19 = vld [vmem:[#allocation9 + $0x10e4] ss:$16 sps:$4 sm:$0xff]  }
 0x77d   :  { %7298 = vmatprep.subr.bf16.mxu0 %v12264_v51  ;;  %v12384_v51 = vld [vmem:[#allocation9 + $0x10c4] ss:$16 sps:$4 sm:$0xff]  }
 0x77f   :  { %7258 = vmatpush1.bf16.msra.mxu1 %v12259_v20  ;;  %v12340_v20 = vld [vmem:[#allocation9 + $0xe88] ss:$16 sps:$4 sm:$0xff]  }
 0x780   :  { %7299 = vmatpush1.bf16.msra.mxu0 %v12262_v21  ;;  %7259 = vmatprep.subr.bf16.mxu1 %v12267_v22  ;;  %v12345_v21 = vld [vmem:[#allocation9 + $0xe6c] ss:$16 sps:$4 sm:$0xff]   ;;  %v12387_v22 = vld [vmem:[#allocation9 + $0x10a4] ss:$16 sps:$4 sm:$0xff]  }
 0x781   :  { %7300 = vmatprep.subr.bf16.mxu0 %v12270_v23  ;;  %v12348_v23 = vld [vmem:[#allocation9 + $0xe4c] ss:$16 sps:$4 sm:$0xff]  }
 0x783   :  { %7260 = vmatpush1.bf16.msra.mxu1 %v12265_v24  ;;  %v12385_v24 = vld [vmem:[#allocation9 + $0x10a0] ss:$16 sps:$4 sm:$0xff]  }
 0x784   :  { %7301 = vmatpush1.bf16.msra.mxu0 %v12268_v27  ;;  %7261 = vmatprep.subr.bf16.mxu1 %v12273_v28  ;;  %v12390_v27 = vld [vmem:[#allocation9 + $0x1084] ss:$16 sps:$4 sm:$0xff]   ;;  %v12346_v28 = vld [vmem:[#allocation9 + $0xe48] ss:$16 sps:$4 sm:$0xff]  }
 0x785   :  { %7302 = vmatprep.subr.bf16.mxu0 %v12276_v29  ;;  %v12351_v29 = vld [vmem:[#allocation9 + $0xe2c] ss:$16 sps:$4 sm:$0xff]  }
 0x787   :  { %7262 = vmatpush1.bf16.msra.mxu1 %v12271_v32  ;;  %v12388_v32 = vld [vmem:[#allocation9 + $0x1080] ss:$16 sps:$4 sm:$0xff]  }
 0x788   :  { %7303 = vmatpush1.bf16.msra.mxu0 %v12274_v34  ;;  %7263 = vmatprep.subr.bf16.mxu1 %v12279_v25  ;;  %v12393_v34 = vld [vmem:[#allocation9 + $0x1064] ss:$16 sps:$4 sm:$0xff]   ;;  %v12349_v25 = vld [vmem:[#allocation9 + $0xe28] ss:$16 sps:$4 sm:$0xff]  }
 0x789   :  { %7304 = vmatprep.subr.bf16.mxu0 %v12282_v30  ;;  %v12354_v30 = vld [vmem:[#allocation9 + $0xe0c] ss:$16 sps:$4 sm:$0xff]  }
 0x78b   :  { %7264 = vmatpush1.bf16.msra.mxu1 %v12277_v26  ;;  %v12391_v26 = vld [vmem:[#allocation9 + $0x1060] ss:$16 sps:$4 sm:$0xff]  }
 0x78c   :  { %7305 = vmatpush1.bf16.msra.mxu0 %v12280_v33  ;;  %7265 = vmatprep.subr.bf16.mxu1 %v12285_v35  ;;  %v12396_v33 = vld [vmem:[#allocation9 + $0x1044] ss:$16 sps:$4 sm:$0xff]   ;;  %v12352_v35 = vld [vmem:[#allocation9 + $0xe08] ss:$16 sps:$4 sm:$0xff]  }
 0x78d   :  { %7306 = vmatprep.subr.bf16.mxu0 %v12288_v40  ;;  %v12357_v40 = vld [vmem:[#allocation9 + $0xfec] ss:$16 sps:$4 sm:$0xff]  }
 0x78f   :  { %7266 = vmatpush2.bf16.msra.mxu1 %v12283_v39  ;;  %v12394_v39 = vld [vmem:[#allocation9 + $0x1040] ss:$16 sps:$4 sm:$0xff]  }
 0x790   :  { %7307 = vmatpush2.bf16.msra.mxu0 %v12286_v41  ;;  %7267 = vmatprep.subr.bf16.mxu1 %v12291_v42  ;;  %v12399_v41 = vld [vmem:[#allocation9 + $0x1024] ss:$16 sps:$4 sm:$0xff]   ;;  %v12355_v42 = vld [vmem:[#allocation9 + $0xfe8] ss:$16 sps:$4 sm:$0xff]  }
 0x791   :  { %7308 = vmatprep.subr.bf16.mxu0 %v12294_v43  ;;  %v12360_v43 = vld [vmem:[#allocation9 + $0xfcc] ss:$16 sps:$4 sm:$0xff]  }
 0x793   :  { %7268 = vmatpush2.bf16.msra.mxu1 %v12289_v46  ;;  %v12397_v46 = vld [vmem:[#allocation9 + $0x1020] ss:$16 sps:$4 sm:$0xff]  }
 0x794   :  { %7309 = vmatpush2.bf16.msra.mxu0 %v12292_v47  ;;  %7269 = vmatprep.subr.bf16.mxu1 %v12297_v48  ;;  %v12402_v47 = vld [vmem:[#allocation9 + $0x1004] ss:$16 sps:$4 sm:$0xff]   ;;  %v12358_v48 = vld [vmem:[#allocation9 + $0xfc8] ss:$16 sps:$4 sm:$0xff]  }
 0x795   :  { %7310 = vmatprep.subr.bf16.mxu0 %v12300_v49  ;;  %v12363_v49 = vld [vmem:[#allocation9 + $0xfac] ss:$16 sps:$4 sm:$0xff]  }
 0x797   :  { %7270 = vmatpush2.bf16.msra.mxu1 %v12295_v45  ;;  %v12400_v45 = vld [vmem:[#allocation9 + $0x1000] ss:$16 sps:$4 sm:$0xff]  }
 0x798   :  { %7311 = vmatpush2.bf16.msra.mxu0 %v12298_v55  ;;  %7271 = vmatprep.subr.bf16.mxu1 %v12303_v52  ;;  %v12405_v55 = vld [vmem:[#allocation9 + $0x11e4] ss:$16 sps:$4 sm:$0xff]   ;;  %v12361_v52 = vld [vmem:[#allocation9 + $0xfa8] ss:$16 sps:$4 sm:$0xff]  }
 0x799   :  { %7312 = vmatprep.subr.bf16.mxu0 %v12306_v56  ;;  %v12366_v56 = vld [vmem:[#allocation9 + $0xf8c] ss:$16 sps:$4 sm:$0xff]  }
 0x79b   :  { %7272 = vmatpush2.bf16.msra.mxu1 %v12301_v57  ;;  %v12403_v57 = vld [vmem:[#allocation9 + $0x11e0] ss:$16 sps:$4 sm:$0xff]  }
 0x79c   :  { %7313 = vmatpush2.bf16.msra.mxu0 %v12304_v44  ;;  %7273 = vmatprep.subr.bf16.mxu1 %v12309_v58  ;;  %v12408_v44 = vld [vmem:[#allocation9 + $0x11c4] ss:$16 sps:$4 sm:$0xff]   ;;  %v12364_v58 = vld [vmem:[#allocation9 + $0xf88] ss:$16 sps:$4 sm:$0xff]  }
 0x79d   :  { %7314 = vmatprep.subr.bf16.mxu0 %v12312_v53  ;;  %v12369_v53 = vld [vmem:[#allocation9 + $0xf6c] ss:$16 sps:$4 sm:$0xff]  }
 0x79f   :  { %7274 = vmatpush2.bf16.msra.mxu1 %v12307_v50  ;;  %v12406_v50 = vld [vmem:[#allocation9 + $0x11c0] ss:$16 sps:$4 sm:$0xff]  }
 0x7a0   :  { %7315 = vmatpush2.bf16.msra.mxu0 %v12310_v59  ;;  %7275 = vmatprep.subr.bf16.mxu1 %v12315_v60  ;;  %v12411_v59 = vld [vmem:[#allocation9 + $0x11a4] ss:$16 sps:$4 sm:$0xff]   ;;  %v12367_v60 = vld [vmem:[#allocation9 + $0xf68] ss:$16 sps:$4 sm:$0xff]  }
 0x7a1   :  { %7316 = vmatprep.subr.bf16.mxu0 %v12318_v63  ;;  %v12372_v63 = vld [vmem:[#allocation9 + $0xf4c] ss:$16 sps:$4 sm:$0xff]  }
 0x7a3   :  { %7276 = vmatpush2.bf16.msra.mxu1 %v12313_v1  ;;  %v12409_v1 = vld [vmem:[#allocation9 + $0x11a0] ss:$16 sps:$4 sm:$0xff]  }
 0x7a4   :  { %7317 = vmatpush2.bf16.msra.mxu0 %v12316_v38  ;;  %7277 = vmatprep.subr.bf16.mxu1 %v12321_v2  ;;  %v12414_v38 = vld [vmem:[#allocation9 + $0x1184] ss:$16 sps:$4 sm:$0xff]   ;;  %v12370_v2 = vld [vmem:[#allocation9 + $0xf48] ss:$16 sps:$4 sm:$0xff]  }
 0x7a5   :  { %7318 = vmatprep.subr.bf16.mxu0 %v12324_v37  ;;  %v12375_v37 = vld [vmem:[#allocation9 + $0xf2c] ss:$16 sps:$4 sm:$0xff]  }
 0x7a7   :  { %7278 = vmatpush2.bf16.msra.mxu1 %v12319_v3  ;;  %v12412_v3 = vld [vmem:[#allocation9 + $0x1180] ss:$16 sps:$4 sm:$0xff]  }
 0x7a8   :  { %7319 = vmatpush2.bf16.msra.mxu0 %v12322_v4  ;;  %7279 = vmatprep.subr.bf16.mxu1 %v12327_v5  ;;  %v12417_v4 = vld [vmem:[#allocation9 + $0x1164] ss:$16 sps:$4 sm:$0xff]   ;;  %v12373_v5 = vld [vmem:[#allocation9 + $0xf28] ss:$16 sps:$4 sm:$0xff]  }
 0x7a9   :  { %7320 = vmatprep.subr.bf16.mxu0 %v12330_v62  ;;  %v12378_v62 = vld [vmem:[#allocation9 + $0xf0c] ss:$16 sps:$4 sm:$0xff]  }
 0x7ab   :  { %7280 = vmatpush2.bf16.msra.mxu1 %v12325_v6  ;;  %v12415_v6 = vld [vmem:[#allocation9 + $0x1160] ss:$16 sps:$4 sm:$0xff]  }
 0x7ac   :  { %7321 = vmatpush2.bf16.msra.mxu0 %v12328_v7  ;;  %7331 = vmatprep.subr.bf16.mxu1 %v12333_v61  ;;  %v12420_v7 = vld [vmem:[#allocation9 + $0x1144] ss:$16 sps:$4 sm:$0xff]   ;;  %v12376_v61 = vld [vmem:[#allocation9 + $0xf08] ss:$16 sps:$4 sm:$0xff]  }
 0x7ad   :  { %8172 = vmatprep.subr.bf16.mxu0 %v12381_v19  ;;  %v12426_v19 = vld [vmem:[#allocation9 + $0x1104] ss:$16 sps:$4 sm:$0xff]  }
 0x7ae   :  { %7282 = vmatmul.mubr.bf16.vlgmr.msra.gmra.mxu1 %v13166_v36 }
 0x7af   :  { %7323 = vmatmul.mubr.bf16.vlgmr.msra.gmra.mxu0 %v13153_v54  ;;  %7332 = vmatpush1.bf16.msra.mxu1 %v12331_v9  ;;  %v12382_v54 = vld [vmem:[#allocation9 + $0x10c0] ss:$16 sps:$4 sm:$0xff]  }
 0x7b0   :  { %7363 = vmatprep.mubr.bf16.mxu1 %v13164_v31  ;;  %7333 = vmatprep.subr.bf16.mxu1 %v12336_v8  ;;  %v12343_v31 = vld [vmem:[#allocation9 + $0xe68] ss:$16 sps:$4 sm:$0xff]   ;;  %v12418_v9 = vld [vmem:[#allocation9 + $0x1140] ss:$16 sps:$4 sm:$0xff]  }
 0x7b1   :  { %8173 = vmatpush1.bf16.msra.mxu0 %v12379_v18 }
 0x7b2   :  { %8174 = vmatprep.subr.bf16.mxu0 %v12384_v51  ;;  %v12424_v51 = vld [vmem:[#allocation9 + $0x1100] ss:$16 sps:$4 sm:$0xff]  }
 0x7b3   :  { %7334 = vmatpush1.bf16.msra.mxu1 %v12334_v10  ;;  %v12423_v10 = vld [vmem:[#allocation9 + $0x1124] ss:$16 sps:$4 sm:$0xff]  }
 0x7b4   :  { %7335 = vmatprep.subr.bf16.mxu1 %v12339_v11  ;;  %v12421_v11 = vld [vmem:[#allocation9 + $0x1120] ss:$16 sps:$4 sm:$0xff]  }
 0x7b5   :  { %8175 = vmatpush1.bf16.msra.mxu0 %v12382_v54  ;;  %v12432_v54 = vld [vmem:[#allocation9 + $0x10ec] ss:$16 sps:$4 sm:$0xff]  }
 0x7b6   :  { %8176 = vmatprep.subr.bf16.mxu0 %v12387_v22  ;;  %v12427_v22 = vld [vmem:[#allocation9 + $0x12e0] ss:$16 sps:$4 sm:$0xff]  }
 0x7b7   :  { %7336 = vmatpush1.bf16.msra.mxu1 %v12337_v12 }
 0x7b8   :  { %7337 = vmatprep.subr.bf16.mxu1 %v12342_v17 }
 0x7b9   :  { %8177 = vmatpush1.bf16.msra.mxu0 %v12385_v24  ;;  %v12441_v24 = vld [vmem:[#allocation9 + $0x12a4] ss:$16 sps:$4 sm:$0xff]  }
 0x7ba   :  { %8178 = vmatprep.subr.bf16.mxu0 %v12390_v27  ;;  %v12445_v27 = vld [vmem:[#allocation9 + $0x1280] ss:$16 sps:$4 sm:$0xff]  }
 0x7bb   :  { %7338 = vmatpush1.bf16.msra.mxu1 %v12340_v20 }
 0x7bc   :  { %7339 = vmatprep.subr.bf16.mxu1 %v12345_v21  ;;  %v12429_v21 = vld [vmem:[#allocation9 + $0x12e4] ss:$16 sps:$4 sm:$0xff]  }
 0x7bd   :  { %8179 = vmatpush1.bf16.msra.mxu0 %v12388_v32  ;;  %v12453_v32 = vld [vmem:[#allocation9 + $0x1264] ss:$16 sps:$4 sm:$0xff]  }
 0x7be   :  { %8180 = vmatprep.subr.bf16.mxu0 %v12393_v34  ;;  %v12457_v34 = vld [vmem:[#allocation9 + $0x1240] ss:$16 sps:$4 sm:$0xff]  }
 0x7bf   :  { %7340 = vmatpush1.bf16.msra.mxu1 %v12343_v31  ;;  %v12435_v31 = vld [vmem:[#allocation9 + $0x12c4] ss:$16 sps:$4 sm:$0xff]  }
 0x7c0   :  { %7341 = vmatprep.subr.bf16.mxu1 %v12348_v23  ;;  %v12439_v23 = vld [vmem:[#allocation9 + $0x12a0] ss:$16 sps:$4 sm:$0xff]  }
 0x7c1   :  { %8181 = vmatpush1.bf16.msra.mxu0 %v12391_v26  ;;  %v12465_v26 = vld [vmem:[#allocation9 + $0x1224] ss:$16 sps:$4 sm:$0xff]  }
 0x7c2   :  { %8182 = vmatprep.subr.bf16.mxu0 %v12396_v33  ;;  %v12469_v33 = vld [vmem:[#allocation9 + $0x1200] ss:$16 sps:$4 sm:$0xff]  }
 0x7c3   :  { %7342 = vmatpush1.bf16.msra.mxu1 %v12346_v28  ;;  %v12447_v28 = vld [vmem:[#allocation9 + $0x1284] ss:$16 sps:$4 sm:$0xff]  }
 0x7c4   :  { %7343 = vmatprep.subr.bf16.mxu1 %v12351_v29  ;;  %v12451_v29 = vld [vmem:[#allocation9 + $0x1260] ss:$16 sps:$4 sm:$0xff]  }
 0x7c5   :  { %8183 = vmatpush1.bf16.msra.mxu0 %v12394_v39  ;;  %v12477_v39 = vld [vmem:[#allocation9 + $0x13e4] ss:$16 sps:$4 sm:$0xff]  }
 0x7c6   :  { %8184 = vmatprep.subr.bf16.mxu0 %v12399_v41  ;;  %v12481_v41 = vld [vmem:[#allocation9 + $0x13c0] ss:$16 sps:$4 sm:$0xff]  }
 0x7c7   :  { %7344 = vmatpush1.bf16.msra.mxu1 %v12349_v25  ;;  %v12459_v25 = vld [vmem:[#allocation9 + $0x1244] ss:$16 sps:$4 sm:$0xff]  }
 0x7c8   :  { %7345 = vmatprep.subr.bf16.mxu1 %v12354_v30  ;;  %v12463_v30 = vld [vmem:[#allocation9 + $0x1220] ss:$16 sps:$4 sm:$0xff]  }
 0x7c9   :  { %8185 = vmatpush1.bf16.msra.mxu0 %v12397_v46  ;;  %v12489_v46 = vld [vmem:[#allocation9 + $0x13a4] ss:$16 sps:$4 sm:$0xff]  }
 0x7ca   :  { %8186 = vmatprep.subr.bf16.mxu0 %v12402_v47  ;;  %v12493_v47 = vld [vmem:[#allocation9 + $0x1380] ss:$16 sps:$4 sm:$0xff]  }
 0x7cb   :  { %7346 = vmatpush1.bf16.msra.mxu1 %v12352_v35  ;;  %v12471_v35 = vld [vmem:[#allocation9 + $0x1204] ss:$16 sps:$4 sm:$0xff]  }
 0x7cc   :  { %7347 = vmatprep.subr.bf16.mxu1 %v12357_v40  ;;  %v12475_v40 = vld [vmem:[#allocation9 + $0x13e0] ss:$16 sps:$4 sm:$0xff]  }
 0x7cd   :  { %8187 = vmatpush1.bf16.msra.mxu0 %v12400_v45  ;;  %v12501_v45 = vld [vmem:[#allocation9 + $0x1364] ss:$16 sps:$4 sm:$0xff]  }
 0x7ce   :  { %8188 = vmatprep.subr.bf16.mxu0 %v12405_v55  ;;  %v12505_v55 = vld [vmem:[#allocation9 + $0x1340] ss:$16 sps:$4 sm:$0xff]  }
 0x7cf   :  { %7348 = vmatpush2.bf16.msra.mxu1 %v12355_v42  ;;  %v12483_v42 = vld [vmem:[#allocation9 + $0x13c4] ss:$16 sps:$4 sm:$0xff]  }
 0x7d0   :  { %7349 = vmatprep.subr.bf16.mxu1 %v12360_v43  ;;  %v12487_v43 = vld [vmem:[#allocation9 + $0x13a0] ss:$16 sps:$4 sm:$0xff]  }
 0x7d1   :  { %8189 = vmatpush2.bf16.msra.mxu0 %v12403_v57 }
 0x7d2   :  { %8190 = vmatprep.subr.bf16.mxu0 %v12408_v44 }
 0x7d3   :  { %7350 = vmatpush2.bf16.msra.mxu1 %v12358_v48  ;;  %v12495_v48 = vld [vmem:[#allocation9 + $0x1384] ss:$16 sps:$4 sm:$0xff]  }
 0x7d4   :  { %7351 = vmatprep.subr.bf16.mxu1 %v12363_v49  ;;  %v12499_v49 = vld [vmem:[#allocation9 + $0x1360] ss:$16 sps:$4 sm:$0xff]  }
 0x7d5   :  { %8191 = vmatpush2.bf16.msra.mxu0 %v12406_v50 }
 0x7d6   :  { %8192 = vmatprep.subr.bf16.mxu0 %v12411_v59 }
 0x7d7   :  { %7352 = vmatpush2.bf16.msra.mxu1 %v12361_v52  ;;  %v12507_v52 = vld [vmem:[#allocation9 + $0x1344] ss:$16 sps:$4 sm:$0xff]  }
 0x7d8   :  { %7353 = vmatprep.subr.bf16.mxu1 %v12366_v56  ;;  %v10444_v56 = vld [vmem:[#allocation13] ss:$0 sm:$0xff] }
 0x7d9   :  { %8193 = vmatpush2.bf16.msra.mxu0 %v12409_v1 }
 0x7da   :  { %8194 = vmatprep.subr.bf16.mxu0 %v12414_v38 }
 0x7db   :  { %7354 = vmatpush2.bf16.msra.mxu1 %v12364_v58  ;;  %v12513_v58 = vld [vmem:[#allocation9 + $0x1324] ss:$16 sps:$4 sm:$0xff]  }
 0x7dc   :  { %7355 = vmatprep.subr.bf16.mxu1 %v12369_v53  ;;  %v12511_v53 = vld [vmem:[#allocation9 + $0x1320] ss:$16 sps:$4 sm:$0xff]  }
 0x7dd   :  { %8195 = vmatpush2.bf16.msra.mxu0 %v12412_v3  ;;  %v12517_v3 = vld [vmem:[#allocation9 + $0x1300] ss:$16 sps:$4 sm:$0xff]  }
 0x7de   :  { %8196 = vmatprep.subr.bf16.mxu0 %v12417_v4 }
 0x7df   :  { %7356 = vmatpush2.bf16.msra.mxu1 %v12367_v60 }
 0x7e0   :  { %7357 = vmatprep.subr.bf16.mxu1 %v12372_v63 }
 0x7e1   :  { %8197 = vmatpush2.bf16.msra.mxu0 %v12415_v6  ;;  %v13254_v6 = vld [vmem:[#allocation10 + $0xc] sm:$0xf] }
 0x7e2   :  { %8198 = vmatprep.subr.bf16.mxu0 %v12420_v7  ;;  %v6551_v7 = vrot.slane %v13254_v6, %v13079_v13 }
 0x7e3   :  { %7358 = vmatpush2.bf16.msra.mxu1 %v12370_v2  ;;  %v12519_v2 = vld [vmem:[#allocation9 + $0x1304] ss:$16 sps:$4 sm:$0xff]  }
 0x7e4   :  { %7359 = vmatprep.subr.bf16.mxu1 %v12375_v37 }
 0x7e5   :  { %8199 = vmatpush2.bf16.msra.mxu0 %v12418_v9 }
 0x7e6   :  { %8200 = vmatprep.subr.bf16.mxu0 %v12423_v10 }
 0x7e7   :  { %7360 = vmatpush2.bf16.msra.mxu1 %v12373_v5 }
 0x7e8   :  { %7361 = vmatprep.subr.bf16.mxu1 %v12378_v62  ;;  %v12525_v62 = vld [vmem:[#allocation9 + $0x12ec] ss:$16 sps:$4 sm:$0xff]  }
 0x7e9   :  { %8201 = vmatpush2.bf16.msra.mxu0 %v12421_v11 }
 0x7ea   :  { %8202 = vmatprep.subr.bf16.mxu0 %v12426_v19 }
 0x7eb   :  { %7362 = vmatpush2.bf16.msra.mxu1 %v12376_v61  ;;  %v6555_v61 = vrot.slane %v13254_v6, %v13083_v15 }
 0x7ec   :  { %8213 = vmatprep.subr.bf16.mxu1 %v12429_v21 }
 0x7ed   :  { %8203 = vmatpush2.bf16.msra.mxu0 %v12424_v51 }
 0x7ee   :  { %7364 = vmatmul.mubr.bf16.vlgmr.msra.gmra.mxu1 %v13166_v36  ;;  %v10910_v8 = vpop.f32.mrf.mxu0  ;;  %8254 = vmatprep.subr.bf16.mxu0 %v12432_v54  ;;  %v12433_v36 = vld [vmem:[#allocation9 + $0x12c0] ss:$16 sps:$4 sm:$0xff]  }
 0x7ef   :  { %8214 = vmatpush1.bf16.msra.mxu1 %v12427_v22 }
 0x7f0   :  { %v10911_v12 = vpop.f32.mrf.mxu0  ;;  %8215 = vmatprep.subr.bf16.mxu1 %v12435_v31 }
 0x7f1   :  { %v13249_v17 = vadd.f32 %v10911_v12, %v10910_v8 }
 0x7f2   :  { %v10913_v18 = vpop.f32.mrf.mxu0 }
 0x7f3   :  { %8216 = vmatpush1.bf16.msra.mxu1 %v12433_v36  ;;  %v6364_v60 = vadd.f32 %v13249_v17, %v10444_v56  ;;  %v12504_v56 = vld [vmem:[#allocation9 + $0x116c] ss:$16 sps:$4 sm:$0xff]  }
 0x7f4   :  { %v10914_v20 = vpop.f32.mrf.mxu0  ;;  %8217 = vmatprep.subr.bf16.mxu1 %v12441_v24 }
 0x7f7   :  { %8218 = vmatpush1.bf16.msra.mxu1 %v12439_v23  ;;  %v12430_v23 = vld [vmem:[#allocation9 + $0x10e8] ss:$16 sps:$4 sm:$0xff]  }
 0x7f8   :  { %8219 = vmatprep.subr.bf16.mxu1 %v12447_v28  ;;  %v12436_v28 = vld [vmem:[#allocation9 + $0x10c8] ss:$16 sps:$4 sm:$0xff]  }
 0x7fb   :  { %8220 = vmatpush1.bf16.msra.mxu1 %v12445_v27  ;;  %v12438_v27 = vld [vmem:[#allocation9 + $0x10cc] ss:$16 sps:$4 sm:$0xff]  }
 0x7fc   :  { %8221 = vmatprep.subr.bf16.mxu1 %v12453_v32  ;;  %v12442_v32 = vld [vmem:[#allocation9 + $0x10a8] ss:$16 sps:$4 sm:$0xff]  }
 0x7ff   :  { %8222 = vmatpush1.bf16.msra.mxu1 %v12451_v29  ;;  %v12444_v29 = vld [vmem:[#allocation9 + $0x10ac] ss:$16 sps:$4 sm:$0xff]  }
 0x800   :  { %8223 = vmatprep.subr.bf16.mxu1 %v12459_v25  ;;  %v12448_v25 = vld [vmem:[#allocation9 + $0x1088] ss:$16 sps:$4 sm:$0xff]  }
 0x803   :  { %8224 = vmatpush1.bf16.msra.mxu1 %v12457_v34  ;;  %v12450_v34 = vld [vmem:[#allocation9 + $0x108c] ss:$16 sps:$4 sm:$0xff]  }
 0x804   :  { %8225 = vmatprep.subr.bf16.mxu1 %v12465_v26  ;;  %v12454_v26 = vld [vmem:[#allocation9 + $0x1068] ss:$16 sps:$4 sm:$0xff]  }
 0x807   :  { %8226 = vmatpush1.bf16.msra.mxu1 %v12463_v30  ;;  %v12456_v30 = vld [vmem:[#allocation9 + $0x106c] ss:$16 sps:$4 sm:$0xff]  }
 0x808   :  { %8227 = vmatprep.subr.bf16.mxu1 %v12471_v35  ;;  %v12460_v35 = vld [vmem:[#allocation9 + $0x1048] ss:$16 sps:$4 sm:$0xff]  }
 0x80b   :  { %8228 = vmatpush1.bf16.msra.mxu1 %v12469_v33  ;;  %v12462_v33 = vld [vmem:[#allocation9 + $0x104c] ss:$16 sps:$4 sm:$0xff]  }
 0x80c   :  { %8229 = vmatprep.subr.bf16.mxu1 %v12477_v39  ;;  %v12466_v39 = vld [vmem:[#allocation9 + $0x1028] ss:$16 sps:$4 sm:$0xff]  }
 0x80f   :  { %8230 = vmatpush2.bf16.msra.mxu1 %v12475_v40  ;;  %v12468_v40 = vld [vmem:[#allocation9 + $0x102c] ss:$16 sps:$4 sm:$0xff]  }
 0x810   :  { %8231 = vmatprep.subr.bf16.mxu1 %v12483_v42  ;;  %v12472_v42 = vld [vmem:[#allocation9 + $0x1008] ss:$16 sps:$4 sm:$0xff]  }
 0x813   :  { %8232 = vmatpush2.bf16.msra.mxu1 %v12481_v41  ;;  %v12474_v41 = vld [vmem:[#allocation9 + $0x100c] ss:$16 sps:$4 sm:$0xff]  }
 0x814   :  { %8233 = vmatprep.subr.bf16.mxu1 %v12489_v46  ;;  %v12478_v46 = vld [vmem:[#allocation9 + $0x11e8] ss:$16 sps:$4 sm:$0xff]  }
 0x817   :  { %8234 = vmatpush2.bf16.msra.mxu1 %v12487_v43  ;;  %v12480_v43 = vld [vmem:[#allocation9 + $0x11ec] ss:$16 sps:$4 sm:$0xff]  }
 0x818   :  { %8235 = vmatprep.subr.bf16.mxu1 %v12495_v48  ;;  %v12484_v48 = vld [vmem:[#allocation9 + $0x11c8] ss:$16 sps:$4 sm:$0xff]  }
 0x81b   :  { %8236 = vmatpush2.bf16.msra.mxu1 %v12493_v47  ;;  %v12486_v47 = vld [vmem:[#allocation9 + $0x11cc] ss:$16 sps:$4 sm:$0xff]  }
 0x81c   :  { %8237 = vmatprep.subr.bf16.mxu1 %v12501_v45  ;;  %v12490_v45 = vld [vmem:[#allocation9 + $0x11a8] ss:$16 sps:$4 sm:$0xff]  }
 0x81f   :  { %8238 = vmatpush2.bf16.msra.mxu1 %v12499_v49  ;;  %v12492_v49 = vld [vmem:[#allocation9 + $0x11ac] ss:$16 sps:$4 sm:$0xff]  }
 0x820   :  { %8239 = vmatprep.subr.bf16.mxu1 %v12507_v52  ;;  %v12496_v52 = vld [vmem:[#allocation9 + $0x1188] ss:$16 sps:$4 sm:$0xff]  }
 0x823   :  { %8240 = vmatpush2.bf16.msra.mxu1 %v12505_v55  ;;  %v12498_v55 = vld [vmem:[#allocation9 + $0x118c] ss:$16 sps:$4 sm:$0xff]  }
 0x824   :  { %8241 = vmatprep.subr.bf16.mxu1 %v12513_v58  ;;  %v6559_v58 = vrot.slane %v13254_v6, %v13081_v14 }
 0x827   :  { %8242 = vmatpush2.bf16.msra.mxu1 %v12511_v53  ;;  %v12508_v53 = vld [vmem:[#allocation9 + $0x1148] ss:$16 sps:$4 sm:$0xff]  }
 0x828   :  { %8243 = vmatprep.subr.bf16.mxu1 %v12519_v2 }
 0x82b   :  { %8244 = vmatpush2.bf16.msra.mxu1 %v12517_v3 }
 0x82c   :  { %8295 = vmatprep.subr.bf16.mxu1 %v12525_v62  ;;  %v12520_v62 = vld [vmem:[#allocation9 + $0x1108] ss:$16 sps:$4 sm:$0xff]  }
 0x82e   :  { %v10932_v57 = vpop.f32.mrf.mxu1  ;;  %v7242_v44 = vpop.f32.mrf.mxu0 }
 0x82f   :  { %v7243_v9 = vadd.f32 %v7242_v44, %v6551_v7  ;;  %v12510_v44 = vld [vmem:[#allocation9 + $0x114c] ss:$16 sps:$4 sm:$0xff]  }
 0x830   :  { %v10933_v50 = vpop.f32.mrf.mxu1  ;;  %v7244_v59 = vpop.f32.mrf.mxu0 }
 0x831   :  { %v10934_v63 = vadd.f32 %v10933_v50, %v10932_v57  ;;  %v7245_v10 = vadd.f32 %v7244_v59, %v6555_v61  ;;  %v12502_v57 = vld [vmem:[#allocation9 + $0x1168] ss:$16 sps:$4 sm:$0xff]   ;;  %v12516_v50 = vld [vmem:[#allocation9 + $0x112c] ss:$16 sps:$4 sm:$0xff]   ;;  %v6563_v59 = vrot.slane %v13254_v6, %v13085_v16 }
 0x832   :  { %v10935_v1 = vpop.f32.mrf.mxu1  ;;  %v7246_v38 = vpop.f32.mrf.mxu0 }
 0x833   :  { %v13252_v37 = vadd.f32 %v10934_v63, %v6364_v60  ;;  %v12514_v63 = vld [vmem:[#allocation9 + $0x1128] ss:$16 sps:$4 sm:$0xff]   ;;  %v12522_v38 = vld [vmem:[#allocation9 + $0x110c] ss:$16 sps:$4 sm:$0xff]  }
 0x834   :  { %v10936_v4 = vpop.f32.mrf.mxu1  ;;  %v7247_v5 = vpop.f32.mrf.mxu0 }
 0x86e   :  { %v7283_v8 = vpop.f32.mrf.mxu1 }
 0x86f   :  { %v7284_v11 = vadd.f32 %v7283_v8, %v7243_v9  ;;  %v13260_v12 = vpop.f32.mrf.mxu0 }
 0x870   :  { %v7285_v17 = vpop.f32.mrf.mxu1  ;;  %v7325_v60 = vadd.f32 %v13260_v12, %v6559_v58  ;;  %v12528_v12 = vld [vmem:[#allocation9 + $0x12cc] ss:$16 sps:$4 sm:$0xff]  }
 0x871   :  { %v7286_v18 = vadd.f32 %v7285_v17, %v7245_v10  ;;  %v13262_v19 = vpop.f32.mrf.mxu0  ;;  %v7372_v51 = vmax.f32 %v7284_v11, 0.0  ;;  %v12523_v10 = vld [vmem:[#allocation9 + $0x12e8] ss:$16 sps:$4 sm:$0xff]   ;;  %v12558_v58 = vld [vmem:[#allocation9 + $0x138c] ss:$16 sps:$4 sm:$0xff]  }
 0x872   :  { %v7287_v20 = vpop.f32.mrf.mxu1  ;;  %v7327_v2 = vadd.f32 %v13262_v19, %v6563_v59  ;;  %v12526_v17 = vld [vmem:[#allocation9 + $0x12c8] ss:$16 sps:$4 sm:$0xff]   ;;  %v12598_v59 = vld [vmem:[#allocation9 + $0x15c0] ss:$16 sps:$4 sm:$0xff]  }
 0x873   :  { %v7373_v21 = vmax.f32 %v7286_v18, 0.0  ;;  %v7328_v54 = vpop.f32.mrf.mxu0  ;;  %v13264_v24 = vpack.c.bf16 %v7372_v51, %v7372_v51  ;;  %v12531_v18 = vld [vmem:[#allocation9 + $0x12ac] ss:$16 sps:$4 sm:$0xff]   ;;  %v12529_v19 = vld [vmem:[#allocation9 + $0x12a8] ss:$16 sps:$4 sm:$0xff]  }
 0x874   :  { %v7288_v22 = vpop.f32.mrf.mxu1  ;;  %v12534_v51 = vld [vmem:[#allocation9 + $0x128c] ss:$16 sps:$4 sm:$0xff]   ;;  %v12571_v20 = vld [vmem:[#allocation9 + $0x14e0] ss:$16 sps:$4 sm:$0xff]   ;;  %v12576_v54 = vld [vmem:[#allocation9 + $0x14c4] ss:$16 sps:$4 sm:$0xff]  }
 0x875   :  { %v7377_v36 = vpack.c.bf16 %v7373_v21, %v7373_v21  ;;  %v7329_v31 = vpop.f32.mrf.mxu0  ;;  %v12573_v21 = vld [vmem:[#allocation9 + $0x14e4] ss:$16 sps:$4 sm:$0xff]   ;;  %v12532_v22 = vld [vmem:[#allocation9 + $0x1288] ss:$16 sps:$4 sm:$0xff]  }
 0x876   :  { %v12537_v31 = vld [vmem:[#allocation9 + $0x126c] ss:$16 sps:$4 sm:$0xff]  }
 0x877   :  { %8204 = vmatprep.mubr.bf16.mxu0 %v7377_v36 }
 0x878   :  { %8205 = vmatmul.mubr.bf16.vlgmr.msra.gmra.mxu0 %v13264_v24 }
 0x879   :  { %8255 = vmatpush1.bf16.msra.mxu0 %v12430_v23  ;;  %8286 = vmatprep.mubr.bf16.mxu0 %v7377_v36  ;;  %v12574_v36 = vld [vmem:[#allocation9 + $0x14c0] ss:$16 sps:$4 sm:$0xff]   ;;  %v12579_v23 = vld [vmem:[#allocation9 + $0x14a4] ss:$16 sps:$4 sm:$0xff]  }
 0x87a   :  { %8256 = vmatprep.subr.bf16.mxu0 %v12438_v27  ;;  %v12577_v27 = vld [vmem:[#allocation9 + $0x14a0] ss:$16 sps:$4 sm:$0xff]  }
 0x87d   :  { %8257 = vmatpush1.bf16.msra.mxu0 %v12436_v28  ;;  %v12540_v28 = vld [vmem:[#allocation9 + $0x124c] ss:$16 sps:$4 sm:$0xff]  }
 0x87e   :  { %8258 = vmatprep.subr.bf16.mxu0 %v12444_v29  ;;  %v12582_v29 = vld [vmem:[#allocation9 + $0x1484] ss:$16 sps:$4 sm:$0xff]  }
 0x881   :  { %8259 = vmatpush1.bf16.msra.mxu0 %v12442_v32  ;;  %v12538_v32 = vld [vmem:[#allocation9 + $0x1248] ss:$16 sps:$4 sm:$0xff]  }
 0x882   :  { %8260 = vmatprep.subr.bf16.mxu0 %v12450_v34  ;;  %v12580_v34 = vld [vmem:[#allocation9 + $0x1480] ss:$16 sps:$4 sm:$0xff]  }
 0x885   :  { %8261 = vmatpush1.bf16.msra.mxu0 %v12448_v25  ;;  %v12543_v25 = vld [vmem:[#allocation9 + $0x122c] ss:$16 sps:$4 sm:$0xff]  }
 0x886   :  { %8262 = vmatprep.subr.bf16.mxu0 %v12456_v30  ;;  %v12585_v30 = vld [vmem:[#allocation9 + $0x1464] ss:$16 sps:$4 sm:$0xff]  }
 0x889   :  { %8263 = vmatpush1.bf16.msra.mxu0 %v12454_v26  ;;  %v12541_v26 = vld [vmem:[#allocation9 + $0x1228] ss:$16 sps:$4 sm:$0xff]  }
 0x88a   :  { %8264 = vmatprep.subr.bf16.mxu0 %v12462_v33  ;;  %v12583_v33 = vld [vmem:[#allocation9 + $0x1460] ss:$16 sps:$4 sm:$0xff]  }
 0x88d   :  { %8265 = vmatpush1.bf16.msra.mxu0 %v12460_v35  ;;  %v12546_v35 = vld [vmem:[#allocation9 + $0x120c] ss:$16 sps:$4 sm:$0xff]  }
 0x88e   :  { %8266 = vmatprep.subr.bf16.mxu0 %v12468_v40  ;;  %v12588_v40 = vld [vmem:[#allocation9 + $0x1444] ss:$16 sps:$4 sm:$0xff]  }
 0x891   :  { %8267 = vmatpush1.bf16.msra.mxu0 %v12466_v39  ;;  %v12544_v39 = vld [vmem:[#allocation9 + $0x1208] ss:$16 sps:$4 sm:$0xff]  }
 0x892   :  { %8268 = vmatprep.subr.bf16.mxu0 %v12474_v41  ;;  %v12586_v41 = vld [vmem:[#allocation9 + $0x1440] ss:$16 sps:$4 sm:$0xff]  }
 0x895   :  { %8269 = vmatpush1.bf16.msra.mxu0 %v12472_v42  ;;  %v12549_v42 = vld [vmem:[#allocation9 + $0x13ec] ss:$16 sps:$4 sm:$0xff]  }
 0x896   :  { %8270 = vmatprep.subr.bf16.mxu0 %v12480_v43  ;;  %v12591_v43 = vld [vmem:[#allocation9 + $0x1424] ss:$16 sps:$4 sm:$0xff]  }
 0x899   :  { %8271 = vmatpush2.bf16.msra.mxu0 %v12478_v46  ;;  %v12547_v46 = vld [vmem:[#allocation9 + $0x13e8] ss:$16 sps:$4 sm:$0xff]  }
 0x89a   :  { %8272 = vmatprep.subr.bf16.mxu0 %v12486_v47  ;;  %v12589_v47 = vld [vmem:[#allocation9 + $0x1420] ss:$16 sps:$4 sm:$0xff]  }
 0x89d   :  { %8273 = vmatpush2.bf16.msra.mxu0 %v12484_v48  ;;  %v12552_v48 = vld [vmem:[#allocation9 + $0x13cc] ss:$16 sps:$4 sm:$0xff]  }
 0x89e   :  { %8274 = vmatprep.subr.bf16.mxu0 %v12492_v49  ;;  %v12594_v49 = vld [vmem:[#allocation9 + $0x1404] ss:$16 sps:$4 sm:$0xff]  }
 0x8a1   :  { %8275 = vmatpush2.bf16.msra.mxu0 %v12490_v45  ;;  %v12550_v45 = vld [vmem:[#allocation9 + $0x13c8] ss:$16 sps:$4 sm:$0xff]  }
 0x8a2   :  { %8276 = vmatprep.subr.bf16.mxu0 %v12498_v55  ;;  %v12592_v55 = vld [vmem:[#allocation9 + $0x1400] ss:$16 sps:$4 sm:$0xff]  }
 0x8a5   :  { %8277 = vmatpush2.bf16.msra.mxu0 %v12496_v52  ;;  %v12555_v52 = vld [vmem:[#allocation9 + $0x13ac] ss:$16 sps:$4 sm:$0xff]  }
 0x8a6   :  { %8278 = vmatprep.subr.bf16.mxu0 %v12504_v56  ;;  %v12597_v56 = vld [vmem:[#allocation9 + $0x15e4] ss:$16 sps:$4 sm:$0xff]  }
 0x8a9   :  { %8279 = vmatpush2.bf16.msra.mxu0 %v12502_v57  ;;  %v12553_v57 = vld [vmem:[#allocation9 + $0x13a8] ss:$16 sps:$4 sm:$0xff]  }
 0x8aa   :  { %8280 = vmatprep.subr.bf16.mxu0 %v12510_v44  ;;  %v12595_v44 = vld [vmem:[#allocation9 + $0x15e0] ss:$16 sps:$4 sm:$0xff]  }
 0x8ad   :  { %8281 = vmatpush2.bf16.msra.mxu0 %v12508_v53  ;;  %v12600_v53 = vld [vmem:[#allocation9 + $0x15c4] ss:$16 sps:$4 sm:$0xff]  }
 0x8ae   :  { %v7365_v1 = vpop.f32.mrf.mxu1  ;;  %8282 = vmatprep.subr.bf16.mxu0 %v12516_v50  ;;  %v12556_v50 = vld [vmem:[#allocation9 + $0x1388] ss:$16 sps:$4 sm:$0xff]  }
 0x8af   :  { %v7366_v3 = vadd.f32 %v7365_v1, %v7325_v60  ;;  %v12561_v60 = vld [vmem:[#allocation9 + $0x136c] ss:$16 sps:$4 sm:$0xff]   ;;  %v12559_v1 = vld [vmem:[#allocation9 + $0x1368] ss:$16 sps:$4 sm:$0xff]  }
 0x8b0   :  { %v7367_v4 = vpop.f32.mrf.mxu1 }
 0x8b1   :  { %v7368_v5 = vadd.f32 %v7367_v4, %v7327_v2  ;;  %8283 = vmatpush2.bf16.msra.mxu0 %v12514_v63  ;;  %v7374_v7 = vmax.f32 %v7366_v3, 0.0  ;;  %v12603_v63 = vld [vmem:[#allocation9 + $0x15a4] ss:$16 sps:$4 sm:$0xff]   ;;  %v12564_v2 = vld [vmem:[#allocation9 + $0x134c] ss:$16 sps:$4 sm:$0xff]  }
 0x8b2   :  { %v7369_v61 = vpop.f32.mrf.mxu1  ;;  %8284 = vmatprep.subr.bf16.mxu0 %v12522_v38  ;;  %v12601_v38 = vld [vmem:[#allocation9 + $0x15a0] ss:$16 sps:$4 sm:$0xff]   ;;  %v12606_v3 = vld [vmem:[#allocation9 + $0x1584] ss:$16 sps:$4 sm:$0xff]   ;;  %v12562_v4 = vld [vmem:[#allocation9 + $0x1348] ss:$16 sps:$4 sm:$0xff]  }
 0x8b3   :  { %v7375_v9 = vmax.f32 %v7368_v5, 0.0  ;;  %v13273_v11 = vpack.c.bf16 %v7374_v7, %v7374_v7  ;;  %v12604_v5 = vld [vmem:[#allocation9 + $0x1580] ss:$16 sps:$4 sm:$0xff]   ;;  %v12609_v7 = vld [vmem:[#allocation9 + $0x1564] ss:$16 sps:$4 sm:$0xff]  }
 0x8b4   :  { %v7370_v8 = vpop.f32.mrf.mxu1  ;;  %v12565_v61 = vld [vmem:[#allocation9 + $0x1328] ss:$16 sps:$4 sm:$0xff]  }
 0x8b5   :  { %v7379_v6 = vpack.c.bf16 %v7375_v9, %v7375_v9  ;;  %8285 = vmatpush2.bf16.msra.mxu0 %v12520_v62  ;;  %v12567_v62 = vld [vmem:[#allocation9 + $0x132c] ss:$16 sps:$4 sm:$0xff]   ;;  %v12607_v9 = vld [vmem:[#allocation9 + $0x1560] ss:$16 sps:$4 sm:$0xff]  }
 0x8b6   :  { %9136 = vmatprep.subr.bf16.mxu0 %v12573_v21  ;;  %v12570_v8 = vld [vmem:[#allocation9 + $0x130c] ss:$16 sps:$4 sm:$0xff]   ;;  %v12621_v21 = vld [vmem:[#allocation9 + $0x16e4] ss:$16 sps:$4 sm:$0xff]  }
 0x8b7   :  { %8245 = vmatprep.mubr.bf16.mxu1 %v7379_v6 }
 0x8b8   :  { %8287 = vmatmul.mubr.bf16.vlgmr.msra.gmra.mxu0 %v13264_v24  ;;  %8246 = vmatmul.mubr.bf16.vlgmr.msra.gmra.mxu1 %v13273_v11  ;;  %v12535_v24 = vld [vmem:[#allocation9 + $0x1268] ss:$16 sps:$4 sm:$0xff]  }
 0x8b9   :  { %8296 = vmatpush1.bf16.msra.mxu1 %v12523_v10  ;;  %8327 = vmatprep.mubr.bf16.mxu1 %v7379_v6  ;;  %v12612_v6 = vld [vmem:[#allocation9 + $0x1544] ss:$16 sps:$4 sm:$0xff]   ;;  %v12568_v10 = vld [vmem:[#allocation9 + $0x1308] ss:$16 sps:$4 sm:$0xff]  }
 0x8ba   :  { %8297 = vmatprep.subr.bf16.mxu1 %v12528_v12  ;;  %9137 = vmatpush1.bf16.msra.mxu0 %v12571_v20  ;;  %v12610_v12 = vld [vmem:[#allocation9 + $0x1540] ss:$16 sps:$4 sm:$0xff]  }
 0x8bb   :  { %9138 = vmatprep.subr.bf16.mxu0 %v12576_v54  ;;  %v12619_v20 = vld [vmem:[#allocation9 + $0x16e0] ss:$16 sps:$4 sm:$0xff]   ;;  %v12624_v54 = vld [vmem:[#allocation9 + $0x14ec] ss:$16 sps:$4 sm:$0xff]  }
 0x8bd   :  { %8298 = vmatpush1.bf16.msra.mxu1 %v12526_v17  ;;  %v12615_v17 = vld [vmem:[#allocation9 + $0x1524] ss:$16 sps:$4 sm:$0xff]  }
 0x8be   :  { %8299 = vmatprep.subr.bf16.mxu1 %v12531_v18  ;;  %9139 = vmatpush1.bf16.msra.mxu0 %v12574_v36  ;;  %v12613_v18 = vld [vmem:[#allocation9 + $0x1520] ss:$16 sps:$4 sm:$0xff]   ;;  %v12627_v36 = vld [vmem:[#allocation9 + $0x16c4] ss:$16 sps:$4 sm:$0xff]  }
 0x8bf   :  { %9140 = vmatprep.subr.bf16.mxu0 %v12579_v23  ;;  %v12637_v23 = vld [vmem:[#allocation9 + $0x1680] ss:$16 sps:$4 sm:$0xff]  }
 0x8c1   :  { %8300 = vmatpush1.bf16.msra.mxu1 %v12529_v19  ;;  %v12618_v19 = vld [vmem:[#allocation9 + $0x1504] ss:$16 sps:$4 sm:$0xff]  }
 0x8c2   :  { %8301 = vmatprep.subr.bf16.mxu1 %v12534_v51  ;;  %9141 = vmatpush1.bf16.msra.mxu0 %v12577_v27  ;;  %v12616_v51 = vld [vmem:[#allocation9 + $0x1500] ss:$16 sps:$4 sm:$0xff]  }
 0x8c3   :  { %9142 = vmatprep.subr.bf16.mxu0 %v12582_v29  ;;  %v12643_v27 = vld [vmem:[#allocation9 + $0x1660] ss:$16 sps:$4 sm:$0xff]  }
 0x8c4   :  { %v12649_v29 = vld [vmem:[#allocation9 + $0x1640] ss:$16 sps:$4 sm:$0xff]  }
 0x8c5   :  { %8302 = vmatpush1.bf16.msra.mxu1 %v12532_v22  ;;  %v12625_v22 = vld [vmem:[#allocation9 + $0x16c0] ss:$16 sps:$4 sm:$0xff]  }
 0x8c6   :  { %8303 = vmatprep.subr.bf16.mxu1 %v12537_v31  ;;  %9143 = vmatpush1.bf16.msra.mxu0 %v12580_v34  ;;  %v12631_v31 = vld [vmem:[#allocation9 + $0x16a0] ss:$16 sps:$4 sm:$0xff]  }
 0x8c7   :  { %9144 = vmatprep.subr.bf16.mxu0 %v12585_v30  ;;  %v12655_v34 = vld [vmem:[#allocation9 + $0x1620] ss:$16 sps:$4 sm:$0xff]  }
 0x8c8   :  { %v12661_v30 = vld [vmem:[#allocation9 + $0x1600] ss:$16 sps:$4 sm:$0xff]  }
 0x8c9   :  { %8304 = vmatpush1.bf16.msra.mxu1 %v12535_v24  ;;  %v12639_v24 = vld [vmem:[#allocation9 + $0x1684] ss:$16 sps:$4 sm:$0xff]  }
 0x8ca   :  { %8305 = vmatprep.subr.bf16.mxu1 %v12540_v28  ;;  %9145 = vmatpush1.bf16.msra.mxu0 %v12583_v33  ;;  %v12645_v28 = vld [vmem:[#allocation9 + $0x1664] ss:$16 sps:$4 sm:$0xff]   ;;  %v12667_v33 = vld [vmem:[#allocation9 + $0x17e0] ss:$16 sps:$4 sm:$0xff]  }
 0x8cb   :  { %9146 = vmatprep.subr.bf16.mxu0 %v12588_v40  ;;  %v12673_v40 = vld [vmem:[#allocation9 + $0x17c0] ss:$16 sps:$4 sm:$0xff]  }
 0x8cd   :  { %8306 = vmatpush1.bf16.msra.mxu1 %v12538_v32  ;;  %v12651_v32 = vld [vmem:[#allocation9 + $0x1644] ss:$16 sps:$4 sm:$0xff]  }
 0x8ce   :  { %8307 = vmatprep.subr.bf16.mxu1 %v12543_v25  ;;  %9147 = vmatpush1.bf16.msra.mxu0 %v12586_v41  ;;  %v12657_v25 = vld [vmem:[#allocation9 + $0x1624] ss:$16 sps:$4 sm:$0xff]   ;;  %v12679_v41 = vld [vmem:[#allocation9 + $0x17a0] ss:$16 sps:$4 sm:$0xff]  }
 0x8cf   :  { %9148 = vmatprep.subr.bf16.mxu0 %v12591_v43  ;;  %v12685_v43 = vld [vmem:[#allocation9 + $0x1780] ss:$16 sps:$4 sm:$0xff]  }
 0x8d1   :  { %8308 = vmatpush1.bf16.msra.mxu1 %v12541_v26  ;;  %v12663_v26 = vld [vmem:[#allocation9 + $0x1604] ss:$16 sps:$4 sm:$0xff]  }
 0x8d2   :  { %8309 = vmatprep.subr.bf16.mxu1 %v12546_v35  ;;  %9149 = vmatpush1.bf16.msra.mxu0 %v12589_v47  ;;  %v12669_v35 = vld [vmem:[#allocation9 + $0x17e4] ss:$16 sps:$4 sm:$0xff]   ;;  %v12691_v47 = vld [vmem:[#allocation9 + $0x1760] ss:$16 sps:$4 sm:$0xff]  }
 0x8d3   :  { %9150 = vmatprep.subr.bf16.mxu0 %v12594_v49  ;;  %v12697_v49 = vld [vmem:[#allocation9 + $0x1740] ss:$16 sps:$4 sm:$0xff]  }
 0x8d5   :  { %8310 = vmatpush1.bf16.msra.mxu1 %v12544_v39  ;;  %v12675_v39 = vld [vmem:[#allocation9 + $0x17c4] ss:$16 sps:$4 sm:$0xff]  }
 0x8d6   :  { %8311 = vmatprep.subr.bf16.mxu1 %v12549_v42  ;;  %9151 = vmatpush1.bf16.msra.mxu0 %v12592_v55  ;;  %v12681_v42 = vld [vmem:[#allocation9 + $0x17a4] ss:$16 sps:$4 sm:$0xff]  }
 0x8d7   :  { %9152 = vmatprep.subr.bf16.mxu0 %v12597_v56  ;;  %v12705_v55 = vld [vmem:[#allocation9 + $0x1724] ss:$16 sps:$4 sm:$0xff]   ;;  %v12703_v56 = vld [vmem:[#allocation9 + $0x1720] ss:$16 sps:$4 sm:$0xff]  }
 0x8d9   :  { %8312 = vmatpush2.bf16.msra.mxu1 %v12547_v46  ;;  %v12687_v46 = vld [vmem:[#allocation9 + $0x1784] ss:$16 sps:$4 sm:$0xff]  }
 0x8da   :  { %8313 = vmatprep.subr.bf16.mxu1 %v12552_v48  ;;  %9153 = vmatpush2.bf16.msra.mxu0 %v12595_v44  ;;  %v12693_v48 = vld [vmem:[#allocation9 + $0x1764] ss:$16 sps:$4 sm:$0xff]  }
 0x8db   :  { %9154 = vmatprep.subr.bf16.mxu0 %v12600_v53  ;;  %v12711_v44 = vld [vmem:[#allocation9 + $0x1704] ss:$16 sps:$4 sm:$0xff]   ;;  %v12709_v53 = vld [vmem:[#allocation9 + $0x1700] ss:$16 sps:$4 sm:$0xff]  }
 0x8dd   :  { %8314 = vmatpush2.bf16.msra.mxu1 %v12550_v45  ;;  %v12699_v45 = vld [vmem:[#allocation9 + $0x1744] ss:$16 sps:$4 sm:$0xff]  }
 0x8de   :  { %8315 = vmatprep.subr.bf16.mxu1 %v12555_v52  ;;  %9155 = vmatpush2.bf16.msra.mxu0 %v12598_v59  ;;  %v12717_v59 = vld [vmem:[#allocation9 + $0x16ec] ss:$16 sps:$4 sm:$0xff]  }
 0x8df   :  { %9156 = vmatprep.subr.bf16.mxu0 %v12603_v63 }
 0x8e1   :  { %8316 = vmatpush2.bf16.msra.mxu1 %v12553_v57 }
 0x8e2   :  { %8317 = vmatprep.subr.bf16.mxu1 %v12558_v58  ;;  %9157 = vmatpush2.bf16.msra.mxu0 %v12601_v38 }
 0x8e3   :  { %9158 = vmatprep.subr.bf16.mxu0 %v12606_v3 }
 0x8e5   :  { %8318 = vmatpush2.bf16.msra.mxu1 %v12556_v50 }
 0x8e6   :  { %8319 = vmatprep.subr.bf16.mxu1 %v12561_v60  ;;  %9159 = vmatpush2.bf16.msra.mxu0 %v12604_v5  ;;  %v13278_v60 = vld [vmem:[#allocation10 + $0x10] sm:$0xf] }
 0x8e7   :  { %9160 = vmatprep.subr.bf16.mxu0 %v12609_v7  ;;  %v7515_v63 = vrot.slane %v13278_v60, %v13079_v13 }
 0x8e9   :  { %8320 = vmatpush2.bf16.msra.mxu1 %v12559_v1  ;;  %v7519_v1 = vrot.slane %v13278_v60, %v13083_v15 }
 0x8ea   :  { %8321 = vmatprep.subr.bf16.mxu1 %v12564_v2  ;;  %9161 = vmatpush2.bf16.msra.mxu0 %v12607_v9 }
 0x8eb   :  { %9162 = vmatprep.subr.bf16.mxu0 %v12612_v6 }
 0x8ed   :  { %8322 = vmatpush2.bf16.msra.mxu1 %v12562_v4 }
 0x8ee   :  { %8323 = vmatprep.subr.bf16.mxu1 %v12567_v62  ;;  %9163 = vmatpush2.bf16.msra.mxu0 %v12610_v12 }
 0x8ef   :  { %9164 = vmatprep.subr.bf16.mxu0 %v12615_v17 }
 0x8f1   :  { %8324 = vmatpush2.bf16.msra.mxu1 %v12565_v61 }
 0x8f2   :  { %8325 = vmatprep.subr.bf16.mxu1 %v12570_v8  ;;  %9165 = vmatpush2.bf16.msra.mxu0 %v12613_v18 }
 0x8f3   :  { %9166 = vmatprep.subr.bf16.mxu0 %v12618_v19  ;;  %v12622_v19 = vld [vmem:[#allocation9 + $0x14e8] ss:$16 sps:$4 sm:$0xff]  }
 0x8f5   :  { %8326 = vmatpush2.bf16.msra.mxu1 %v12568_v10 }
 0x8f6   :  { %9167 = vmatpush2.bf16.msra.mxu0 %v12616_v51  ;;  %9177 = vmatprep.subr.bf16.mxu1 %v12621_v21  ;;  %v12628_v21 = vld [vmem:[#allocation9 + $0x14c8] ss:$16 sps:$4 sm:$0xff]  }
 0x8f7   :  { %9218 = vmatprep.subr.bf16.mxu0 %v12624_v54  ;;  %v12636_v54 = vld [vmem:[#allocation9 + $0x14ac] ss:$16 sps:$4 sm:$0xff]  }
 0x8f8   :  { %8328 = vmatmul.mubr.bf16.vlgmr.msra.gmra.mxu1 %v13273_v11  ;;  %v12633_v11 = vld [vmem:[#allocation9 + $0x16a4] ss:$16 sps:$4 sm:$0xff]  }
 0x8f9   :  { %9178 = vmatpush1.bf16.msra.mxu1 %v12619_v20  ;;  %v12630_v20 = vld [vmem:[#allocation9 + $0x14cc] ss:$16 sps:$4 sm:$0xff]  }
 0x8fa   :  { %9179 = vmatprep.subr.bf16.mxu1 %v12627_v36  ;;  %v12642_v36 = vld [vmem:[#allocation9 + $0x148c] ss:$16 sps:$4 sm:$0xff]  }
 0x8fd   :  { %9180 = vmatpush1.bf16.msra.mxu1 %v12625_v22  ;;  %v12634_v22 = vld [vmem:[#allocation9 + $0x14a8] ss:$16 sps:$4 sm:$0xff]  }
 0x8fe   :  { %9181 = vmatprep.subr.bf16.mxu1 %v12633_v11  ;;  %v12648_v11 = vld [vmem:[#allocation9 + $0x146c] ss:$16 sps:$4 sm:$0xff]  }
 0x901   :  { %9182 = vmatpush1.bf16.msra.mxu1 %v12631_v31  ;;  %v12640_v31 = vld [vmem:[#allocation9 + $0x1488] ss:$16 sps:$4 sm:$0xff]  }
 0x902   :  { %9183 = vmatprep.subr.bf16.mxu1 %v12639_v24  ;;  %v12654_v24 = vld [vmem:[#allocation9 + $0x144c] ss:$16 sps:$4 sm:$0xff]  }
 0x905   :  { %9184 = vmatpush1.bf16.msra.mxu1 %v12637_v23  ;;  %v12646_v23 = vld [vmem:[#allocation9 + $0x1468] ss:$16 sps:$4 sm:$0xff]  }
 0x906   :  { %9185 = vmatprep.subr.bf16.mxu1 %v12645_v28  ;;  %v12660_v28 = vld [vmem:[#allocation9 + $0x142c] ss:$16 sps:$4 sm:$0xff]  }
 0x909   :  { %9186 = vmatpush1.bf16.msra.mxu1 %v12643_v27  ;;  %v12652_v27 = vld [vmem:[#allocation9 + $0x1448] ss:$16 sps:$4 sm:$0xff]  }
 0x90a   :  { %9187 = vmatprep.subr.bf16.mxu1 %v12651_v32  ;;  %v12666_v32 = vld [vmem:[#allocation9 + $0x140c] ss:$16 sps:$4 sm:$0xff]  }
 0x90d   :  { %9188 = vmatpush1.bf16.msra.mxu1 %v12649_v29  ;;  %v12658_v29 = vld [vmem:[#allocation9 + $0x1428] ss:$16 sps:$4 sm:$0xff]  }
 0x90e   :  { %9189 = vmatprep.subr.bf16.mxu1 %v12657_v25  ;;  %v12672_v25 = vld [vmem:[#allocation9 + $0x15ec] ss:$16 sps:$4 sm:$0xff]  }
 0x911   :  { %9190 = vmatpush1.bf16.msra.mxu1 %v12655_v34  ;;  %v12664_v34 = vld [vmem:[#allocation9 + $0x1408] ss:$16 sps:$4 sm:$0xff]  }
 0x912   :  { %9191 = vmatprep.subr.bf16.mxu1 %v12663_v26  ;;  %v12678_v26 = vld [vmem:[#allocation9 + $0x15cc] ss:$16 sps:$4 sm:$0xff]  }
 0x915   :  { %9192 = vmatpush1.bf16.msra.mxu1 %v12661_v30  ;;  %v12670_v30 = vld [vmem:[#allocation9 + $0x15e8] ss:$16 sps:$4 sm:$0xff]  }
 0x916   :  { %9193 = vmatprep.subr.bf16.mxu1 %v12669_v35  ;;  %v12684_v35 = vld [vmem:[#allocation9 + $0x15ac] ss:$16 sps:$4 sm:$0xff]  }
 0x919   :  { %9194 = vmatpush2.bf16.msra.mxu1 %v12667_v33  ;;  %v12676_v33 = vld [vmem:[#allocation9 + $0x15c8] ss:$16 sps:$4 sm:$0xff]  }
 0x91a   :  { %9195 = vmatprep.subr.bf16.mxu1 %v12675_v39  ;;  %v12690_v39 = vld [vmem:[#allocation9 + $0x158c] ss:$16 sps:$4 sm:$0xff]  }
 0x91d   :  { %9196 = vmatpush2.bf16.msra.mxu1 %v12673_v40  ;;  %v12682_v40 = vld [vmem:[#allocation9 + $0x15a8] ss:$16 sps:$4 sm:$0xff]  }
 0x91e   :  { %9197 = vmatprep.subr.bf16.mxu1 %v12681_v42  ;;  %v12696_v42 = vld [vmem:[#allocation9 + $0x156c] ss:$16 sps:$4 sm:$0xff]  }
 0x921   :  { %9198 = vmatpush2.bf16.msra.mxu1 %v12679_v41  ;;  %v12688_v41 = vld [vmem:[#allocation9 + $0x1588] ss:$16 sps:$4 sm:$0xff]  }
 0x922   :  { %9199 = vmatprep.subr.bf16.mxu1 %v12687_v46  ;;  %v12702_v46 = vld [vmem:[#allocation9 + $0x154c] ss:$16 sps:$4 sm:$0xff]  }
 0x925   :  { %9200 = vmatpush2.bf16.msra.mxu1 %v12685_v43  ;;  %v12694_v43 = vld [vmem:[#allocation9 + $0x1568] ss:$16 sps:$4 sm:$0xff]  }
 0x926   :  { %9201 = vmatprep.subr.bf16.mxu1 %v12693_v48  ;;  %v12700_v48 = vld [vmem:[#allocation9 + $0x1548] ss:$16 sps:$4 sm:$0xff]  }
 0x929   :  { %9202 = vmatpush2.bf16.msra.mxu1 %v12691_v47  ;;  %v7523_v47 = vrot.slane %v13278_v60, %v13081_v14 }
 0x92a   :  { %9203 = vmatprep.subr.bf16.mxu1 %v12699_v45  ;;  %v7527_v45 = vrot.slane %v13278_v60, %v13085_v16 }
 0x92d   :  { %9204 = vmatpush2.bf16.msra.mxu1 %v12697_v49  ;;  %v12708_v49 = vld [vmem:[#allocation9 + $0x152c] ss:$16 sps:$4 sm:$0xff]  }
 0x92e   :  { %9205 = vmatprep.subr.bf16.mxu1 %v12705_v55 }
 0x931   :  { %9206 = vmatpush2.bf16.msra.mxu1 %v12703_v56 }
 0x932   :  { %9207 = vmatprep.subr.bf16.mxu1 %v12711_v44 }
 0x935   :  { %9208 = vmatpush2.bf16.msra.mxu1 %v12709_v53 }
 0x936   :  { %9259 = vmatprep.subr.bf16.mxu1 %v12717_v59  ;;  %v12712_v59 = vld [vmem:[#allocation9 + $0x1508] ss:$16 sps:$4 sm:$0xff]  }
 0x938   :  { %v8206_v52 = vpop.f32.mrf.mxu0 }
 0x939   :  { %v8207_v38 = vadd.f32 %v8206_v52, %v7515_v63  ;;  %v12706_v52 = vld [vmem:[#allocation9 + $0x1528] ss:$16 sps:$4 sm:$0xff]  }
 0x93a   :  { %v8208_v57 = vpop.f32.mrf.mxu0 }
 0x93b   :  { %v8209_v4 = vadd.f32 %v8208_v57, %v7519_v1  ;;  %v12714_v57 = vld [vmem:[#allocation9 + $0x150c] ss:$16 sps:$4 sm:$0xff]  }
 0x93c   :  { %v8210_v58 = vpop.f32.mrf.mxu0 }
 0x93e   :  { %v8211_v50 = vpop.f32.mrf.mxu0 }
 0x978   :  { %v13284_v2 = vpop.f32.mrf.mxu0  ;;  %v8247_v3 = vpop.f32.mrf.mxu1 }
 0x979   :  { %v8248_v5 = vadd.f32 %v8247_v3, %v8207_v38  ;;  %v8289_v55 = vadd.f32 %v13284_v2, %v7523_v47  ;;  %v12715_v2 = vld [vmem:[#allocation9 + $0x16e8] ss:$16 sps:$4 sm:$0xff]   ;;  %v12759_v47 = vld [vmem:[#allocation9 + $0x172c] ss:$16 sps:$4 sm:$0xff]  }
 0x97a   :  { %v13286_v62 = vpop.f32.mrf.mxu0  ;;  %v8249_v7 = vpop.f32.mrf.mxu1 }
 0x97b   :  { %v8250_v61 = vadd.f32 %v8249_v7, %v8209_v4  ;;  %v8336_v9 = vmax.f32 %v8248_v5, 0.0  ;;  %v8291_v44 = vadd.f32 %v13286_v62, %v7527_v45  ;;  %v12720_v5 = vld [vmem:[#allocation9 + $0x16cc] ss:$16 sps:$4 sm:$0xff]   ;;  %v12718_v62 = vld [vmem:[#allocation9 + $0x16c8] ss:$16 sps:$4 sm:$0xff]  }
 0x97c   :  { %v8292_v8 = vpop.f32.mrf.mxu0  ;;  %v8251_v6 = vpop.f32.mrf.mxu1  ;;  %v12723_v7 = vld [vmem:[#allocation9 + $0x16ac] ss:$16 sps:$4 sm:$0xff]   ;;  %v12760_v45 = vld [vmem:[#allocation9 + $0x1708] ss:$16 sps:$4 sm:$0xff]  }
 0x97d   :  { %v8337_v10 = vmax.f32 %v8250_v61, 0.0  ;;  %v13288_v51 = vpack.c.bf16 %v8336_v9, %v8336_v9  ;;  %v12721_v61 = vld [vmem:[#allocation9 + $0x16a8] ss:$16 sps:$4 sm:$0xff]   ;;  %v12726_v9 = vld [vmem:[#allocation9 + $0x168c] ss:$16 sps:$4 sm:$0xff]   ;;  %v12763_v8 = vld [vmem:[#allocation12 + $0x178] sm:$0xff]  }
 0x97e   :  { %v8293_v12 = vpop.f32.mrf.mxu0  ;;  %v8252_v17 = vpop.f32.mrf.mxu1  ;;  %v12764_v6 = vld [vmem:[#allocation12 + $0x138] sm:$0xff]  }
 0x97f   :  { %v8341_v18 = vpack.c.bf16 %v8337_v10, %v8337_v10  ;;  %v12765_v10 = vld [vmem:[#allocation12 + $0x170] sm:$0xff]  }
 0x980   :  { %v12724_v12 = vld [vmem:[#allocation9 + $0x1688] ss:$16 sps:$4 sm:$0xff]  }
 0x981   :  { %9168 = vmatprep.mubr.bf16.mxu0 %v8341_v18  ;;  %v12766_v17 = vld [vmem:[#allocation12 + $0x130] sm:$0xff]  }
 0x982   :  { %9169 = vmatmul.mubr.bf16.vlgmr.msra.gmra.mxu0 %v13288_v51 }
 0x983   :  { %9219 = vmatpush1.bf16.msra.mxu0 %v12622_v19  ;;  %9250 = vmatprep.mubr.bf16.mxu0 %v8341_v18  ;;  %v12729_v18 = vld [vmem:[#allocation9 + $0x166c] ss:$16 sps:$4 sm:$0xff]   ;;  %v12767_v19 = vld [vmem:[#allocation12 + $0x168] sm:$0xff]  }
 0x984   :  { %9220 = vmatprep.subr.bf16.mxu0 %v12630_v20  ;;  %v12768_v20 = vld [vmem:[#allocation12 + $0x128] sm:$0xff]  }
 0x987   :  { %9221 = vmatpush1.bf16.msra.mxu0 %v12628_v21  ;;  %v12732_v21 = vld [vmem:[#allocation9 + $0x164c] ss:$16 sps:$4 sm:$0xff]  }
 0x988   :  { %9222 = vmatprep.subr.bf16.mxu0 %v12636_v54  ;;  %v12769_v54 = vld [vmem:[#allocation12 + $0x160] sm:$0xff]  }
 0x98b   :  { %9223 = vmatpush1.bf16.msra.mxu0 %v12634_v22  ;;  %v12730_v22 = vld [vmem:[#allocation9 + $0x1648] ss:$16 sps:$4 sm:$0xff]  }
 0x98c   :  { %9224 = vmatprep.subr.bf16.mxu0 %v12642_v36  ;;  %v12770_v36 = vld [vmem:[#allocation12 + $0x120] sm:$0xff]  }
 0x98f   :  { %9225 = vmatpush1.bf16.msra.mxu0 %v12640_v31  ;;  %v12735_v31 = vld [vmem:[#allocation9 + $0x162c] ss:$16 sps:$4 sm:$0xff]  }
 0x990   :  { %9226 = vmatprep.subr.bf16.mxu0 %v12648_v11  ;;  %v12771_v11 = vld [vmem:[#allocation12 + $0x158] sm:$0xff]  }
 0x993   :  { %9227 = vmatpush1.bf16.msra.mxu0 %v12646_v23  ;;  %v12733_v23 = vld [vmem:[#allocation9 + $0x1628] ss:$16 sps:$4 sm:$0xff]  }
 0x994   :  { %9228 = vmatprep.subr.bf16.mxu0 %v12654_v24  ;;  %v12772_v24 = vld [vmem:[#allocation12 + $0x118] sm:$0xff]  }
 0x997   :  { %9229 = vmatpush1.bf16.msra.mxu0 %v12652_v27  ;;  %v12738_v27 = vld [vmem:[#allocation9 + $0x160c] ss:$16 sps:$4 sm:$0xff]  }
 0x998   :  { %9230 = vmatprep.subr.bf16.mxu0 %v12660_v28  ;;  %v12773_v28 = vld [vmem:[#allocation12 + $0x150] sm:$0xff]  }
 0x99b   :  { %9231 = vmatpush1.bf16.msra.mxu0 %v12658_v29  ;;  %v12736_v29 = vld [vmem:[#allocation9 + $0x1608] ss:$16 sps:$4 sm:$0xff]  }
 0x99c   :  { %9232 = vmatprep.subr.bf16.mxu0 %v12666_v32  ;;  %v12774_v32 = vld [vmem:[#allocation12 + $0x110] sm:$0xff]  }
 0x99f   :  { %9233 = vmatpush1.bf16.msra.mxu0 %v12664_v34  ;;  %v12741_v34 = vld [vmem:[#allocation9 + $0x17ec] ss:$16 sps:$4 sm:$0xff]  }
 0x9a0   :  { %9234 = vmatprep.subr.bf16.mxu0 %v12672_v25  ;;  %v12739_v25 = vld [vmem:[#allocation9 + $0x17e8] ss:$16 sps:$4 sm:$0xff]  }
 0x9a3   :  { %9235 = vmatpush2.bf16.msra.mxu0 %v12670_v30  ;;  %v12744_v30 = vld [vmem:[#allocation9 + $0x17cc] ss:$16 sps:$4 sm:$0xff]  }
 0x9a4   :  { %9236 = vmatprep.subr.bf16.mxu0 %v12678_v26  ;;  %v12742_v26 = vld [vmem:[#allocation9 + $0x17c8] ss:$16 sps:$4 sm:$0xff]  }
 0x9a7   :  { %9237 = vmatpush2.bf16.msra.mxu0 %v12676_v33  ;;  %v12747_v33 = vld [vmem:[#allocation9 + $0x17ac] ss:$16 sps:$4 sm:$0xff]  }
 0x9a8   :  { %9238 = vmatprep.subr.bf16.mxu0 %v12684_v35  ;;  %v12745_v35 = vld [vmem:[#allocation9 + $0x17a8] ss:$16 sps:$4 sm:$0xff]  }
 0x9ab   :  { %9239 = vmatpush2.bf16.msra.mxu0 %v12682_v40  ;;  %v12750_v40 = vld [vmem:[#allocation9 + $0x178c] ss:$16 sps:$4 sm:$0xff]  }
 0x9ac   :  { %9240 = vmatprep.subr.bf16.mxu0 %v12690_v39  ;;  %v12748_v39 = vld [vmem:[#allocation9 + $0x1788] ss:$16 sps:$4 sm:$0xff]  }
 0x9af   :  { %9241 = vmatpush2.bf16.msra.mxu0 %v12688_v41  ;;  %v12753_v41 = vld [vmem:[#allocation9 + $0x176c] ss:$16 sps:$4 sm:$0xff]  }
 0x9b0   :  { %9242 = vmatprep.subr.bf16.mxu0 %v12696_v42  ;;  %v12751_v42 = vld [vmem:[#allocation9 + $0x1768] ss:$16 sps:$4 sm:$0xff]  }
 0x9b3   :  { %9243 = vmatpush2.bf16.msra.mxu0 %v12694_v43  ;;  %v12756_v43 = vld [vmem:[#allocation9 + $0x174c] ss:$16 sps:$4 sm:$0xff]  }
 0x9b4   :  { %9244 = vmatprep.subr.bf16.mxu0 %v12702_v46  ;;  %v12754_v46 = vld [vmem:[#allocation9 + $0x1748] ss:$16 sps:$4 sm:$0xff]  }
 0x9b7   :  { %9245 = vmatpush2.bf16.msra.mxu0 %v12700_v48  ;;  %v12757_v48 = vld [vmem:[#allocation9 + $0x1728] ss:$16 sps:$4 sm:$0xff]  }
 0x9b8   :  { %v8329_v56 = vpop.f32.mrf.mxu1  ;;  %9246 = vmatprep.subr.bf16.mxu0 %v12708_v49  ;;  %v12762_v49 = vld [vmem:[#allocation9 + $0x170c] ss:$16 sps:$4 sm:$0xff]  }
 0x9b9   :  { %v8330_v58 = vadd.f32 %v8329_v56, %v8289_v55  ;;  %v12775_v55 = vld [vmem:[#allocation12 + $0x148] sm:$0xff]   ;;  %v12777_v56 = vld [vmem:[#allocation12 + $0x140] sm:$0xff]  }
 0x9ba   :  { %v8331_v53 = vpop.f32.mrf.mxu1 }
 0x9bb   :  { %v8332_v50 = vadd.f32 %v8331_v53, %v8291_v44  ;;  %9247 = vmatpush2.bf16.msra.mxu0 %v12706_v52  ;;  %v8338_v63 = vmax.f32 %v8330_v58, 0.0  ;;  %v12776_v52 = vld [vmem:[#allocation12 + $0x108] sm:$0xff]   ;;  %v12779_v44 = vld [vmem:[#allocation12 + $0x1f8] sm:$0xff]   ;;  %v12781_v53 = vld [vmem:[#allocation12 + $0x1f0] sm:$0xff]  }
 0x9bc   :  { %v8333_v1 = vpop.f32.mrf.mxu1  ;;  %9248 = vmatprep.subr.bf16.mxu0 %v12714_v57  ;;  %v12778_v57 = vld [vmem:[#allocation12 + $0x100] sm:$0xff]   ;;  %v12780_v58 = vld [vmem:[#allocation12 + $0x1b8] sm:$0xff]  }
 0x9bd   :  { %v8339_v38 = vmax.f32 %v8332_v50, 0.0  ;;  %v13297_v4 = vpack.c.bf16 %v8338_v63, %v8338_v63  ;;  %v12782_v50 = vld [vmem:[#allocation12 + $0x1b0] sm:$0xff]   ;;  %v12784_v63 = vld [vmem:[#allocation12 + $0x1a8] sm:$0xff]   ;;  %v12785_v1 = vld [vmem:[#allocation12 + $0x1e0] sm:$0xff]  }
 0x9be   :  { %v8334_v3 = vpop.f32.mrf.mxu1 }
 0x9bf   :  { %v8343_v60 = vpack.c.bf16 %v8339_v38, %v8339_v38  ;;  %9249 = vmatpush2.bf16.msra.mxu0 %v12712_v59  ;;  %v12783_v59 = vld [vmem:[#allocation12 + $0x1e8] sm:$0xff]   ;;  %v12786_v38 = vld [vmem:[#allocation12 + $0x1a0] sm:$0xff]   ;;  %v12787_v3 = vld [vmem:[#allocation12 + $0x1d8] sm:$0xff]  }
 0x9c0   :  { %10938 = vmatprep.subr.bf16.mxu0 %v12763_v8  ;;  %v12793_v8 = vld [vmem:[#allocation12 + $0x1c0] sm:$0xff]  }
 0x9c1   :  { %9209 = vmatprep.mubr.bf16.mxu1 %v8343_v60 }
 0x9c2   :  { %9210 = vmatmul.mubr.bf16.vlgmr.msra.gmra.mxu1 %v13297_v4  ;;  %9251 = vmatmul.mubr.bf16.vlgmr.msra.gmra.mxu0 %v13288_v51  ;;  %v12727_v51 = vld [vmem:[#allocation9 + $0x1668] ss:$16 sps:$4 sm:$0xff]  }
 0x9c3   :  { %9260 = vmatpush1.bf16.msra.mxu1 %v12715_v2  ;;  %9291 = vmatprep.mubr.bf16.mxu1 %v8343_v60  ;;  %v12788_v60 = vld [vmem:[#allocation12 + $0x198] sm:$0xff]   ;;  %v12789_v2 = vld [vmem:[#allocation12 + $0x1d0] sm:$0xff]  }
 0x9c4   :  { %9261 = vmatprep.subr.bf16.mxu1 %v12720_v5  ;;  %10939 = vmatpush3.bf16.msra.mxu0 %v12764_v6  ;;  %v12794_v6 = vld [vmem:[#allocation12 + $0x180] sm:$0xff]  }
 0x9c5   :  { %10940 = vmatprep.subr.bf16.mxu0 %v12765_v10 }
 0x9c7   :  { %9262 = vmatpush1.bf16.msra.mxu1 %v12718_v62  ;;  %v12791_v62 = vld [vmem:[#allocation12 + $0x1c8] sm:$0xff]  }
 0x9c8   :  { %9263 = vmatprep.subr.bf16.mxu1 %v12723_v7  ;;  %10941 = vmatpush3.bf16.msra.mxu0 %v12766_v17  ;;  %v12792_v7 = vld [vmem:[#allocation12 + $0x188] sm:$0xff]  }
 0x9c9   :  { %10942 = vmatprep.subr.bf16.mxu0 %v12767_v19 }
 0x9cb   :  { %9264 = vmatpush1.bf16.msra.mxu1 %v12721_v61 }
 0x9cc   :  { %9265 = vmatprep.subr.bf16.mxu1 %v12726_v9  ;;  %10943 = vmatpush3.bf16.msra.mxu0 %v12768_v20 }
 0x9cd   :  { %10944 = vmatprep.subr.bf16.mxu0 %v12769_v54 }
 0x9cf   :  { %9266 = vmatpush1.bf16.msra.mxu1 %v12724_v12  ;;  %v12795_v12 = vld [vmem:[%s13315_s1] sm:$0xff] }
 0x9d0   :  { %9267 = vmatprep.subr.bf16.mxu1 %v12729_v18  ;;  %10945 = vmatpush3.bf16.msra.mxu0 %v12770_v36  ;;  %vm9653_vm2 = vcmp.eq.s32.totalorder %v12795_v12, 1  ;;  %v8474_v18 = vld [vmem:[#allocation10 + $0x14] sm:$0xf] }
 0x9d1   :  { %10946 = vmatprep.subr.bf16.mxu0 %v12771_v11  ;;  %v9654_v17 = vsel %vm9653_vm2, 1, %v12979_v0  ;;  %v8479_v19 = vrot.slane %v8474_v18, %v13079_v13  ;;  %v8487_v13 = vrot.slane %v8474_v18, %v13081_v14 }
 0x9d2   :  { %9656 = vperm.xlu0 %10996, %v9654_v17  }
 0x9d3   :  { %9268 = vmatpush1.bf16.msra.mxu1 %v12727_v51  ;;  %v8483_v51 = vrot.slane %v8474_v18, %v13083_v15  ;;  %v8491_v15 = vrot.slane %v8474_v18, %v13085_v16 }
 0x9d4   :  { %9269 = vmatprep.subr.bf16.mxu1 %v12732_v21  ;;  %10947 = vmatpush3.bf16.msra.mxu0 %v12772_v24 }
 0x9d5   :  { %10948 = vmatprep.subr.bf16.mxu0 %v12773_v28 }
 0x9d7   :  { %9270 = vmatpush1.bf16.msra.mxu1 %v12730_v22 }
 0x9d8   :  { %9271 = vmatprep.subr.bf16.mxu1 %v12735_v31  ;;  %10949 = vmatpush3.bf16.msra.mxu0 %v12774_v32 }
 0x9d9   :  { %10950 = vmatprep.subr.bf16.mxu0 %v12775_v55 }
 0x9db   :  { %9272 = vmatpush1.bf16.msra.mxu1 %v12733_v23 }
 0x9dc   :  { %9273 = vmatprep.subr.bf16.mxu1 %v12738_v27  ;;  %10951 = vmatpush3.bf16.msra.mxu0 %v12776_v52  ;;  %v6413_v52 = vpop.permute.xlu0 %6412 }
 0x9dd   :  { %10952 = vmatprep.subr.bf16.mxu0 %v12777_v56  ;;  %v10861_v56 = vld [vmem:[#allocation13 + $0x1] ss:$0 sm:$0xff]  ;;  %vm6414_vm3 = vcmp.eq.s32.totalorder %v6413_v52, 1 }
 0x9df   :  { %9274 = vmatpush1.bf16.msra.mxu1 %v12736_v29 }
 0x9e0   :  { %9275 = vmatprep.subr.bf16.mxu1 %v12741_v34  ;;  %10953 = vmatpush3.bf16.msra.mxu0 %v12778_v57 }
 0x9e3   :  { %9276 = vmatpush2.bf16.msra.mxu1 %v12739_v25 }
 0x9e4   :  { %9277 = vmatprep.subr.bf16.mxu1 %v12744_v30 }
 0x9e7   :  { %9278 = vmatpush2.bf16.msra.mxu1 %v12742_v26 }
 0x9e8   :  { %9279 = vmatprep.subr.bf16.mxu1 %v12747_v33 }
 0x9eb   :  { %9280 = vmatpush2.bf16.msra.mxu1 %v12745_v35 }
 0x9ec   :  { %9281 = vmatprep.subr.bf16.mxu1 %v12750_v40 }
 0x9ef   :  { %9282 = vmatpush2.bf16.msra.mxu1 %v12748_v39 }
 0x9f0   :  { %9283 = vmatprep.subr.bf16.mxu1 %v12753_v41 }
 0x9f3   :  { %9284 = vmatpush2.bf16.msra.mxu1 %v12751_v42 }
 0x9f4   :  { %9285 = vmatprep.subr.bf16.mxu1 %v12756_v43 }
 0x9f7   :  { %9286 = vmatpush2.bf16.msra.mxu1 %v12754_v46 }
 0x9f8   :  { %9287 = vmatprep.subr.bf16.mxu1 %v12759_v47 }
 0x9fb   :  { %9288 = vmatpush2.bf16.msra.mxu1 %v12757_v48 }
 0x9fc   :  { %9289 = vmatprep.subr.bf16.mxu1 %v12762_v49 }
 0x9ff   :  { %9290 = vmatpush2.bf16.msra.mxu1 %v12760_v45 }
 0xa00   :  { %10960 = vmatprep.subr.bf16.mxu1 %v12779_v44 }
 0xa02   :  { %9292 = vmatmul.mubr.bf16.vlgmr.msra.gmra.mxu1 %v13297_v4  ;;  %v12790_v4 = vld [vmem:[#allocation12 + $0x190] sm:$0xff]  }
 0xa03   :  { %10961 = vmatpush3.bf16.msra.mxu1 %v12780_v58 }
 0xa04   :  { %10962 = vmatprep.subr.bf16.mxu1 %v12781_v53 }
 0xa07   :  { %10963 = vmatpush3.bf16.msra.mxu1 %v12782_v50 }
 0xa08   :  { %10964 = vmatprep.subr.bf16.mxu1 %v12783_v59 }
 0xa0b   :  { %10965 = vmatpush3.bf16.msra.mxu1 %v12784_v63 }
 0xa0c   :  { %10966 = vmatprep.subr.bf16.mxu1 %v12785_v1  ;;  %v6415_v1 = vsel %vm6414_vm3, %v13252_v37, 0.0 }
 0xa0f   :  { %10967 = vmatpush3.bf16.msra.mxu1 %v12786_v38 }
 0xa10   :  { %10968 = vmatprep.subr.bf16.mxu1 %v12787_v3 }
 0xa13   :  { %10969 = vmatpush3.bf16.msra.mxu1 %v12788_v60 }
 0xa14   :  { %10970 = vmatprep.subr.bf16.mxu1 %v12789_v2 }
 0xa17   :  { %10971 = vmatpush3.bf16.msra.mxu1 %v12790_v4 }
 0xa18   :  { %10972 = vmatprep.subr.bf16.mxu1 %v12791_v62 }
 0xa1b   :  { %10973 = vmatpush3.bf16.msra.mxu1 %v12792_v7 }
 0xa1c   :  { %10974 = vmatprep.subr.bf16.mxu1 %v12793_v8 }
 0xa1f   :  { %10975 = vmatpush3.bf16.msra.mxu1 %v12794_v6 }
 0xa42   :  { %v9170_v5 = vpop.f32.mrf.mxu0 }
 0xa43   :  { %v9171_v20 = vadd.f32 %v9170_v5, %v8479_v19 }
 0xa44   :  { %v9172_v61 = vpop.f32.mrf.mxu0 }
 0xa45   :  { %v9173_v22 = vadd.f32 %v9172_v61, %v8483_v51 }
 0xa46   :  { %v9174_v9 = vpop.f32.mrf.mxu0 }
 0xa48   :  { %v9175_v10 = vpop.f32.mrf.mxu0 }
 0xa4d   :  { %v9657_v53 = vpop.permute.xlu0 %9656 }
 0xa4e   :  { %vm9658_vm4 = vcmp.eq.s32.totalorder %v9657_v53, 1 }
 0xa82   :  { %v9211_v21 = vpop.f32.mrf.mxu1  ;;  %v9252_v54 = vpop.f32.mrf.mxu0 }
 0xa83   :  { %v9212_v36 = vadd.f32 %v9211_v21, %v9171_v20  ;;  %v9253_v30 = vadd.f32 %v9252_v54, %v8487_v13 }
 0xa84   :  { %v9213_v31 = vpop.f32.mrf.mxu1  ;;  %v9254_v11 = vpop.f32.mrf.mxu0 }
 0xa85   :  { %v9214_v23 = vadd.f32 %v9213_v31, %v9173_v22  ;;  %v9300_v24 = vmax.f32 %v9212_v36, 0.0  ;;  %v9255_v33 = vadd.f32 %v9254_v11, %v8491_v15 }
 0xa86   :  { %v9215_v27 = vpop.f32.mrf.mxu1  ;;  %v9256_v28 = vpop.f32.mrf.mxu0 }
 0xa87   :  { %v9301_v29 = vmax.f32 %v9214_v23, 0.0  ;;  %v9304_v25 = vpack.c.bf16 %v9300_v24, %v9300_v24 }
 0xa88   :  { %v9216_v32 = vpop.f32.mrf.mxu1  ;;  %v9257_v0 = vpop.f32.mrf.mxu0 }
 0xa89   :  { %v9305_v34 = vpack.c.bf16 %v9301_v29, %v9301_v29 }
 0xa8b   :  { %9605 = vmatprep.mubr.bf16.mxu0 %v9305_v34 }
 0xa8c   :  { %9606 = vmatmul.mubr.bf16.vlgmr.msra.gmra.mxu0 %v9304_v25 }
 0xac2   :  { %v9293_v26 = vpop.f32.mrf.mxu1 }
 0xac3   :  { %v9294_v35 = vadd.f32 %v9293_v26, %v9253_v30 }
 0xac4   :  { %v9295_v40 = vpop.f32.mrf.mxu1 }
 0xac5   :  { %v9296_v39 = vadd.f32 %v9295_v40, %v9255_v33  ;;  %v9302_v41 = vmax.f32 %v9294_v35, 0.0 }
 0xac6   :  { %v9297_v42 = vpop.f32.mrf.mxu1 }
 0xac7   :  { %v9303_v43 = vmax.f32 %v9296_v39, 0.0  ;;  %v9306_v48 = vpack.c.bf16 %v9302_v41, %v9302_v41 }
 0xac8   :  { %v9298_v46 = vpop.f32.mrf.mxu1 }
 0xac9   :  { %v9307_v47 = vpack.c.bf16 %v9303_v43, %v9303_v43 }
 0xacb   :  { %9645 = vmatprep.mubr.bf16.mxu1 %v9307_v47 }
 0xacc   :  { %9646 = vmatmul.mubr.bf16.vlgmr.msra.gmra.mxu1 %v9306_v48 }
 0xb4c   :  { %v10954_v49 = vpop.f32.mrf.mxu0 }
 0xb4e   :  { %v10955_v45 = vpop.f32.mrf.mxu0 }
 0xb4f   :  { %v10956_v16 = vadd.f32 %v10955_v45, %v10954_v49 }
 0xb50   :  { %v10957_v55 = vpop.f32.mrf.mxu0 }
 0xb51   :  { %v9608_v58 = vadd.f32 %v10956_v16, %v10861_v56 }
 0xb52   :  { %v10958_v14 = vpop.f32.mrf.mxu0 }
 0xb8c   :  { %v10976_v57 = vpop.f32.mrf.mxu1 }
 0xb8e   :  { %v10977_v44 = vpop.f32.mrf.mxu1 }
 0xb8f   :  { %v10978_v50 = vadd.f32 %v10977_v44, %v10976_v57 }
 0xb90   :  { %v10979_v59 = vpop.f32.mrf.mxu1 }
 0xb91   :  { %v9648_v63 = vadd.f32 %v10978_v50, %v9608_v58 }
 0xb92   :  { %v10980_v38 = vpop.f32.mrf.mxu1 }
 0xb93   :  { %v9659_v3 = vsel %vm9658_vm4, %v9648_v63, %v6415_v1 }
 0xb94   :  { %9660 = vst [vmem:[%s13324_s10] sm:$0xff] %v9659_v3 }
 0xb95   :  { %9665 = vsyncpa [#allocation3], 1 }
 0xb96   :  { %9666 = vsyncpa [#allocation5], 1 }
 0xb97   :  { %9667 = vsyncpa [#allocation8], 1 }
 0xb98   :  { %9668 = vsyncpa [#allocation11], 1 }
 0xb99   :  { %9669 = vsyncpa [#allocation14], 1 }

</bundles_post_ra>
